<compile_context>
chip_gen: v5e
topology: v5e:2x2
jax: 0.10.0
libtpu: 0.0.40
codegen_flags: <defaults>
</compile_context>

<pallas_src>
import functools

import jax
import jax.numpy as jnp
from jax.experimental import pallas as pl
from jax.experimental.pallas import tpu as pltpu

_HIGHEST = jax.lax.Precision.HIGHEST


# --------------------------------------------------------------------------- #
# Kernel
# --------------------------------------------------------------------------- #
def _moe_kernel(gate_ref, x_ref, w1_ref, b1_ref, w2_ref, b2_ref, rep_ref,
                o_ref, *, num_experts: int, k: int):
    E = num_experts
    gate = gate_ref[...]                                    # (TN, E) f32, exact
    TN = gate.shape[0]

    # ---- top-k over experts (iterative argmax; k, E are small) -------------
    lane_e = jax.lax.broadcasted_iota(jnp.int32, (TN, E), 1)
    work = gate
    scores, onehots = [], []
    for _ in range(k):
        scores.append(jnp.max(work, axis=-1, keepdims=True))          # (TN, 1)
        idx = jnp.argmax(work, axis=-1)[:, None]                      # (TN, 1)
        oh = lane_e == idx                                            # (TN, E)
        onehots.append(oh)
        work = jnp.where(oh, -jnp.inf, work)
    topk_w = jax.nn.softmax(jnp.concatenate(scores, axis=-1), axis=-1)  # (TN,k)

    # Per-expert combine weights (zero for unselected experts), (TN, E) only.
    comb_e = jnp.zeros((TN, E), jnp.float32)
    for j in range(k):
        comb_e = comb_e + topk_w[:, j:j + 1] * onehots[j].astype(jnp.float32)

    # Expand to per-hidden-column weights with ONE tiny MXU matmul
    # (rep[e, c] = 1 iff column c belongs to expert e's H-block) instead of
    # k full-width (TN, E*H) one-hot passes.
    comb_eh = jnp.dot(comb_e, rep_ref[...], precision=_HIGHEST,
                      preferred_element_type=jnp.float32)             # (TN,E*H)

    # ---- fused expert compute: two wide MXU matmuls -------------------------
    x = x_ref[...]                                                    # (TN, Dp)
    h = jnp.dot(x, w1_ref[...], precision=_HIGHEST,
                preferred_element_type=jnp.float32)
    h = jnp.maximum(h + b1_ref[...], 0.0)                             # (TN,E*H)
    h_scaled = (h * comb_eh).astype(w2_ref.dtype)                     # gate-fold
    out = jnp.dot(h_scaled, w2_ref[...], precision=_HIGHEST,
                  preferred_element_type=jnp.float32)
    out = out + jnp.dot(comb_e, b2_ref[...], precision=_HIGHEST,
                        preferred_element_type=jnp.float32)           # (TN, Dp)
    o_ref[...] = out.astype(o_ref.dtype)


# --------------------------------------------------------------------------- #
# One-time weight packing (call at init, not per forward)
# --------------------------------------------------------------------------- #
def _round_up(x: int, m: int) -> int:
    return (x + m - 1) // m * m


def prepack_moe_params(params, *, compute_dtype=jnp.bfloat16, lane: int = 128):
    """Packs / pads / casts the expert weights once (hoisted out of the hot
    path).  Returns a dict consumed by `moe_pallas`."""
    gw, gb, w1, b1, w2, b2 = params
    E, D, H = w1.shape
    Dp = _round_up(D, lane)
    pad = Dp - D

    w1_all = jnp.transpose(w1, (1, 0, 2)).reshape(D, E * H)           # (D, E*H)
    w1_all = jnp.pad(w1_all, ((0, pad), (0, 0))).astype(compute_dtype)
    w2_all = jnp.pad(w2.reshape(E * H, D),
                     ((0, 0), (0, pad))).astype(compute_dtype)        # (E*H,Dp)
    b1_all = b1.reshape(1, E * H).astype(jnp.float32)
    b2_all = jnp.pad(b2, ((0, 0), (0, pad))).astype(jnp.float32)      # (E, Dp)
    gw_f32 = gw.astype(jnp.float32)                                   # (D, E)
    gb_f32 = gb.reshape(1, E).astype(jnp.float32)
    rep = (jnp.arange(E, dtype=jnp.int32)[:, None]
           == (jnp.arange(E * H, dtype=jnp.int32)[None, :] // H)
           ).astype(jnp.float32)                                      # (E, E*H)

    return dict(gw=gw_f32, gb=gb_f32, w1=w1_all, b1=b1_all, w2=w2_all,
                b2=b2_all, rep=rep, dims=(E, D, H, Dp),
                compute_dtype=jnp.dtype(compute_dtype))


# --------------------------------------------------------------------------- #
# Wrapper
# --------------------------------------------------------------------------- #
def _tensorcores_per_device() -> int:
    try:
        kind = jax.devices()[0].device_kind.lower()
    except Exception:
        return 2
    if any(t in kind for t in ("lite", "v5e", "v6e", "v2", "v3")):
        return 1                     # single TensorCore per device
    return 2                         # v4 / v5p / v7x megacore


def _pick_token_tile(n: int, desired: int, tensorcores: int) -> int:
    """Largest divisor of n <= desired, preferring MXU/sublane alignment and
    keeping >= 2 grid steps only when there are 2 TensorCores to feed."""
    cap = min(desired, n)
    if tensorcores > 1 and n >= 16:
        cap = min(cap, n // 2)
    for align in (256, 128, 8, 1):
        t = cap - cap % align
        while t >= align:
            if n % t == 0:
                return t
            t -= align
    return n


def _const_index_map(ndim: int):
    def im(i):
        return (0,) * ndim
    return im


def moe_pallas(x, packed, *, k: int, token_tile: int = 1024):
    """x: (B, S, D) -> (B, S, D) using the prepacked params from
    prepack_moe_params."""
    E, D, H, Dp = packed["dims"]
    cdt = packed["compute_dtype"]
    B, S, _ = x.shape
    N = B * S

    tile = _pick_token_tile(N, token_tile, _tensorcores_per_device())
    assert N % tile == 0
    steps = N // tile

    x2d = x.reshape(N, D).astype(jnp.float32)
    # Router logits in exact f32 (tiny matmul) so expert selection matches the
    # f32 reference; the streamed x tile can then be bf16 (half the DMA bytes).
    gate = jnp.dot(x2d, packed["gw"], precision=_HIGHEST) + packed["gb"]  # (N,E)
    xp = jnp.pad(x2d, ((0, 0), (0, Dp - D))).astype(cdt)                  # (N,Dp)

    kernel = functools.partial(_moe_kernel, num_experts=E, k=k)
    weight_args = (packed["w1"], packed["b1"], packed["w2"], packed["b2"],
                   packed["rep"])

    itemsz = jnp.dtype(cdt).itemsize
    wbytes = int((packed["w1"].size + packed["w2"].size) * itemsz
                 + (packed["b1"].size + packed["b2"].size
                    + packed["rep"].size) * 4)

    def build(resident_weights: bool):
        if resident_weights:
            # Whole-array, single-buffered, VMEM-resident weights.
            wspecs = [pl.BlockSpec(memory_space=pltpu.MemorySpace.VMEM)
                      for _ in weight_args]
            wmult = 1
        else:
            # Fallback: grid-blocked constant-index specs (double-buffered).
            wspecs = [pl.BlockSpec(w.shape, _const_index_map(w.ndim))
                      for w in weight_args]
            wmult = 2

        in_specs = ([pl.BlockSpec((tile, E), lambda i: (i, 0)),      # gate f32
                     pl.BlockSpec((tile, Dp), lambda i: (i, 0))]     # x tile
                    + wspecs)
        out_spec = pl.BlockSpec((tile, Dp), lambda i: (i, 0))        # lane-dense

        tile_bytes = 2 * tile * (Dp * itemsz + E * 4 + Dp * 4)       # dbl-buffered
        scratch = tile * E * H * 4 * 3 + tile * Dp * 4               # h/comb/out
        est = wmult * wbytes + tile_bytes + scratch
        vmem_limit = int(min(max(2 * est, 32 * 1024 * 1024),
                             56 * 1024 * 1024))

        cost = pl.CostEstimate(
            flops=int(4 * N * Dp * E * H),
            transcendentals=int(N * k),
            bytes_accessed=int(wbytes + N * (Dp * itemsz + E * 4) + N * Dp * 4))

        return pl.pallas_call(
            kernel,
            out_shape=jax.ShapeDtypeStruct((N, Dp), x.dtype),
            grid=(steps,),
            in_specs=in_specs,
            out_specs=out_spec,
            compiler_params=pltpu.CompilerParams(
                dimension_semantics=("parallel",),
                vmem_limit_bytes=vmem_limit),
            cost_estimate=cost)

    args = (gate, xp) + weight_args
    try:
        out = build(True)(*args)
    except Exception:
        # TODO(synk): fallback if whole-array VMEM operand specs are not
        # supported by this JAX version (weights get double-buffered here).
        out = build(False)(*args)

    return out[:, :D].reshape(B, S, D)


# --------------------------------------------------------------------------- #
# Pure-JAX reference + deterministic init
# --------------------------------------------------------------------------- #
def moe_reference(x, params, *, k: int):
    gw, gb, w1, b1, w2, b2 = params
    gate = jnp.dot(x, gw, precision=_HIGHEST) + gb[0]                 # (B,S,E)
    topk_scores, topk_idx = jax.lax.top_k(gate, k)
    topk_w = jax.nn.softmax(topk_scores, axis=-1)
    h = jnp.maximum(jnp.einsum("bsd,edh->bseh", x, w1, precision=_HIGHEST)
                    + b1[None, None], 0.0)
    eo = jnp.einsum("bseh,ehd->bsed", h, w2, precision=_HIGHEST) + b2[None, None]
    gathered = jnp.take_along_axis(eo, topk_idx[..., None], axis=-2)  # (B,S,k,D)
    return (gathered * topk_w[..., None]).sum(axis=-2)


def init_params(key, input_size, hidden_size, num_experts):
    """PyTorch-style uniform init bounds."""
    D, H, E = input_size, hidden_size, num_experts
    ks = jax.random.split(key, 6)
    u = lambda kk, shape, fan_in: jax.random.uniform(
        kk, shape, jnp.float32, -1.0 / jnp.sqrt(fan_in), 1.0 / jnp.sqrt(fan_in))
    gw = u(ks[0], (D, E), D)
    gb = u(ks[1], (1, E), D)
    w1 = u(ks[2], (E, D, H), D)
    b1 = u(ks[3], (E, H), D)
    w2 = u(ks[4], (E, H, D), H)
    b2 = u(ks[5], (E, D), H)
    return gw, gb, w1, b1, w2, b2


if __name__ == "__main__":
    # Small shapes consistent with the module: batch=2, seq=8, input_size=32.
    B, S, D = 2, 8, 32
    H, E, K = 64, 4, 2

    key = jax.random.PRNGKey(0)
    kx, kp = jax.random.split(key)
    x = jax.random.normal(kx, (B, S, D), dtype=jnp.float32)
    params = init_params(kp, D, H, E)

    ref = moe_reference(x, params, k=K)

    # f32 operands end-to-end: tight algorithmic check (routing / combine).
    packed_f32 = prepack_moe_params(params, compute_dtype=jnp.float32)
    out_f32 = jax.block_until_ready(moe_pallas(x, packed_f32, k=K))
    assert out_f32.shape == (B, S, D)
    err32 = float(jnp.max(jnp.abs(out_f32 - ref)))
    assert jnp.allclose(out_f32, ref, atol=2e-3, rtol=2e-3), (
        f"f32 max abs err {err32}")

    # Fast path: bf16 operands into the MXU (f32 accumulation).
    packed_bf16 = prepack_moe_params(params, compute_dtype=jnp.bfloat16)
    out_bf = jax.block_until_ready(moe_pallas(x, packed_bf16, k=K))
    assert out_bf.shape == (B, S, D)
    errbf = float(jnp.max(jnp.abs(out_bf - ref)))
    assert jnp.allclose(out_bf, ref, atol=5e-2, rtol=5e-2), (
        f"bf16 max abs err {errbf}")

    print("KERNEL_OK")
</pallas_src>

<mosaic_0001>
module attributes {stable_mosaic.version = 11 : i64} {
  func.func @_moe_kernel(%arg0: i32, %arg1: memref<8x4xf32, #tpu.memory_space<vmem>>, %arg2: memref<8x128xf32, #tpu.memory_space<vmem>>, %arg3: memref<128x256xf32, #tpu.memory_space<vmem>>, %arg4: memref<1x256xf32, #tpu.memory_space<vmem>>, %arg5: memref<256x128xf32, #tpu.memory_space<vmem>>, %arg6: memref<4x128xf32, #tpu.memory_space<vmem>>, %arg7: memref<4x256xf32, #tpu.memory_space<vmem>>, %arg8: memref<8x128xf32, #tpu.memory_space<vmem>>) attributes {dimension_semantics = [#tpu.dimension_semantics<parallel>], iteration_bounds = array<i64: 2>, scalar_prefetch = 0 : i64, scratch_operands = 0 : i64, tpu.core_type = #tpu.core_type<tc>, window_params = [{transform_indices = @transform_0, window_bounds = array<i64: 8, 4>}, {transform_indices = @transform_1, window_bounds = array<i64: 8, 128>}, {pipeline_mode = #tpu.pipeline_mode<synchronous>, transform_indices = @transform_2, window_bounds = array<i64: 128, 256>}, {pipeline_mode = #tpu.pipeline_mode<synchronous>, transform_indices = @transform_3, window_bounds = array<i64: 1, 256>}, {pipeline_mode = #tpu.pipeline_mode<synchronous>, transform_indices = @transform_4, window_bounds = array<i64: 256, 128>}, {pipeline_mode = #tpu.pipeline_mode<synchronous>, transform_indices = @transform_5, window_bounds = array<i64: 4, 128>}, {pipeline_mode = #tpu.pipeline_mode<synchronous>, transform_indices = @transform_6, window_bounds = array<i64: 4, 256>}, {transform_indices = @transform_7, window_bounds = array<i64: 8, 128>}]} {
    %c0 = arith.constant 0 : index
    %c0_0 = arith.constant 0 : index
    %0 = vector.load %arg1[%c0, %c0_0] : memref<8x4xf32, #tpu.memory_space<vmem>>, vector<8x4xf32>
    %1 = tpu.iota {dimensions = array<i32: 1>} : vector<8x4xi32>
    %cst = arith.constant dense<0xFF800000> : vector<8xf32>
    %2 = vector.multi_reduction <maximumf>, %0, %cst [1] : vector<8x4xf32> to vector<8xf32>
    %3 = vector.shape_cast %2 : vector<8xf32> to vector<8x1xf32>
    %4 = tpu.reduce_index %0 {axis = 1 : i32, kind = #tpu.reduction_kind<arg_max>} : vector<8x4xf32> -> vector<8xi32>
    %5 = vector.shape_cast %4 : vector<8xi32> to vector<8x1xi32>
    %6 = vector.broadcast %5 : vector<8x1xi32> to vector<8x4xi32>
    %7 = arith.cmpi eq, %1, %6 : vector<8x4xi32>
    %cst_1 = arith.constant 0xFF800000 : f32
    %8 = vector.broadcast %cst_1 : f32 to vector<8x4xf32>
    %9 = arith.select %7, %8, %0 : vector<8x4xi1>, vector<8x4xf32>
    %cst_2 = arith.constant dense<0xFF800000> : vector<8xf32>
    %10 = vector.multi_reduction <maximumf>, %9, %cst_2 [1] : vector<8x4xf32> to vector<8xf32>
    %11 = vector.shape_cast %10 : vector<8xf32> to vector<8x1xf32>
    %12 = tpu.reduce_index %9 {axis = 1 : i32, kind = #tpu.reduction_kind<arg_max>} : vector<8x4xf32> -> vector<8xi32>
    %13 = vector.shape_cast %12 : vector<8xi32> to vector<8x1xi32>
    %14 = vector.broadcast %13 : vector<8x1xi32> to vector<8x4xi32>
    %15 = arith.cmpi eq, %1, %14 : vector<8x4xi32>
    %16 = tpu.concatenate %3, %11 in 1 : vector<8x1xf32>, vector<8x1xf32> -> vector<8x2xf32>
    %cst_3 = arith.constant dense<0xFF800000> : vector<8xf32>
    %17 = vector.multi_reduction <maximumf>, %16, %cst_3 [1] : vector<8x2xf32> to vector<8xf32>
    %cst_4 = arith.constant 0xFF800000 : f32
    %18 = vector.broadcast %cst_4 : f32 to vector<8xf32>
    %19 = arith.maximumf %18, %17 : vector<8xf32>
    %20 = vector.shape_cast %19 : vector<8xf32> to vector<8x1xf32>
    %21 = vector.broadcast %20 : vector<8x1xf32> to vector<8x2xf32>
    %22 = arith.subf %16, %21 : vector<8x2xf32>
    %23 = math.exp %22 : vector<8x2xf32>
    %cst_5 = arith.constant dense<0.000000e+00> : vector<8xf32>
    %24 = vector.multi_reduction <add>, %23, %cst_5 [1] : vector<8x2xf32> to vector<8xf32>
    %25 = vector.shape_cast %24 : vector<8xf32> to vector<8x1xf32>
    %26 = vector.broadcast %25 : vector<8x1xf32> to vector<8x2xf32>
    %27 = arith.divf %23, %26 : vector<8x2xf32>
    %cst_6 = arith.constant 0.000000e+00 : f32
    %28 = vector.broadcast %cst_6 : f32 to vector<8x4xf32>
    %29 = vector.extract_strided_slice %27 {offsets = [0, 0], sizes = [8, 1], strides = [1, 1]} : vector<8x2xf32> to vector<8x1xf32>
    %30 = arith.extui %7 : vector<8x4xi1> to vector<8x4xi32>
    %31 = arith.sitofp %30 : vector<8x4xi32> to vector<8x4xf32>
    %32 = vector.broadcast %29 : vector<8x1xf32> to vector<8x4xf32>
    %33 = arith.mulf %32, %31 : vector<8x4xf32>
    %34 = arith.addf %28, %33 : vector<8x4xf32>
    %35 = vector.extract_strided_slice %27 {offsets = [0, 1], sizes = [8, 1], strides = [1, 1]} : vector<8x2xf32> to vector<8x1xf32>
    %36 = arith.extui %15 : vector<8x4xi1> to vector<8x4xi32>
    %37 = arith.sitofp %36 : vector<8x4xi32> to vector<8x4xf32>
    %38 = vector.broadcast %35 : vector<8x1xf32> to vector<8x4xf32>
    %39 = arith.mulf %38, %37 : vector<8x4xf32>
    %40 = arith.addf %34, %39 : vector<8x4xf32>
    %c0_7 = arith.constant 0 : index
    %c0_8 = arith.constant 0 : index
    %41 = vector.load %arg7[%c0_7, %c0_8] : memref<4x256xf32, #tpu.memory_space<vmem>>, vector<4x256xf32>
    %cst_9 = arith.constant dense<0.000000e+00> : vector<8x256xf32>
    %42 = tpu.matmul %40, %41, %cst_9 {dimension_numbers = #tpu.dot_dimension_numbers<[1], [0], [0], [1], [0, 0, 1, 1], [], []>, precision = #tpu.contract_precision<fp32>} : vector<8x4xf32>, vector<4x256xf32>, vector<8x256xf32> -> vector<8x256xf32>
    %c0_10 = arith.constant 0 : index
    %c0_11 = arith.constant 0 : index
    %43 = vector.load %arg2[%c0_10, %c0_11] : memref<8x128xf32, #tpu.memory_space<vmem>>, vector<8x128xf32>
    %c0_12 = arith.constant 0 : index
    %c0_13 = arith.constant 0 : index
    %44 = vector.load %arg3[%c0_12, %c0_13] : memref<128x256xf32, #tpu.memory_space<vmem>>, vector<128x256xf32>
    %cst_14 = arith.constant dense<0.000000e+00> : vector<8x256xf32>
    %45 = tpu.matmul %43, %44, %cst_14 {dimension_numbers = #tpu.dot_dimension_numbers<[1], [0], [0], [1], [0, 0, 1, 1], [], []>, precision = #tpu.contract_precision<fp32>} : vector<8x128xf32>, vector<128x256xf32>, vector<8x256xf32> -> vector<8x256xf32>
    %c0_15 = arith.constant 0 : index
    %c0_16 = arith.constant 0 : index
    %46 = vector.load %arg4[%c0_15, %c0_16] : memref<1x256xf32, #tpu.memory_space<vmem>>, vector<1x256xf32>
    %47 = vector.broadcast %46 : vector<1x256xf32> to vector<8x256xf32>
    %48 = arith.addf %45, %47 : vector<8x256xf32>
    %cst_17 = arith.constant 0.000000e+00 : f32
    %49 = vector.broadcast %cst_17 : f32 to vector<8x256xf32>
    %50 = arith.maximumf %48, %49 : vector<8x256xf32>
    %51 = arith.mulf %50, %42 : vector<8x256xf32>
    %c0_18 = arith.constant 0 : index
    %c0_19 = arith.constant 0 : index
    %52 = vector.load %arg5[%c0_18, %c0_19] : memref<256x128xf32, #tpu.memory_space<vmem>>, vector<256x128xf32>
    %cst_20 = arith.constant dense<0.000000e+00> : vector<8x128xf32>
    %53 = tpu.matmul %51, %52, %cst_20 {dimension_numbers = #tpu.dot_dimension_numbers<[1], [0], [0], [1], [0, 0, 1, 1], [], []>, precision = #tpu.contract_precision<fp32>} : vector<8x256xf32>, vector<256x128xf32>, vector<8x128xf32> -> vector<8x128xf32>
    %c0_21 = arith.constant 0 : index
    %c0_22 = arith.constant 0 : index
    %54 = vector.load %arg6[%c0_21, %c0_22] : memref<4x128xf32, #tpu.memory_space<vmem>>, vector<4x128xf32>
    %cst_23 = arith.constant dense<0.000000e+00> : vector<8x128xf32>
    %55 = tpu.matmul %40, %54, %cst_23 {dimension_numbers = #tpu.dot_dimension_numbers<[1], [0], [0], [1], [0, 0, 1, 1], [], []>, precision = #tpu.contract_precision<fp32>} : vector<8x4xf32>, vector<4x128xf32>, vector<8x128xf32> -> vector<8x128xf32>
    %56 = arith.addf %53, %55 : vector<8x128xf32>
    %c0_24 = arith.constant 0 : index
    %c0_25 = arith.constant 0 : index
    %57 = vector.load %arg8[%c0_24, %c0_25] : memref<8x128xf32, #tpu.memory_space<vmem>>, vector<8x128xf32>
    tpu.vector_store %arg8[%c0_24, %c0_25], %56 {strides = array<i32>} : memref<8x128xf32, #tpu.memory_space<vmem>>, vector<8x128xf32>,
    return
  }
  func.func @transform_0(%arg0: i32) -> (i32, i32) {
    %c0_i32 = arith.constant 0 : i32
    %c0_i32_0 = arith.constant 0 : i32
    return %arg0, %c0_i32 : i32, i32
  }
  func.func @transform_1(%arg0: i32) -> (i32, i32) {
    %c0_i32 = arith.constant 0 : i32
    %c0_i32_0 = arith.constant 0 : i32
    return %arg0, %c0_i32 : i32, i32
  }
  func.func @transform_2(%arg0: i32) -> (i32, i32) {
    %c0_i32 = arith.constant 0 : i32
    %c0_i32_0 = arith.constant 0 : i32
    %c0_i32_1 = arith.constant 0 : i32
    return %c0_i32, %c0_i32_0 : i32, i32
  }
  func.func @transform_3(%arg0: i32) -> (i32, i32) {
    %c0_i32 = arith.constant 0 : i32
    %c0_i32_0 = arith.constant 0 : i32
    %c0_i32_1 = arith.constant 0 : i32
    return %c0_i32, %c0_i32_0 : i32, i32
  }
  func.func @transform_4(%arg0: i32) -> (i32, i32) {
    %c0_i32 = arith.constant 0 : i32
    %c0_i32_0 = arith.constant 0 : i32
    %c0_i32_1 = arith.constant 0 : i32
    return %c0_i32, %c0_i32_0 : i32, i32
  }
  func.func @transform_5(%arg0: i32) -> (i32, i32) {
    %c0_i32 = arith.constant 0 : i32
    %c0_i32_0 = arith.constant 0 : i32
    %c0_i32_1 = arith.constant 0 : i32
    return %c0_i32, %c0_i32_0 : i32, i32
  }
  func.func @transform_6(%arg0: i32) -> (i32, i32) {
    %c0_i32 = arith.constant 0 : i32
    %c0_i32_0 = arith.constant 0 : i32
    %c0_i32_1 = arith.constant 0 : i32
    return %c0_i32, %c0_i32_0 : i32, i32
  }
  func.func @transform_7(%arg0: i32) -> (i32, i32) {
    %c0_i32 = arith.constant 0 : i32
    %c0_i32_0 = arith.constant 0 : i32
    return %arg0, %c0_i32 : i32, i32
  }
}

module attributes {stable_mosaic.version = 11 : i64} {
  func.func @_moe_kernel(%arg0: i32, %arg1: memref<8x4xf32, #tpu.memory_space<vmem>>, %arg2: memref<8x128xf32, #tpu.memory_space<vmem>>, %arg3: memref<128x256xf32, #tpu.memory_space<vmem>>, %arg4: memref<1x256xf32, #tpu.memory_space<vmem>>, %arg5: memref<256x128xf32, #tpu.memory_space<vmem>>, %arg6: memref<4x128xf32, #tpu.memory_space<vmem>>, %arg7: memref<4x256xf32, #tpu.memory_space<vmem>>, %arg8: memref<8x128xf32, #tpu.memory_space<vmem>>) attributes {dimension_semantics = [#tpu.dimension_semantics<parallel>], iteration_bounds = array<i64: 2>, scalar_prefetch = 0 : i64, scratch_operands = 0 : i64, tpu.core_type = #tpu.core_type<tc>, window_params = [{transform_indices = @transform_0, window_bounds = array<i64: 8, 4>}, {transform_indices = @transform_1, window_bounds = array<i64: 8, 128>}, {pipeline_mode = #tpu.pipeline_mode<synchronous>, transform_indices = @transform_2, window_bounds = array<i64: 128, 256>}, {pipeline_mode = #tpu.pipeline_mode<synchronous>, transform_indices = @transform_3, window_bounds = array<i64: 1, 256>}, {pipeline_mode = #tpu.pipeline_mode<synchronous>, transform_indices = @transform_4, window_bounds = array<i64: 256, 128>}, {pipeline_mode = #tpu.pipeline_mode<synchronous>, transform_indices = @transform_5, window_bounds = array<i64: 4, 128>}, {pipeline_mode = #tpu.pipeline_mode<synchronous>, transform_indices = @transform_6, window_bounds = array<i64: 4, 256>}, {transform_indices = @transform_7, window_bounds = array<i64: 8, 128>}]} {
    %c0 = arith.constant 0 : index
    %c0_0 = arith.constant 0 : index
    %0 = vector.load %arg1[%c0, %c0_0] : memref<8x4xf32, #tpu.memory_space<vmem>>, vector<8x4xf32>
    %1 = tpu.iota {dimensions = array<i32: 1>} : vector<8x4xi32>
    %cst = arith.constant dense<0xFF800000> : vector<8xf32>
    %2 = vector.multi_reduction <maximumf>, %0, %cst [1] : vector<8x4xf32> to vector<8xf32>
    %3 = vector.shape_cast %2 : vector<8xf32> to vector<8x1xf32>
    %4 = tpu.reduce_index %0 {axis = 1 : i32, kind = #tpu.reduction_kind<arg_max>} : vector<8x4xf32> -> vector<8xi32>
    %5 = vector.shape_cast %4 : vector<8xi32> to vector<8x1xi32>
    %6 = vector.broadcast %5 : vector<8x1xi32> to vector<8x4xi32>
    %7 = arith.cmpi eq, %1, %6 : vector<8x4xi32>
    %cst_1 = arith.constant 0xFF800000 : f32
    %8 = vector.broadcast %cst_1 : f32 to vector<8x4xf32>
    %9 = arith.select %7, %8, %0 : vector<8x4xi1>, vector<8x4xf32>
    %cst_2 = arith.constant dense<0xFF800000> : vector<8xf32>
    %10 = vector.multi_reduction <maximumf>, %9, %cst_2 [1] : vector<8x4xf32> to vector<8xf32>
    %11 = vector.shape_cast %10 : vector<8xf32> to vector<8x1xf32>
    %12 = tpu.reduce_index %9 {axis = 1 : i32, kind = #tpu.reduction_kind<arg_max>} : vector<8x4xf32> -> vector<8xi32>
    %13 = vector.shape_cast %12 : vector<8xi32> to vector<8x1xi32>
    %14 = vector.broadcast %13 : vector<8x1xi32> to vector<8x4xi32>
    %15 = arith.cmpi eq, %1, %14 : vector<8x4xi32>
    %16 = tpu.concatenate %3, %11 in 1 : vector<8x1xf32>, vector<8x1xf32> -> vector<8x2xf32>
    %cst_3 = arith.constant dense<0xFF800000> : vector<8xf32>
    %17 = vector.multi_reduction <maximumf>, %16, %cst_3 [1] : vector<8x2xf32> to vector<8xf32>
    %cst_4 = arith.constant 0xFF800000 : f32
    %18 = vector.broadcast %cst_4 : f32 to vector<8xf32>
    %19 = arith.maximumf %18, %17 : vector<8xf32>
    %20 = vector.shape_cast %19 : vector<8xf32> to vector<8x1xf32>
    %21 = vector.broadcast %20 : vector<8x1xf32> to vector<8x2xf32>
    %22 = arith.subf %16, %21 : vector<8x2xf32>
    %23 = math.exp %22 : vector<8x2xf32>
    %cst_5 = arith.constant dense<0.000000e+00> : vector<8xf32>
    %24 = vector.multi_reduction <add>, %23, %cst_5 [1] : vector<8x2xf32> to vector<8xf32>
    %25 = vector.shape_cast %24 : vector<8xf32> to vector<8x1xf32>
    %26 = vector.broadcast %25 : vector<8x1xf32> to vector<8x2xf32>
    %27 = arith.divf %23, %26 : vector<8x2xf32>
    %cst_6 = arith.constant 0.000000e+00 : f32
    %28 = vector.broadcast %cst_6 : f32 to vector<8x4xf32>
    %29 = vector.extract_strided_slice %27 {offsets = [0, 0], sizes = [8, 1], strides = [1, 1]} : vector<8x2xf32> to vector<8x1xf32>
    %30 = arith.extui %7 : vector<8x4xi1> to vector<8x4xi32>
    %31 = arith.sitofp %30 : vector<8x4xi32> to vector<8x4xf32>
    %32 = vector.broadcast %29 : vector<8x1xf32> to vector<8x4xf32>
    %33 = arith.mulf %32, %31 : vector<8x4xf32>
    %34 = arith.addf %28, %33 : vector<8x4xf32>
    %35 = vector.extract_strided_slice %27 {offsets = [0, 1], sizes = [8, 1], strides = [1, 1]} : vector<8x2xf32> to vector<8x1xf32>
    %36 = arith.extui %15 : vector<8x4xi1> to vector<8x4xi32>
    %37 = arith.sitofp %36 : vector<8x4xi32> to vector<8x4xf32>
    %38 = vector.broadcast %35 : vector<8x1xf32> to vector<8x4xf32>
    %39 = arith.mulf %38, %37 : vector<8x4xf32>
    %40 = arith.addf %34, %39 : vector<8x4xf32>
    %c0_7 = arith.constant 0 : index
    %c0_8 = arith.constant 0 : index
    %41 = vector.load %arg7[%c0_7, %c0_8] : memref<4x256xf32, #tpu.memory_space<vmem>>, vector<4x256xf32>
    %cst_9 = arith.constant dense<0.000000e+00> : vector<8x256xf32>
    %42 = tpu.matmul %40, %41, %cst_9 {dimension_numbers = #tpu.dot_dimension_numbers<[1], [0], [0], [1], [0, 0, 1, 1], [], []>, precision = #tpu.contract_precision<fp32>} : vector<8x4xf32>, vector<4x256xf32>, vector<8x256xf32> -> vector<8x256xf32>
    %c0_10 = arith.constant 0 : index
    %c0_11 = arith.constant 0 : index
    %43 = vector.load %arg2[%c0_10, %c0_11] : memref<8x128xf32, #tpu.memory_space<vmem>>, vector<8x128xf32>
    %c0_12 = arith.constant 0 : index
    %c0_13 = arith.constant 0 : index
    %44 = vector.load %arg3[%c0_12, %c0_13] : memref<128x256xf32, #tpu.memory_space<vmem>>, vector<128x256xf32>
    %cst_14 = arith.constant dense<0.000000e+00> : vector<8x256xf32>
    %45 = tpu.matmul %43, %44, %cst_14 {dimension_numbers = #tpu.dot_dimension_numbers<[1], [0], [0], [1], [0, 0, 1, 1], [], []>, precision = #tpu.contract_precision<fp32>} : vector<8x128xf32>, vector<128x256xf32>, vector<8x256xf32> -> vector<8x256xf32>
    %c0_15 = arith.constant 0 : index
    %c0_16 = arith.constant 0 : index
    %46 = vector.load %arg4[%c0_15, %c0_16] : memref<1x256xf32, #tpu.memory_space<vmem>>, vector<1x256xf32>
    %47 = vector.broadcast %46 : vector<1x256xf32> to vector<8x256xf32>
    %48 = arith.addf %45, %47 : vector<8x256xf32>
    %cst_17 = arith.constant 0.000000e+00 : f32
    %49 = vector.broadcast %cst_17 : f32 to vector<8x256xf32>
    %50 = arith.maximumf %48, %49 : vector<8x256xf32>
    %51 = arith.mulf %50, %42 : vector<8x256xf32>
    %c0_18 = arith.constant 0 : index
    %c0_19 = arith.constant 0 : index
    %52 = vector.load %arg5[%c0_18, %c0_19] : memref<256x128xf32, #tpu.memory_space<vmem>>, vector<256x128xf32>
    %cst_20 = arith.constant dense<0.000000e+00> : vector<8x128xf32>
    %53 = tpu.matmul %51, %52, %cst_20 {dimension_numbers = #tpu.dot_dimension_numbers<[1], [0], [0], [1], [0, 0, 1, 1], [], []>, precision = #tpu.contract_precision<fp32>} : vector<8x256xf32>, vector<256x128xf32>, vector<8x128xf32> -> vector<8x128xf32>
    %c0_21 = arith.constant 0 : index
    %c0_22 = arith.constant 0 : index
    %54 = vector.load %arg6[%c0_21, %c0_22] : memref<4x128xf32, #tpu.memory_space<vmem>>, vector<4x128xf32>
    %cst_23 = arith.constant dense<0.000000e+00> : vector<8x128xf32>
    %55 = tpu.matmul %40, %54, %cst_23 {dimension_numbers = #tpu.dot_dimension_numbers<[1], [0], [0], [1], [0, 0, 1, 1], [], []>, precision = #tpu.contract_precision<fp32>} : vector<8x4xf32>, vector<4x128xf32>, vector<8x128xf32> -> vector<8x128xf32>
    %56 = arith.addf %53, %55 : vector<8x128xf32>
    %c0_24 = arith.constant 0 : index
    %c0_25 = arith.constant 0 : index
    %57 = vector.load %arg8[%c0_24, %c0_25] : memref<8x128xf32, #tpu.memory_space<vmem>>, vector<8x128xf32>
    tpu.vector_store %arg8[%c0_24, %c0_25], %56 {strides = array<i32>} : memref<8x128xf32, #tpu.memory_space<vmem>>, vector<8x128xf32>,
    return
  }
  func.func @transform_0(%arg0: i32) -> (i32, i32) {
    %c0_i32 = arith.constant 0 : i32
    %c0_i32_0 = arith.constant 0 : i32
    return %arg0, %c0_i32 : i32, i32
  }
  func.func @transform_1(%arg0: i32) -> (i32, i32) {
    %c0_i32 = arith.constant 0 : i32
    %c0_i32_0 = arith.constant 0 : i32
    return %arg0, %c0_i32 : i32, i32
  }
  func.func @transform_2(%arg0: i32) -> (i32, i32) {
    %c0_i32 = arith.constant 0 : i32
    %c0_i32_0 = arith.constant 0 : i32
    %c0_i32_1 = arith.constant 0 : i32
    return %c0_i32, %c0_i32_0 : i32, i32
  }
  func.func @transform_3(%arg0: i32) -> (i32, i32) {
    %c0_i32 = arith.constant 0 : i32
    %c0_i32_0 = arith.constant 0 : i32
    %c0_i32_1 = arith.constant 0 : i32
    return %c0_i32, %c0_i32_0 : i32, i32
  }
  func.func @transform_4(%arg0: i32) -> (i32, i32) {
    %c0_i32 = arith.constant 0 : i32
    %c0_i32_0 = arith.constant 0 : i32
    %c0_i32_1 = arith.constant 0 : i32
    return %c0_i32, %c0_i32_0 : i32, i32
  }
  func.func @transform_5(%arg0: i32) -> (i32, i32) {
    %c0_i32 = arith.constant 0 : i32
    %c0_i32_0 = arith.constant 0 : i32
    %c0_i32_1 = arith.constant 0 : i32
    return %c0_i32, %c0_i32_0 : i32, i32
  }
  func.func @transform_6(%arg0: i32) -> (i32, i32) {
    %c0_i32 = arith.constant 0 : i32
    %c0_i32_0 = arith.constant 0 : i32
    %c0_i32_1 = arith.constant 0 : i32
    return %c0_i32, %c0_i32_0 : i32, i32
  }
  func.func @transform_7(%arg0: i32) -> (i32, i32) {
    %c0_i32 = arith.constant 0 : i32
    %c0_i32_0 = arith.constant 0 : i32
    return %arg0, %c0_i32 : i32, i32
  }
}

</mosaic_0001>

<bundles_post_ra>
// kernel: tpu_custom_call.1
= control target key start
LH: loop header
LB: loop body
LE: loop exit
PB: predicated region body
PF: predicated region fallthrough
CT: control target
= control target key end

     0   :  { %s4023_s0 = inlined_call_operand.vmem [shape: f32[16,4], index: 0, kind: input, shape index: {}]   ;;  %s4024_s1 = inlined_call_operand.vmem [shape: f32[16,128], index: 1, kind: input, shape index: {}]   ;;  %s4025_s2 = inlined_call_operand.hbm [shape: f32[128,256], index: 2, kind: input, shape index: {}]   ;;  %s4026_s3 = inlined_call_operand.hbm [shape: f32[1,256], index: 3, kind: input, shape index: {}]   ;;  %s4027_s4 = inlined_call_operand.hbm [shape: f32[256,128], index: 4, kind: input, shape index: {}]   ;;  %s4028_s5 = inlined_call_operand.hbm [shape: f32[4,128], index: 5, kind: input, shape index: {}]   ;;  %s4029_s6 = inlined_call_operand.vmem [shape: f32[4,256], index: 6, kind: input, shape index: {}]   ;;  %s4030_s7 = inlined_call_operand.hbm [shape: f32[16,128], index: 7, kind: output, shape index: {}]  }
   0x1   :  { %4075 = sst [smem:[#allocation22_spill]] %s4025_s2 }
   0x2   :  { %4076 = sst [smem:[#allocation23_spill]] %s4026_s3 }
   0x3   :  { %12 = vsyncpa [#allocation3], 0 }
   0x4   :  { %13 = vsyncpa [#allocation6], 0 }
   0x5   :  { %14 = vsyncpa [#allocation9], 0 }
   0x6   :  { %15 = vsyncpa [#allocation4], 0 }
   0x7   :  { %17 = vsyncpa [#allocation4 + $0x1], 0  ;;  %s2800_s24 = smov 0   ;;  %s2802_s25 = smov 0  }
   0x8   :  { %s2804_s26 = smov 0   ;;  %s2806_s27 = smov 0  }
   0x9 LB: > { %4077 = sst [smem:[#allocation15_spill]] %s2743_s26  ;;  %s2821_s28 = sadd.s32 4294967295, %s2747_s27   ;;  %s2747_s27 = sphi %s2806_s27, %s4149_s27   ;;  %s2743_s26 = sphi %s2804_s26, %s4146_s26   ;;  %s2739_s25 = sphi %s2802_s25, %s4148_s25   ;;  %s2735_s24 = sphi %s2800_s24, %s4147_s24  }
   0xa   : > { %s2438_s29 = sadd.s32 4294967294, %s2747_s27   ;;  %s2825_s30 = sadd.s32 1, %s2747_s27  }
   0xb   : > { %s187_s8 = sadd.s32 1, %s2743_s26  ;;  %s184_s9 = ssub.s32 %s2747_s27, %s2825_s30 }
   0xc   : > { %p197_p0 = scmp.ne.s32.totalorder %s2743_s26, %s2739_s25  ;;  %p185_p1 = scmp.eq.s32.totalorder %s184_s9, 0 }
   0xd   : > { %p198_p2 = scmp.eq.s32.totalorder %s2821_s28, 1  ;;  %p203_p3 = scmp.ne.s32.totalorder %s2739_s25, %s2735_s24 }
   0xe   : > { %p204_p4 = scmp.eq.s32.totalorder %s2438_s29, 1  ;;  %p2439_p7 = scmp.ge.s32.totalorder %s2747_s27, 1 }
   0xf   : > { %s2836_s10 = scalar_select %p185_p1, %s2743_s26, %s187_s8  }
  0x10   : > { %p2838_p5 = por %p198_p2, %p197_p0  ;;  %p2842_p6 = por %p204_p4, %p203_p3 }
  0x11   : > { %4078 = sst [smem:[#allocation16_spill]] %s2836_s10  ;;  %p211_p8 = scmp.lt.s32.totalorder %s2747_s27, 3 }
  0x12   : > { %p2494_p9 = scmp.eq.s32.totalorder %s2821_s28, 0  ;;  %s4082_s3 = sld [smem:[#allocation23_spill]] }
  0x13   : > { %p2849_p10 = pnand %p2439_p7, %p211_p8  ;;  %s2749_s17 = smov [#allocation5]  }
  0x14   : > { %s239_s18 = sshll.u32 %s2749_s17, 4  ;;  %s4083_s2 = sld [smem:[#allocation22_spill]]  ;;  %s240_s18 = int_to_ptr.vmem [resolvable:$true] %s239_s18 }
  0x15   : > { %p2477_p11 = pneg %p2849_p10  ;;  %s2750_s23 = smov [#allocation2]  }
  0x16   : > { %s224_s29 = sshll.u32 %s2750_s23, 4  ;;  %s2751_s8 = smov 256   ;;  %s225_s29 = int_to_ptr.vmem [resolvable:$true] %s224_s29 }
  0x17   : > { %p2863_p12 = pnand %p2494_p9, %p2477_p11  ;;  %s2752_s9 = smov 16  }
  0x18   : > { %s237_s16 = sshll.u32 %s4082_s3, 4  ;;  %s248_s17 = sshll.u32 %s4027_s4, 4  ;;  %s238_s16 = int_to_ptr.hbm [resolvable:$true] %s237_s16  ;;  %s249_s17 = int_to_ptr.hbm [resolvable:$true] %s248_s17 }
  0x19   : > { %2483 = dma.hbm_to_vmem [thread:$0]  (!%p2863_p12), %s238_s16, 32, %s240_s18, [#allocation6]  }
  0x1a   : > { %s222_s21 = sshll.u32 %s4083_s2, 4  ;;  %s2753_s19 = smov [#allocation7]   ;;  %s223_s21 = int_to_ptr.hbm [resolvable:$true] %s222_s21 }
  0x1b   : > { %2480 = dma.hbm_to_vmem [thread:$0]  (!%p2863_p12), %s223_s21, 4096, %s225_s29, [#allocation3], %s2751_s8, %s2751_s8, %s2752_s9  }
  0x1c   : > { %s250_s20 = sshll.u32 %s2753_s19, 4  ;;  %s263_s23 = sshll.u32 %s4028_s5, 4  ;;  %s251_s20 = int_to_ptr.vmem [resolvable:$true] %s250_s20  ;;  %s264_s23 = int_to_ptr.hbm [resolvable:$true] %s263_s23 }
  0x1d   : > { %s2754_s10 = smov 128   ;;  %s2755_s16 = smov 8  }
  0x1e   : > { %2486 = dma.hbm_to_vmem [thread:$0]  (!%p2863_p12), %s249_s17, 4096, %s251_s20, [#allocation6], %s2754_s10, %s2754_s10, %s2755_s16  }
  0x1f   : > { %s2756_s18 = smov [#allocation8]   ;;  %295 = sbr.rel (%p2849_p10) target bundleno = 1078 (0x436), region = 48 }
  0x20   : > { %s265_s26 = sshll.u32 %s2756_s18, 4  ;;  %s266_s26 = int_to_ptr.vmem [resolvable:$true] %s265_s26 }
  0x21   : > { %2489 = dma.hbm_to_vmem [thread:$0]  (!%p2863_p12), %s264_s23, 64, %s266_s26, [#allocation9]  }
  0x24   : > { %2718 = dma.done.wait (%p2494_p9), [#allocation3], 4096  }
  0x25   : > { %2720 = vsyncadd (%p2494_p9), [#allocation3], 4294963200 }
  0x26   : > { %2722 = dma.done.wait (%p2494_p9), [#allocation6], 4128  }
  0x27   : > { %2724 = vsyncadd (%p2494_p9), [#allocation6], 4294963168 }
  0x28   : > { %2726 = dma.done.wait (%p2494_p9), [#allocation9], 64  }
  0x29   : > { %2728 = vsyncadd (%p2494_p9), [#allocation9], 4294967232  ;;  %p346_p13 = scmp.lt.s32.totalorder %s2821_s28, 1  ;;  %vm357_vm0 = vcmask 31744   ;;  %v355_v2 = vlaneseq  ;;  %vm371_vm2 = vcmask 7168   ;;  %vm373_vm3 = vcmask 15360  }
  0x2a   : > { %v2757_v16 = vmov 1   ;;  %v2758_v17 = vmov 0   ;;  %v415_v30 = vld [vmem:[%s4029_s6] sm:$0xff]  ;;  %vm423_vm8 = vcmask 1043456   ;;  %v749_v47 = vld [vmem:[#allocation2 + $0xe0] sm:$0xff]  ;;  %v2759_v52 = vmov 0.0  }
  0x2b   : > { %s2897_s2 = scalar_select %p346_p13, %s2821_s28, 1  ;;  %v2906_v3 = vand.u32 127, %v355_v2  ;;  %2547 = vset.pattern.permute.xlu1 %v2757_v16  ;;  %2546 = vset.pattern.permute.xlu0 %v2758_v17  ;;  %417 = vst [vmem:[#allocation1] ss:$2 sm:$0xff] %v415_v30  ;;  %v751_v46 = vld [vmem:[#allocation2 + $0xf0] sm:$0xff]  ;;  %v2928_v50 = vand.u32 4294901760, %v749_v47 }
  0x2c   : > { %v2926_v48 = vand.u32 4294901760, %v751_v46  ;;  %v747_v49 = vld [vmem:[#allocation2 + $0xd0] sm:$0xff]  ;;  %v745_v56 = vld [vmem:[#allocation2 + $0xc0] sm:$0xff]  ;;  %s343_s14 = sand.u32 1, %s2739_s25   ;;  %s2456_s17 = sshll.u32 %s2821_s28, 3 }
  0x2d   : > { %s2451_s3 = sshll.u32 %s2897_s2, 3  ;;  %v2936_v60 = vand.u32 4294901760, %v747_v49  ;;  %v2939_v62 = vsub.f32 %v749_v47, %v2928_v50  ;;  %v2941_v63 = vand.u32 4294901760, %v745_v56  ;;  %s2450_s15 = sshll.u32 %s343_s14, 3 }
  0x2e   : > { %s349_s13 = scalar_lea.vmem %s4023_s0, %s2451_s3  ;;  %v2934_v59 = vsub.f32 %v751_v46, %v2926_v48  ;;  %v727_v46 = vld [vmem:[#allocation2 + $0x30] sm:$0xff]  ;;  %s353_s9 = scalar_lea.vmem %s4024_s1, %s2451_s3 }
  0x2f   : > { %v354_v0 = vld [vmem:[%s349_s13] sm:$0xff]  ;;  %s2321_s23 = scalar_lea.hbm %s4030_s7, %s2456_s17  ;;  %s345_s16 = scalar_lea.vmem [#allocation10], %s2450_s15 }
  0x30   : > { %v358_v1 = vsel %vm357_vm0, %v354_v0, -inf  ;;  %v4049_v2 = vand.u32 4294901760, %v2934_v59  ;;  %s2323_s18 = sshll.u32 %s345_s16, 4  ;;  %s2325_s2 = sshll.u32 %s2321_s23, 4  ;;  %s2324_s18 = int_to_ptr.vmem [resolvable:$true] %s2323_s18  ;;  %s2326_s2 = int_to_ptr.hbm [resolvable:$true] %s2325_s2 }
  0x31   : > { %361 = vmax.index.xlane.f32.xlu0 %v358_v1  ;;  %s2311_s28 = scalar_lea.sflag [#allocation4], %s343_s14  ;;  %s2687_s3 = sshra.s32 %s2326_s2, 4  ;;  %s2688_s3 = int_to_ptr.hbm [resolvable:$true] %s2687_s3 }
  0x32   : > { %v418_v31 = vld.sshfl [vmem:[#allocation1] sm:$0xff pattern:$0x75316420]  ;;  %v419_v38 = vld.sshfl [vmem:[#allocation1 + $0x8] sm:$0xff pattern:$0x75316420]  ;;  %p2694_p3 = scmp.lt.s32.totalorder %s2688_s3, %s4030_s7 }
  0x33   : > { %v424_v32 = vsel %vm423_vm8, %v418_v31, 0  ;;  %v426_v39 = vsel %vm423_vm8, %v419_v38, 0  ;;  %s2689_s26 = scalar_lea.hbm %s2688_s3, 8  ;;  %s2693_s21 = scalar_lea.hbm %s4030_s7, 16 }
  0x34   : > { %v443_v33 = vand.u32 4294901760, %v424_v32  ;;  %v589_v40 = vand.u32 4294901760, %v426_v39  ;;  %p2690_p0 = scmp.ne.s32.totalorder %s2688_s3, %s2689_s26  ;;  %p2695_p4 = scmp.lt.s32.totalorder %s2693_s21, %s2689_s26 }
  0x36   : > { %v470_v34 = vsub.f32 %v424_v32, %v443_v33  ;;  %520 = vmatpush.msra.mxu3 %v443_v33  ;;  %444 = vmatpush.msra.mxu0 %v443_v33  ;;  %v2921_v41 = vsub.f32 %v426_v39, %v589_v40  ;;  %p2691_p1 = pnand %p2690_p0, %p2838_p5  ;;  %p2696_p7 = por %p2695_p4, %p2694_p3 }
  0x38   : > { %v471_v35 = vand.u32 4294901760, %v470_v34  ;;  %497 = vmatpush.msra.mxu2 %v470_v34  ;;  %v617_v42 = vand.u32 4294901760, %v2921_v41  ;;  %p2692_p2 = pneg %p2691_p1 }
  0x39   : > { %359 = vmax.xlane.f32.xlu0 %v358_v1 }
  0x3a   : > { %v472_v36 = vsub.f32 %v470_v34, %v471_v35  ;;  %546 = vmatpush.msrb.mxu0 %v471_v35  ;;  %590 = vmatpush.msrb.mxu2 %v589_v40  ;;  %v618_v43 = vsub.f32 %v2921_v41, %v617_v42  ;;  %v731_v35 = vld [vmem:[#allocation2 + $0x50] sm:$0xff]  ;;  %p2697_p8 = pnand %p2696_p7, %p2692_p2 }
  0x3c   : > { %v473_v37 = vand.u32 4294901760, %v472_v36  ;;  %v619_v44 = vand.u32 4294901760, %v618_v43 }
  0x3e   : > { %474 = vmatpush.msra.mxu1 %v473_v37  ;;  %620 = vmatpush.msrb.mxu3 %v619_v44  ;;  %v3019_v44 = vand.u32 4294901760, %v731_v35 }
  0x40   : > { %568 = vmatpush.msrb.mxu1 %v443_v33 }
  0xa4   : > { %v2908_v4 = vpop.xlane.xlu0 %361 }
  0xa5   : > { %vm363_vm1 = vcmp.eq.s32.totalorder %v2906_v3, %v2908_v4  ;;  %v741_v4 = vld [vmem:[#allocation2 + $0xa0] sm:$0xff] }
  0xa6   : > { %v364_v5 = vsel %vm363_vm1, -inf, %v354_v0  ;;  %v2453_v54 = vsel %vm363_vm1, 1.0, %v2759_v52  ;;  %v743_v0 = vld [vmem:[#allocation2 + $0xb0] sm:$0xff] }
  0xa7   : > { %v365_v6 = vsel %vm357_vm0, %v364_v5, -inf }
  0xa8   : > { %366 = vmax.xlane.f32.xlu1 %v365_v6 }
  0xac   : > { %v360_v7 = vpop.xlane.xlu0 %359 }
 0x11b   : > { %v367_v8 = vpop.xlane.xlu1 %366 }
 0x11c   : > { %v372_v9 = vsel %vm371_vm2, %v360_v7, %v367_v8  ;;  %v4048_v7 = vand.u32 4294901760, %v2939_v62  ;;  %v2954_v8 = vsub.f32 %v745_v56, %v2941_v63  ;;  %v3041_v56 = vand.u32 4294901760, %v727_v46 }
 0x11d   : > { %v374_v10 = vsel %vm373_vm3, %v372_v9, -inf }
 0x11e   : > { %375 = vmax.xlane.f32.xlu1 %v374_v10 }
 0x191   : > { %v376_v11 = vpop.xlane.xlu1 %375 }
 0x192   : > { %v377_v12 = vsub.f32 %v372_v9, %v376_v11  ;;  %v739_v9 = vld [vmem:[#allocation2 + $0x90] sm:$0xff]  ;;  %v2960_v11 = vand.u32 4294901760, %v741_v4 }
 0x193   : > { %v2973_v17 = vand.u32 4294901760, %v739_v9 }
 0x194   : > { %v378_v13 = vmul.f32 1.442695, %v377_v12  ;;  %v803_v12 = vsub.f32 %v2934_v59, %v4049_v2  ;;  %v732_v2 = vld [vmem:[#allocation2 + $0x58] sm:$0xff] }
 0x196   : > { %2549 = vpow2.f32 %v378_v13 }
 0x19c   : > { %v2550_v14 = vpop.eup %2549 }
 0x19d   : > { %v380_v15 = vsel %vm373_vm3, %v2550_v14, 0.0 }
 0x19e   : > { %381 = vadd.xlane.f32.xlu2 %v380_v15 }
 0x1a6   : > { %368 = vmax.index.xlane.f32.xlu2 %v365_v6  ;;  %v2950_v6 = vand.u32 4294901760, %v743_v0 }
 0x211   : > { %v382_v18 = vpop.xlane.xlu2 %381 }
 0x212   : > { %2551 = vrcp.f32 %v382_v18  ;;  %v394_v22 = vand.u32 2147483648, %v382_v18  ;;  %v392_v24 = vand.u32 2147483647, %v382_v18  ;;  %vm388_vm5 = vweird.f32 %v382_v18 }
 0x214   : > { %v395_v26 = vor.u32 1.1754944e-38, %v394_v22  ;;  %vm393_vm7 = vcmp.eq.f32.partialorder %v392_v24, 8.507059e+37  ;;  %v804_v24 = vand.u32 4294901760, %v803_v12  ;;  %v721_v12 = vld [vmem:[#allocation2] sm:$0xff] }
 0x218   : > { %v2552_v19 = vpop.eup %2551 }
 0x219   : > { %v384_v20 = vmul.f32 %v2552_v19, %v382_v18  ;;  %vm389_vm4 = vweird.f32 %v2552_v19  ;;  %v369_v45 = vpop.xlane.xlu2 %368  ;;  %v809_v18 = vsub.f32 %v2939_v62, %v4048_v7 }
 0x21a   : > { %vm390_vm6 = vmor %vm388_vm5, %vm389_vm4  ;;  %vm370_vm9 = vcmp.eq.s32.totalorder %v2906_v3, %v369_v45  ;;  %v2946_v3 = vsub.f32 %v747_v49, %v2936_v60 }
 0x21b   : > { %v385_v21 = vsub.f32 1.0, %v384_v20  ;;  %v2454_v53 = vsel %vm370_vm9, 1.0, %v2759_v52  ;;  %v810_v30 = vand.u32 4294901760, %v809_v18 }
 0x21c   : > { %v4046_v13 = vand.u32 4294901760, %v2946_v3 }
 0x21d   : > { %v386_v23 = vmul.f32 %v2552_v19, %v385_v21  ;;  %v2983_v21 = vsub.f32 %v741_v4, %v2960_v11 }
 0x21f   : > { %v387_v25 = vadd.f32 %v2552_v19, %v386_v23  ;;  %v735_v23 = vld [vmem:[#allocation2 + $0x70] sm:$0xff]  ;;  %v4042_v33 = vand.u32 4294901760, %v2983_v21 }
 0x220   : > { %v2999_v32 = vand.u32 4294901760, %v735_v23 }
 0x221   : > { %v391_v27 = vsel %vm390_vm6, %v2552_v19, %v387_v25  ;;  %v4045_v19 = vand.u32 4294901760, %v2954_v8  ;;  %v815_v25 = vsub.f32 %v2946_v3, %v4046_v13 }
 0x222   : > { %v396_v28 = vsel %vm393_vm7, %v395_v26, %v391_v27  ;;  %v3017_v43 = vsub.f32 %v735_v23, %v2999_v32 }
 0x223   : > { %v397_v29 = vmul.f32 %v2550_v14, %v396_v28  ;;  %v737_v14 = vld [vmem:[#allocation2 + $0x80] sm:$0xff]  ;;  %v2994_v28 = vsub.f32 %v739_v9, %v2973_v17  ;;  %v821_v31 = vsub.f32 %v2954_v8, %v4045_v19  ;;  %v816_v36 = vand.u32 4294901760, %v815_v25  ;;  %v734_v19 = vld [vmem:[#allocation2 + $0x68] sm:$0xff] }
 0x224   : > { %v2985_v22 = vand.u32 4294901760, %v737_v14 }
 0x225   : > { %410 = vperm.xlu1 %2547, %v397_v29   ;;  %402 = vperm.xlu0 %2546, %v397_v29   ;;  %v733_v29 = vld [vmem:[#allocation2 + $0x60] sm:$0xff]  ;;  %v4041_v39 = vand.u32 4294901760, %v2994_v28 }
 0x226   : > { %v3005_v34 = vsub.f32 %v737_v14, %v2985_v22  ;;  %v3008_v37 = vand.u32 4294901760, %v733_v29 }
 0x227   : > { %v839_v52 = vsub.f32 %v2994_v28, %v4041_v39 }
 0x228   : > { %v4040_v45 = vand.u32 4294901760, %v3005_v34  ;;  %v3028_v47 = vsub.f32 %v733_v29, %v3008_v37 }
 0x229   : > { %v840_v9 = vand.u32 4294901760, %v839_v52  ;;  %v752_v52 = vld [vmem:[#allocation2 + $0xf8] sm:$0xff] }
 0x22d   : > { %2548 = vset.pattern.permute.xlu0 %v2757_v16  ;;  %v2971_v16 = vsub.f32 %v743_v0, %v2950_v6  ;;  %v4037_v0 = vand.u32 4294901760, %v3028_v47 }
 0x22f   : > { %v4044_v27 = vand.u32 4294901760, %v2971_v16  ;;  %v857_v25 = vsub.f32 %v3028_v47, %v4037_v0 }
 0x231   : > { %v827_v38 = vsub.f32 %v2971_v16, %v4044_v27 }
 0x297   : > { %v411_v51 = vpop.permute.xlu1 %410  ;;  %v403_v55 = vpop.permute.xlu0 %402 }
 0x298   : > { %v413_v57 = vmul.f32 %v2454_v53, %v411_v51  ;;  %v405_v58 = vmul.f32 %v2453_v54, %v403_v55  ;;  %v828_v51 = vand.u32 4294901760, %v827_v38  ;;  %v725_v53 = vld [vmem:[#allocation2 + $0x20] sm:$0xff]  ;;  %v4039_v54 = vand.u32 4294901760, %v3017_v43 }
 0x299   : > { %v3039_v55 = vsub.f32 %v731_v35, %v3019_v44  ;;  %v3054_v4 = vand.u32 4294901760, %v725_v53 }
 0x29a   : > { %v414_v61 = vadd.f32 %v413_v57, %v405_v58  ;;  %v845_v58 = vsub.f32 %v3005_v34, %v4040_v45  ;;  %v851_v14 = vsub.f32 %v3017_v43, %v4039_v54 }
 0x29b   : > { %v4035_v18 = vand.u32 4294901760, %v3039_v55 }
 0x29c   : > { %v421_v1 = vsel %vm357_vm0, %v414_v61, 0  ;;  %v723_v61 = vld [vmem:[#allocation2 + $0x10] sm:$0xff]  ;;  %v852_v35 = vand.u32 4294901760, %v851_v14 }
 0x29d   : > { %v2948_v5 = vand.u32 4294901760, %v421_v1  ;;  %v3066_v23 = vand.u32 4294901760, %v723_v61 }
 0x29f   : > { %4085 = vst [vmem:[#allocation17_spill] sm:$0xff] %v2948_v5  ;;  %v2957_v10 = vsub.f32 %v421_v1, %v2948_v5  ;;  %476 = vmatmul.f32.vlgmr.msra.gmra.mxu1 %v2948_v5 }
 0x2a0   : > { %666 = vmatpush.msra.mxu1 %v589_v40 }
 0x2a1   : > { %4086 = vst [vmem:[#allocation18_spill] sm:$0xff] %v2957_v10  ;;  %500 = vmatmul.f32.vlgmr.msra.gmra.mxu2 %v2957_v10  ;;  %v2968_v15 = vand.u32 4294901760, %v2957_v10 }
 0x2a2   : > { %692 = vmatpush.msra.mxu2 %v617_v42  ;;  %v822_v42 = vand.u32 4294901760, %v821_v31  ;;  %v3078_v31 = vand.u32 4294901760, %v721_v12 }
 0x2a3   : > { %4087 = vst [vmem:[#allocation19_spill] sm:$0xff] %v2968_v15  ;;  %524 = vmatmul.f32.vlgmr.msra.gmra.mxu3 %v2968_v15  ;;  %v448_v20 = vsub.f32 %v2957_v10, %v2968_v15 }
 0x2a4   : > { %714 = vmatpush.msra.mxu3 %v589_v40  ;;  %v729_v40 = vld [vmem:[#allocation2 + $0x40] sm:$0xff] }
 0x2a5   : > { %v2990_v26 = vand.u32 4294901760, %v448_v20  ;;  %v3030_v49 = vand.u32 4294901760, %v729_v40  ;;  %v3064_v20 = vsub.f32 %v727_v46, %v3041_v56 }
 0x2a7   : > { %4088 = vst [vmem:[#allocation20_spill] sm:$0xff] %v2990_v26  ;;  %450 = vmatmul.f32.vlgmr.msra.gmra.mxu0 %v2990_v26  ;;  %570 = vmatmul.f32.vlgmr.msrb.gmra.mxu1 %v2948_v5  ;;  %v3052_v1 = vsub.f32 %v729_v40, %v3030_v49  ;;  %v4032_v38 = vand.u32 4294901760, %v3064_v20  ;;  %v3088_v40 = vsub.f32 %v723_v61, %v3066_v23  ;;  %v750_v61 = vld [vmem:[#allocation2 + $0xe8] sm:$0xff] }
 0x2a8   : > { %805 = vmatpush.msrb.mxu1 %v804_v24  ;;  %643 = vmatpush.msra.mxu0 %v2921_v41  ;;  %v833_v41 = vsub.f32 %v2983_v21, %v4042_v33  ;;  %v846_v24 = vand.u32 4294901760, %v845_v58 }
 0x2a9   : > { %596 = vmatmul.f32.vlgmr.msrb.gmra.mxu2 %v2990_v26  ;;  %v4034_v29 = vand.u32 4294901760, %v3052_v1  ;;  %v4036_v58 = vand.u32 4294901760, %v3088_v40  ;;  %v730_v26 = vld [vmem:[#allocation2 + $0x48] sm:$0xff] }
 0x2aa   : > { %811 = vmatpush.msrb.mxu1 %v810_v30  ;;  %903 = vmatpush.msrb.mxu2 %v2934_v59  ;;  %v834_v57 = vand.u32 4294901760, %v833_v41  ;;  %v3076_v30 = vsub.f32 %v725_v53, %v3054_v4 }
 0x2ab   : > { %622 = vmatmul.f32.vlgmr.msrb.gmra.mxu3 %v2948_v5  ;;  %v869_v41 = vsub.f32 %v3052_v1, %v4034_v29  ;;  %v744_v29 = vld [vmem:[#allocation2 + $0xb8] sm:$0xff] }
 0x2ac   : > { %817 = vmatpush.msrb.mxu1 %v816_v36  ;;  %906 = vmatpush.msrb.mxu2 %v2939_v62  ;;  %v863_v36 = vsub.f32 %v3039_v55, %v4035_v18  ;;  %v4033_v46 = vand.u32 4294901760, %v3076_v30  ;;  %v3143_v0 = vand.u32 4294901760, %v744_v29 }
 0x2ad   : > { %956 = vmatpush.msrb.mxu3 %v2926_v48 }
 0x2ae   : > { %823 = vmatpush.msrb.mxu1 %v822_v42  ;;  %909 = vmatpush.msrb.mxu2 %v2946_v3  ;;  %v858_v42 = vand.u32 4294901760, %v857_v25  ;;  %v864_v53 = vand.u32 4294901760, %v863_v36  ;;  %v881_v14 = vsub.f32 %v3076_v30, %v4033_v46  ;;  %v748_v25 = vld [vmem:[#allocation2 + $0xd8] sm:$0xff]  ;;  %v746_v36 = vld [vmem:[#allocation2 + $0xc8] sm:$0xff] }
 0x2af   : > { %958 = vmatpush.msrb.mxu3 %v2928_v50  ;;  %548 = vmatmul.f32.vlgmr.msrb.gmra.mxu0 %v2948_v5  ;;  %v3129_v46 = vand.u32 4294901760, %v748_v25 }
 0x2b0   : > { %670 = vmatmul.f32.vlgmr.msra.gmra.mxu1 %v2968_v15  ;;  %760 = vmatpush.msrb.mxu0 %v2926_v48  ;;  %v882_v18 = vand.u32 4294901760, %v881_v14  ;;  %v3220_v15 = vand.u32 4294901760, %v732_v2 }
 0x2b1   : > { %829 = vmatpush.msrb.mxu1 %v828_v51  ;;  %912 = vmatpush.msrb.mxu2 %v2954_v8  ;;  %v3098_v51 = vsub.f32 %v721_v12, %v3078_v31  ;;  %v870_v12 = vand.u32 4294901760, %v869_v41 }
 0x2b2   : > { %960 = vmatpush.msrb.mxu3 %v2936_v60  ;;  %694 = vmatmul.f32.vlgmr.msra.gmra.mxu2 %v2948_v5 }
 0x2b3   : > { %762 = vmatpush.msrb.mxu0 %v2928_v50  ;;  %835 = vmatpush.msrb.mxu1 %v834_v57  ;;  %v875_v57 = vsub.f32 %v3064_v20, %v4032_v38 }
 0x2b4   : > { %915 = vmatpush.msrb.mxu2 %v2971_v16  ;;  %962 = vmatpush.msrb.mxu3 %v2941_v63 }
 0x2b5   : > { %716 = vmatmul.f32.vlgmr.msra.gmra.mxu3 %v2948_v5  ;;  %764 = vmatpush.msrb.mxu0 %v2936_v60  ;;  %v876_v38 = vand.u32 4294901760, %v875_v57  ;;  %v3135_v57 = vand.u32 4294901760, %v746_v36 }
 0x2b6   : > { %841 = vmatpush.msrb.mxu1 %v840_v9  ;;  %918 = vmatpush.msrb.mxu2 %v2983_v21  ;;  %v3109_v9 = vand.u32 4294901760, %v752_v52 }
 0x2b7   : > { %964 = vmatpush.msrb.mxu3 %v2950_v6  ;;  %766 = vmatpush.msrb.mxu0 %v2941_v63  ;;  %v3153_v54 = vsub.f32 %v746_v36, %v3135_v57 }
 0x2b8   : > { %847 = vmatpush.msrb.mxu1 %v846_v24  ;;  %921 = vmatpush.msrb.mxu2 %v2994_v28  ;;  %v4038_v24 = vand.u32 4294901760, %v3098_v51  ;;  %v3127_v41 = vsub.f32 %v752_v52, %v3109_v9 }
 0x2b9   : > { %966 = vmatpush.msrb.mxu3 %v2960_v11  ;;  %646 = vmatmul.f32.vlgmr.msra.gmra.mxu0 %v2957_v10  ;;  %v3237_v10 = vand.u32 4294901760, %v730_v26 }
 0x2ba   : > { %768 = vmatpush.msrb.mxu0 %v2950_v6  ;;  %853 = vmatpush.msrb.mxu1 %v852_v35  ;;  %v3118_v35 = vand.u32 4294901760, %v750_v61  ;;  %v4043_v14 = vand.u32 4294901760, %v3127_v41 }
 0x2bb   : > { %924 = vmatpush.msrb.mxu2 %v3005_v34  ;;  %968 = vmatpush.msrb.mxu3 %v2973_v17 }
 0x2bc   : > { %770 = vmatpush.msrb.mxu0 %v2960_v11  ;;  %859 = vmatpush.msrb.mxu1 %v858_v42  ;;  %v887_v42 = vsub.f32 %v3088_v40, %v4036_v58  ;;  %v3140_v52 = vsub.f32 %v750_v61, %v3118_v35  ;;  %v1144_v36 = vsub.f32 %v3127_v41, %v4043_v14 }
 0x2bd   : > { %927 = vmatpush.msrb.mxu2 %v3017_v43  ;;  %970 = vmatpush.msrb.mxu3 %v2985_v22 }
 0x2be   : > { %772 = vmatpush.msrb.mxu0 %v2973_v17  ;;  %865 = vmatpush.msrb.mxu1 %v864_v53  ;;  %v893_v53 = vsub.f32 %v3098_v51, %v4038_v24  ;;  %v888_v58 = vand.u32 4294901760, %v887_v42  ;;  %v3149_v24 = vsub.f32 %v748_v25, %v3129_v46  ;;  %v4047_v42 = vand.u32 4294901760, %v3140_v52 }
 0x2bf   : > { %930 = vmatpush.msrb.mxu2 %v3028_v47  ;;  %972 = vmatpush.msrb.mxu3 %v2999_v32  ;;  %v3162_v25 = vsub.f32 %v744_v29, %v3143_v0  ;;  %v736_v29 = vld [vmem:[#allocation2 + $0x78] sm:$0xff]  ;;  %v1145_v13 = vand.u32 4294901760, %v1144_v36 }
 0x2c0   : > { %774 = vmatpush.msrb.mxu0 %v2985_v22  ;;  %871 = vmatpush.msrb.mxu1 %v870_v12  ;;  %v742_v12 = vld [vmem:[#allocation2 + $0xa8] sm:$0xff]  ;;  %v894_v61 = vand.u32 4294901760, %v893_v53  ;;  %v4050_v53 = vand.u32 4294901760, %v3149_v24  ;;  %v1150_v33 = vsub.f32 %v3140_v52, %v4047_v42  ;;  %v3195_v7 = vand.u32 4294901760, %v736_v29 }
 0x2c1   : > { %933 = vmatpush.msrb.mxu2 %v3039_v55  ;;  %974 = vmatpush.msrb.mxu3 %v3008_v37  ;;  %v3158_v45 = vand.u32 4294901760, %v742_v12 }
 0x2c2   : > { %776 = vmatpush.msrb.mxu0 %v2999_v32  ;;  %877 = vmatpush.msrb.mxu1 %v876_v38  ;;  %v740_v38 = vld [vmem:[#allocation2 + $0x98] sm:$0xff]  ;;  %v1156_v42 = vsub.f32 %v3149_v24, %v4050_v53  ;;  %v1151_v36 = vand.u32 4294901760, %v1150_v33 }
 0x2c3   : > { %936 = vmatpush.msrb.mxu2 %v3052_v1  ;;  %976 = vmatpush.msrb.mxu3 %v3019_v44  ;;  %v3170_v39 = vand.u32 4294901760, %v740_v38  ;;  %v3180_v14 = vsub.f32 %v742_v12, %v3158_v45 }
 0x2c4   : > { %778 = vmatpush.msrb.mxu0 %v3008_v37  ;;  %883 = vmatpush.msrb.mxu1 %v882_v18  ;;  %v738_v18 = vld [vmem:[#allocation2 + $0x88] sm:$0xff]  ;;  %v1157_v33 = vand.u32 4294901760, %v1156_v42 }
 0x2c5   : > { %939 = vmatpush.msrb.mxu2 %v3064_v20  ;;  %978 = vmatpush.msrb.mxu3 %v3030_v49  ;;  %4089 = vst [vmem:[#allocation21_spill] sm:$0xff] %v3180_v14  ;;  %v3182_v27 = vand.u32 4294901760, %v738_v18  ;;  %v3193_v12 = vsub.f32 %v740_v38, %v3170_v39  ;;  %v4091_v42 = vand.u32 4294901760, %v3180_v14 }
 0x2c6   : > { %780 = vmatpush.msrb.mxu0 %v3019_v44  ;;  %889 = vmatpush.msrb.mxu1 %v888_v58  ;;  %v4051_v58 = vand.u32 4294901760, %v3153_v54 }
 0x2c7   : > { %942 = vmatpush.msrb.mxu2 %v3076_v30  ;;  %980 = vmatpush.msrb.mxu3 %v3041_v56  ;;  %v3206_v53 = vsub.f32 %v738_v18, %v3182_v27  ;;  %v3218_v18 = vsub.f32 %v736_v29, %v3195_v7  ;;  %v1174_v29 = vsub.f32 %v3180_v14, %v4091_v42  ;;  %v4093_v5 = vand.u32 4294901760, %v3193_v12 }
 0x2c8   : > { %782 = vmatpush.msrb.mxu0 %v3030_v49  ;;  %895 = vmatpush.msrb.mxu1 %v894_v61  ;;  %v3208_v61 = vand.u32 4294901760, %v734_v19 }
 0x2c9   : > { %945 = vmatpush.msrb.mxu2 %v3088_v40  ;;  %982 = vmatpush.msrb.mxu3 %v3054_v4  ;;  %v1180_v42 = vsub.f32 %v3193_v12, %v4093_v5 }
 0x2ca   : > { %1064 = vmatpush.msra.mxu1 %v2926_v48  ;;  %784 = vmatpush.msrb.mxu0 %v3041_v56  ;;  %v1162_v48 = vsub.f32 %v3153_v54, %v4051_v58  ;;  %v3235_v38 = vsub.f32 %v734_v19, %v3208_v61  ;;  %v3248_v19 = vsub.f32 %v732_v2, %v3220_v15 }
 0x2cb   : > { %948 = vmatpush.msrb.mxu2 %v3098_v51  ;;  %984 = vmatpush.msrb.mxu3 %v3066_v23  ;;  %v3261_v2 = vsub.f32 %v730_v26, %v3237_v10 }
 0x2cc   : > { %1066 = vmatpush.msra.mxu1 %v2928_v50  ;;  %786 = vmatpush.msrb.mxu0 %v3054_v4  ;;  %v4090_v50 = vand.u32 4294901760, %v3162_v25 }
 0x2cd   : > { %1101 = vmatpush.msra.mxu2 %v3109_v9  ;;  %986 = vmatpush.msrb.mxu3 %v3078_v31 }
 0x2ce   : > { %1068 = vmatpush.msra.mxu1 %v2936_v60  ;;  %v1168_v58 = vsub.f32 %v3162_v25, %v4090_v50  ;;  %788 = vmatpush.msrb.mxu0 %v3066_v23  ;;  %v1163_v60 = vand.u32 4294901760, %v1162_v48 }
 0x2cf   : > { %1103 = vmatpush.msra.mxu2 %v3118_v35  ;;  %1146 = vmatpush.msra.mxu3 %v1145_v13  ;;  %v728_v13 = vld [vmem:[#allocation2 + $0x38] sm:$0xff] }
 0x2d0   : > { %1070 = vmatpush.msra.mxu1 %v2941_v63  ;;  %790 = vmatpush.msrb.mxu0 %v3078_v31  ;;  %v4092_v63 = vand.u32 4294901760, %v2934_v59  ;;  %v1169_v48 = vand.u32 4294901760, %v1168_v58  ;;  %v3250_v14 = vand.u32 4294901760, %v728_v13  ;;  %v726_v59 = vld [vmem:[#allocation2 + $0x28] sm:$0xff]  ;;  %v4095_v58 = vand.u32 4294901760, %v3206_v53 }
 0x2d1   : > { %1105 = vmatpush.msra.mxu2 %v3129_v46  ;;  %1152 = vmatpush.msra.mxu3 %v1151_v36  ;;  %v720_v36 = vld [vmem:[%s353_s9] sm:$0xff] }
 0x2d2   : > { %997 = vmatpush.msra.mxu0 %v4092_v63  ;;  %1072 = vmatpush.msra.mxu1 %v2950_v6  ;;  %v4094_v63 = vand.u32 4294901760, %v2939_v62  ;;  %v1175_v6 = vand.u32 4294901760, %v1174_v29  ;;  %v1186_v5 = vsub.f32 %v3206_v53, %v4095_v58  ;;  %v3263_v50 = vand.u32 4294901760, %v720_v36 }
 0x2d3   : > { %1107 = vmatpush.msra.mxu2 %v3135_v57  ;;  %1158 = vmatpush.msra.mxu3 %v1157_v33  ;;  %v4096_v62 = vand.u32 4294901760, %v2946_v3  ;;  %v1181_v29 = vand.u32 4294901760, %v1180_v42  ;;  %v3276_v33 = vsub.f32 %v728_v13, %v3250_v14  ;;  %v4098_v3 = vand.u32 4294901760, %v2954_v8 }
 0x2d4   : > { %1001 = vmatpush.msra.mxu0 %v4094_v63  ;;  %1074 = vmatpush.msra.mxu1 %v2960_v11  ;;  %v3268_v11 = vand.u32 4294901760, %v726_v59  ;;  %v4097_v63 = vand.u32 4294901760, %v3218_v18  ;;  %v4099_v42 = vand.u32 4294901760, %v3235_v38  ;;  %v3289_v13 = vsub.f32 %v720_v36, %v3263_v50 }
 0x2d5   : > { %1109 = vmatpush.msra.mxu2 %v3143_v0  ;;  %1164 = vmatpush.msra.mxu3 %v1163_v60  ;;  %v724_v60 = vld [vmem:[#allocation2 + $0x18] sm:$0xff]  ;;  %v4100_v8 = vand.u32 4294901760, %v2971_v16  ;;  %v4102_v16 = vand.u32 4294901760, %v2983_v21 }
 0x2d6   : > { %1005 = vmatpush.msra.mxu0 %v4096_v62  ;;  %1076 = vmatpush.msra.mxu1 %v2973_v17  ;;  %v1192_v58 = vsub.f32 %v3218_v18, %v4097_v63  ;;  %v722_v17 = vld [vmem:[#allocation2 + $0x8] sm:$0xff]  ;;  %v1198_v62 = vsub.f32 %v3235_v38, %v4099_v42  ;;  %v1209_v63 = vand.u32 4294901760, %v3261_v2  ;;  %v3286_v26 = vand.u32 4294901760, %v724_v60 }
 0x2d7   : > { %1111 = vmatpush.msra.mxu2 %v3158_v45  ;;  %1170 = vmatpush.msra.mxu3 %v1169_v48  ;;  %v1187_v48 = vand.u32 4294901760, %v1186_v5  ;;  %v4101_v5 = vand.u32 4294901760, %v3248_v19  ;;  %v1215_v42 = vand.u32 4294901760, %v3276_v33  ;;  %v3302_v36 = vand.u32 4294901760, %v722_v17 }
 0x2d8   : > { %1009 = vmatpush.msra.mxu0 %v4098_v3  ;;  %1078 = vmatpush.msra.mxu1 %v2985_v22  ;;  %v3295_v22 = vsub.f32 %v726_v59, %v3268_v11  ;;  %v1210_v59 = vsub.f32 %v3261_v2, %v1209_v63 }
 0x2d9   : > { %1113 = vmatpush.msra.mxu2 %v3170_v39  ;;  %1176 = vmatpush.msra.mxu3 %v1175_v6  ;;  %v1193_v6 = vand.u32 4294901760, %v1192_v58  ;;  %v1204_v3 = vsub.f32 %v3248_v19, %v4101_v5  ;;  %v4103_v58 = vand.u32 4294901760, %v2994_v28  ;;  %v4104_v28 = vand.u32 4294901760, %v3005_v34 }
 0x2da   : > { %1013 = vmatpush.msra.mxu0 %v4100_v8  ;;  %1080 = vmatpush.msra.mxu1 %v2999_v32  ;;  %v1199_v32 = vand.u32 4294901760, %v1198_v62  ;;  %v1221_v21 = vand.u32 4294901760, %v3295_v22  ;;  %v1216_v62 = vsub.f32 %v3276_v33, %v1215_v42 }
 0x2db   : > { %1115 = vmatpush.msra.mxu2 %v3182_v27  ;;  %1182 = vmatpush.msra.mxu3 %v1181_v29  ;;  %v3312_v29 = vsub.f32 %v724_v60, %v3286_v26  ;;  %v3326_v60 = vsub.f32 %v722_v17, %v3302_v36 }
 0x2dc   : > { %1017 = vmatpush.msra.mxu0 %v4102_v16  ;;  %1082 = vmatpush.msra.mxu1 %v3008_v37  ;;  %v3319_v37 = vand.u32 4294901760, %v3289_v13  ;;  %v1222_v17 = vsub.f32 %v3295_v22, %v1221_v21 }
 0x2dd   : > { %1117 = vmatpush.msra.mxu2 %v3195_v7  ;;  %1188 = vmatpush.msra.mxu3 %v1187_v48  ;;  %v1205_v48 = vand.u32 4294901760, %v1204_v3  ;;  %v1227_v8 = vand.u32 4294901760, %v3312_v29  ;;  %v1233_v5 = vand.u32 4294901760, %v3326_v60  ;;  %v4106_v3 = vand.u32 4294901760, %v3028_v47 }
 0x2de   : > { %1021 = vmatpush.msra.mxu0 %v4103_v58  ;;  %1084 = vmatpush.msra.mxu1 %v3019_v44  ;;  %v1211_v44 = vand.u32 4294901760, %v1210_v59  ;;  %v794_v34 = vsub.f32 %v3289_v13, %v3319_v37  ;;  %v1223_v16 = vand.u32 4294901760, %v1222_v17  ;;  %v4109_v59 = vand.u32 4294901760, %v3064_v20 }
 0x2df   : > { %1119 = vmatpush.msra.mxu2 %v3208_v61  ;;  %1194 = vmatpush.msra.mxu3 %v1193_v6  ;;  %v4105_v6 = vand.u32 4294901760, %v3017_v43  ;;  %v1228_v43 = vsub.f32 %v3312_v29, %v1227_v8  ;;  %v1234_v47 = vsub.f32 %v3326_v60, %v1233_v5  ;;  %v4112_v58 = vand.u32 4294901760, %v3140_v52 }
 0x2e0   : > { %1025 = vmatpush.msra.mxu0 %v4104_v28  ;;  %1086 = vmatpush.msra.mxu1 %v3030_v49  ;;  %v1217_v49 = vand.u32 4294901760, %v1216_v62  ;;  %v4113_v20 = vand.u32 4294901760, %v3088_v40  ;;  %v1477_v40 = vld [vmem:[#allocation8] sm:$0xf] }
 0x2e1   : > { %1121 = vmatpush.msra.mxu2 %v3220_v15  ;;  %1200 = vmatpush.msra.mxu3 %v1199_v32  ;;  %v3353_v32 = vand.u32 4294901760, %v794_v34 }
 0x2e2   : > { %1029 = vmatpush.msra.mxu0 %v4105_v6  ;;  %1088 = vmatpush.msra.mxu1 %v3041_v56  ;;  %v4107_v56 = vand.u32 4294901760, %v3039_v55  ;;  %v1229_v55 = vand.u32 4294901760, %v1228_v43 }
 0x2e3   : > { %1123 = vmatpush.msra.mxu2 %v3237_v10  ;;  %1206 = vmatpush.msra.mxu3 %v1205_v48  ;;  %v4114_v48 = vand.u32 4294901760, %v3149_v24 }
 0x2e4   : > { %1033 = vmatpush.msra.mxu0 %v4106_v3  ;;  %1090 = vmatpush.msra.mxu1 %v3054_v4  ;;  %v4108_v4 = vand.u32 4294901760, %v3052_v1  ;;  %v4110_v1 = vand.u32 4294901760, %v3127_v41 }
 0x2e5   : > { %1125 = vmatpush.msra.mxu2 %v3250_v14  ;;  %1212 = vmatpush.msra.mxu3 %v1211_v44 }
 0x2e6   : > { %1037 = vmatpush.msra.mxu0 %v4107_v56  ;;  %1092 = vmatpush.msra.mxu1 %v3066_v23  ;;  %v1235_v23 = vand.u32 4294901760, %v1234_v47  ;;  %v1452_v47 = vld [vmem:[#allocation7 + $0x38] sm:$0xff] }
 0x2e7   : > { %1127 = vmatpush.msra.mxu2 %v3268_v11  ;;  %1218 = vmatpush.msra.mxu3 %v1217_v49 }
 0x2e8   : > { %951 = vmatmul.f32.vlgmr.msrb.gmra.mxu2 %v3289_v13  ;;  %1041 = vmatpush.msra.mxu0 %v4108_v4  ;;  %v1451_v4 = vld [vmem:[#allocation7 + $0x30] sm:$0xff] }
 0x2e9   : > { %1094 = vmatpush.msra.mxu1 %v3078_v31  ;;  %1129 = vmatpush.msra.mxu2 %v3286_v26  ;;  %v4111_v31 = vand.u32 4294901760, %v3076_v30  ;;  %v4115_v30 = vand.u32 4294901760, %v3098_v51  ;;  %v4117_v51 = vand.u32 4294901760, %v3162_v25 }
 0x2ea   : > { %1224 = vmatpush.msra.mxu3 %v1223_v16  ;;  %796 = vmatmul.f32.vlgmr.msrb.gmra.mxu0 %v3353_v32 }
 0x2eb   : > { %897 = vmatmul.f32.vlgmr.msrb.gmra.mxu1 %v3263_v50  ;;  %990 = vmatmul.f32.vlgmr.msrb.gmra.mxu3 %v3319_v37 }
 0x2ec   : > { %1297 = vmatpush.msrb.mxu1 %v3109_v9  ;;  %1045 = vmatpush.msra.mxu0 %v4109_v59 }
 0x2ed   : > { %1131 = vmatpush.msra.mxu2 %v3302_v36  ;;  %1230 = vmatpush.msra.mxu3 %v1229_v55 }
 0x2ee   : > { %1299 = vmatpush.msrb.mxu1 %v3118_v35  ;;  %1049 = vmatpush.msra.mxu0 %v4111_v31 }
 0x2ef   : > { %1338 = vmatpush.msrb.mxu2 %v4110_v1  ;;  %1236 = vmatpush.msra.mxu3 %v1235_v23  ;;  %v1450_v1 = vld [vmem:[#allocation7 + $0x28] sm:$0xff] }
 0x2f0   : > { %1301 = vmatpush.msrb.mxu1 %v3129_v46  ;;  %1053 = vmatpush.msra.mxu0 %v4113_v20 }
 0x2f1   : > { %1342 = vmatpush.msrb.mxu2 %v4112_v58  ;;  %1405 = vmatpush.msrb.mxu3 %v3109_v9  ;;  %v4116_v9 = vand.u32 4294901760, %v3153_v54  ;;  %v1449_v58 = vld [vmem:[#allocation7 + $0x20] sm:$0xff] }
 0x2f2   : > { %1303 = vmatpush.msrb.mxu1 %v3135_v57  ;;  %1057 = vmatpush.msra.mxu0 %v4115_v30  ;;  %v3544_v30 = vand.u32 4294901760, %v1452_v47 }
 0x2f3   : > { %1346 = vmatpush.msrb.mxu2 %v4114_v48  ;;  %1407 = vmatpush.msrb.mxu3 %v3118_v35  ;;  %v1479_v35 = vsel %vm423_vm8, %v1477_v40, 0 }
 0x2f4   : > { %1059 = vmatmul.f32.vlgmr.msra.gmra.mxu0 %v3263_v50  ;;  %1305 = vmatpush.msrb.mxu1 %v3143_v0 }
 0x2f5   : > { %1244 = vmatpush.msrb.mxu0 %v3127_v41  ;;  %1350 = vmatpush.msrb.mxu2 %v4116_v9  ;;  %v4118_v41 = vld [vmem:[#allocation21_spill] sm:$0xff]  ;;  %v3546_v9 = vand.u32 4294901760, %v1451_v4 }
 0x2f6   : > { %1409 = vmatpush.msrb.mxu3 %v3129_v46  ;;  %1096 = vmatmul.f32.vlgmr.msra.gmra.mxu1 %v3263_v50  ;;  %v4119_v46 = vand.u32 4294901760, %v4118_v41 }
 0x2f7   : > { %1247 = vmatpush.msrb.mxu0 %v3140_v52  ;;  %1307 = vmatpush.msrb.mxu1 %v3158_v45  ;;  %v4120_v52 = vand.u32 4294901760, %v3193_v12 }
 0x2f8   : > { %1354 = vmatpush.msrb.mxu2 %v4117_v51  ;;  %1411 = vmatpush.msrb.mxu3 %v3135_v57  ;;  %v1496_v57 = vand.u32 4294901760, %v1479_v35 }
 0x2f9   : > { %1250 = vmatpush.msrb.mxu0 %v3149_v24  ;;  %1309 = vmatpush.msrb.mxu1 %v3170_v39  ;;  %v4121_v24 = vand.u32 4294901760, %v3206_v53 }
 0x2fa   : > { %1358 = vmatpush.msrb.mxu2 %v4119_v46  ;;  %1413 = vmatpush.msrb.mxu3 %v3143_v0  ;;  %v4123_v0 = vand.u32 4294901760, %v3235_v38 }
 0x2fb   : > { %1253 = vmatpush.msrb.mxu0 %v3153_v54  ;;  %1311 = vmatpush.msrb.mxu1 %v3182_v27  ;;  %v4122_v54 = vand.u32 4294901760, %v3218_v18 }
 0x2fc   : > { %1362 = vmatpush.msrb.mxu2 %v4120_v52  ;;  %1415 = vmatpush.msrb.mxu3 %v3158_v45  ;;  %v1523_v45 = vsub.f32 %v1479_v35, %v1496_v57  ;;  %v3554_v35 = vand.u32 4294901760, %v1450_v1  ;;  %v3558_v52 = vsub.f32 %v1452_v47, %v3544_v30 }
 0x2fd   : > { %1256 = vmatpush.msrb.mxu0 %v3162_v25  ;;  %1313 = vmatpush.msrb.mxu1 %v3195_v7  ;;  %v4127_v25 = vld [vmem:[#allocation19_spill] sm:$0xff] }
 0x2fe   : > { %1366 = vmatpush.msrb.mxu2 %v4121_v24  ;;  %1417 = vmatpush.msrb.mxu3 %v3170_v39  ;;  %v4124_v39 = vand.u32 4294901760, %v3248_v19  ;;  %v3563_v24 = vand.u32 4294901760, %v1449_v58 }
 0x2ff   : > { %1259 = vmatpush.msrb.mxu0 %v4118_v41  ;;  %1315 = vmatpush.msrb.mxu1 %v3208_v61  ;;  %v1448_v41 = vld [vmem:[#allocation7 + $0x18] sm:$0xff] }
 0x300   : > { %1370 = vmatpush.msrb.mxu2 %v4122_v54  ;;  %1419 = vmatpush.msrb.mxu3 %v3182_v27  ;;  %v1524_v27 = vand.u32 4294901760, %v1523_v45 }
 0x301   : > { %1262 = vmatpush.msrb.mxu0 %v3193_v12  ;;  %1317 = vmatpush.msrb.mxu1 %v3220_v15  ;;  %v1459_v12 = vld [vmem:[#allocation7 + $0x70] sm:$0xff] }
 0x302   : > { %1374 = vmatpush.msrb.mxu2 %v4123_v0  ;;  %1421 = vmatpush.msrb.mxu3 %v3195_v7  ;;  %v1525_v7 = vsub.f32 %v1523_v45, %v1524_v27 }
 0x303   : > { %1265 = vmatpush.msrb.mxu0 %v3206_v53  ;;  %1319 = vmatpush.msrb.mxu1 %v3237_v10  ;;  %v4128_v53 = vld [vmem:[#allocation20_spill] sm:$0xff] }
 0x304   : > { %1378 = vmatpush.msrb.mxu2 %v4124_v39  ;;  %1423 = vmatpush.msrb.mxu3 %v3208_v61  ;;  %v1460_v61 = vld [vmem:[#allocation7 + $0x78] sm:$0xff]  ;;  %v1718_v39 = vand.u32 4294901760, %v3558_v52 }
 0x305   : > { %1268 = vmatpush.msrb.mxu0 %v3218_v18  ;;  %1321 = vmatpush.msrb.mxu1 %v3250_v14  ;;  %v3470_v18 = vand.u32 4294901760, %v1460_v61 }
 0x306   : > { %1382 = vmatpush.msrb.mxu2 %v1209_v63  ;;  %1425 = vmatpush.msrb.mxu3 %v3220_v15  ;;  %v4125_v15 = vld [vmem:[#allocation17_spill] sm:$0xff] }
 0x307   : > { %1137 = vmatmul.f32.vlgmr.msra.gmra.mxu2 %v3353_v32  ;;  %1271 = vmatpush.msrb.mxu0 %v3235_v38  ;;  %v1458_v38 = vld [vmem:[#allocation7 + $0x68] sm:$0xff] }
 0x308   : > { %1323 = vmatpush.msrb.mxu1 %v3268_v11  ;;  %1386 = vmatpush.msrb.mxu2 %v1215_v42  ;;  %v1453_v42 = vld [vmem:[#allocation7 + $0x40] sm:$0xff] }
 0x309   : > { %1427 = vmatpush.msrb.mxu3 %v3237_v10  ;;  %1274 = vmatpush.msrb.mxu0 %v3248_v19  ;;  %v1526_v10 = vand.u32 4294901760, %v1525_v7  ;;  %v3474_v19 = vand.u32 4294901760, %v1458_v38  ;;  %v3504_v44 = vand.u32 4294901760, %v1453_v42  ;;  %v3575_v7 = vand.u32 4294901760, %v1448_v41 }
 0x30a   : > { %1238 = vmatmul.f32.vlgmr.msra.gmra.mxu3 %v3263_v50  ;;  %1325 = vmatpush.msrb.mxu1 %v3286_v26 }
 0x30b   : > { %1390 = vmatpush.msrb.mxu2 %v1221_v21  ;;  %1429 = vmatpush.msrb.mxu3 %v3250_v14  ;;  %v4126_v14 = vld [vmem:[#allocation18_spill] sm:$0xff]  ;;  %v3490_v21 = vsub.f32 %v1458_v38, %v3474_v19  ;;  %v3531_v32 = vsub.f32 %v1453_v42, %v3504_v44 }
 0x30c   : > { %1277 = vmatpush.msrb.mxu0 %v3261_v2  ;;  %1327 = vmatpush.msrb.mxu1 %v3302_v36  ;;  %v1456_v2 = vld [vmem:[#allocation7 + $0x58] sm:$0xff]  ;;  %v1445_v38 = vld [vmem:[#allocation7] sm:$0xff] }
 0x30d   : > { %1394 = vmatpush.msrb.mxu2 %v1227_v8  ;;  %1431 = vmatpush.msrb.mxu3 %v3268_v11  ;;  %v1455_v11 = vld [vmem:[#allocation7 + $0x50] sm:$0xff]  ;;  %v3478_v63 = vand.u32 4294901760, %v1456_v2  ;;  %v1682_v17 = vand.u32 4294901760, %v3490_v21  ;;  %v1712_v51 = vand.u32 4294901760, %v3531_v32  ;;  %v3610_v47 = vand.u32 4294901760, %v1445_v38 }
 0x30e   : > { %1331 = vmatmul.f32.vlgmr.msrb.gmra.mxu1 %v3319_v37  ;;  %1280 = vmatpush.msrb.mxu0 %v3276_v33  ;;  %v1457_v33 = vld [vmem:[#allocation7 + $0x60] sm:$0xff] }
 0x30f   : > { %1398 = vmatpush.msrb.mxu2 %v1233_v5  ;;  %1433 = vmatpush.msrb.mxu3 %v3286_v26  ;;  %v3476_v26 = vand.u32 4294901760, %v1457_v33  ;;  %v1683_v43 = vsub.f32 %v3490_v21, %v1682_v17 }
 0x310   : > { %1400 = vmatmul.f32.vlgmr.msrb.gmra.mxu2 %v3263_v50  ;;  %1283 = vmatpush.msrb.mxu0 %v3295_v22  ;;  %v1454_v22 = vld [vmem:[#allocation7 + $0x48] sm:$0xff] }
 0x311   : > { %1435 = vmatpush.msrb.mxu3 %v3302_v36  ;;  %1527 = vmatpush.msra.mxu1 %v1526_v10  ;;  %v3484_v36 = vsub.f32 %v1460_v61, %v3470_v18  ;;  %v3493_v37 = vand.u32 4294901760, %v1454_v22  ;;  %v3496_v62 = vsub.f32 %v1457_v33, %v3476_v26  ;;  %v1684_v20 = vand.u32 4294901760, %v1683_v43 }
 0x312   : > { %1437 = vmatmul.f32.vlgmr.msrb.gmra.mxu3 %v3263_v50  ;;  %1286 = vmatpush.msrb.mxu0 %v3312_v29  ;;  %v3472_v50 = vand.u32 4294901760, %v1459_v12  ;;  %v1713_v10 = vsub.f32 %v3531_v32, %v1712_v51  ;;  %v1719_v33 = vsub.f32 %v3558_v52, %v1718_v39 }
 0x313   : > { %1550 = vmatpush.msra.mxu2 %v1523_v45  ;;  %1573 = vmatpush.msra.mxu3 %v1496_v57  ;;  %v1670_v8 = vand.u32 4294901760, %v3484_v36  ;;  %v1688_v34 = vand.u32 4294901760, %v3496_v62  ;;  %v3513_v49 = vsub.f32 %v1454_v22, %v3493_v37  ;;  %v1447_v45 = vld [vmem:[#allocation7 + $0x10] sm:$0xff] }
 0x314   : > { %1289 = vmatpush.msrb.mxu0 %v3326_v60  ;;  %1621 = vmatpush.msrb.mxu1 %v1496_v57  ;;  %v3487_v29 = vsub.f32 %v1459_v12, %v3472_v50  ;;  %v3499_v60 = vsub.f32 %v1456_v2, %v3478_v63  ;;  %v3587_v61 = vand.u32 4294901760, %v1447_v45  ;;  %v1714_v42 = vand.u32 4294901760, %v1713_v10 }
 0x315   : > { %1292 = vmatmul.f32.vlgmr.msrb.gmra.mxu0 %v3289_v13  ;;  %v3480_v13 = vand.u32 4294901760, %v1455_v11  ;;  %1628 = vmatpush.msrb.mxu2 %v3470_v18  ;;  %v1671_v5 = vsub.f32 %v3484_v36, %v1670_v8  ;;  %v1689_v59 = vsub.f32 %v3496_v62, %v1688_v34  ;;  %v1706_v31 = vand.u32 4294901760, %v3513_v49 }
 0x316   : > { %1529 = vmatmul.f32.vlgmr.msra.gmra.mxu1 %v4125_v15  ;;  %1497 = vmatpush.msra.mxu0 %v1496_v57  ;;  %v1676_v6 = vand.u32 4294901760, %v3487_v29  ;;  %v1694_v56 = vand.u32 4294901760, %v3499_v60  ;;  %v3561_v57 = vsub.f32 %v1451_v4, %v3546_v9  ;;  %v3608_v43 = vsub.f32 %v1447_v45, %v3587_v61 }
 0x317   : > { %1824 = vmatpush.msra.mxu1 %v3470_v18  ;;  %v3502_v28 = vsub.f32 %v1455_v11, %v3480_v13  ;;  %1630 = vmatpush.msrb.mxu2 %v3472_v50  ;;  %v1672_v55 = vand.u32 4294901760, %v1671_v5  ;;  %v1690_v46 = vand.u32 4294901760, %v1689_v59  ;;  %v1707_v54 = vsub.f32 %v3513_v49, %v1706_v31 }
 0x318   : > { %1599 = vmatpush.msrb.mxu0 %v1524_v27  ;;  %1553 = vmatmul.f32.vlgmr.msra.gmra.mxu2 %v4126_v14  ;;  %v1677_v3 = vsub.f32 %v3487_v29, %v1676_v6  ;;  %v1695_v48 = vsub.f32 %v3499_v60, %v1694_v56  ;;  %v3573_v27 = vsub.f32 %v1450_v1, %v3554_v35  ;;  %v1720_v4 = vand.u32 4294901760, %v1719_v33  ;;  %v1476_v33 = vld [vmem:[#allocation7 + $0xf8] sm:$0xff] }
 0x319   : > { %1826 = vmatpush.msra.mxu1 %v3472_v50  ;;  %1632 = vmatpush.msrb.mxu2 %v3474_v19  ;;  %v1700_v16 = vand.u32 4294901760, %v3502_v28  ;;  %v1708_v12 = vand.u32 4294901760, %v1707_v54  ;;  %v3596_v11 = vsub.f32 %v1448_v41, %v3575_v7 }
 0x31a   : > { %1577 = vmatmul.f32.vlgmr.msra.gmra.mxu3 %v4127_v25  ;;  %v1678_v23 = vand.u32 4294901760, %v1677_v3  ;;  %v1696_v0 = vand.u32 4294901760, %v1695_v48  ;;  %v1724_v25 = vand.u32 4294901760, %v3561_v57  ;;  %v1730_v2 = vand.u32 4294901760, %v3573_v27 }
 0x31b   : > { %1828 = vmatpush.msra.mxu1 %v3474_v19  ;;  %1634 = vmatpush.msrb.mxu2 %v3476_v26  ;;  %v1701_v40 = vsub.f32 %v3502_v28, %v1700_v16  ;;  %v3630_v48 = vsub.f32 %v1445_v38, %v3610_v47 }
 0x31c   : > { %1673 = vmatpush.msrb.mxu3 %v1672_v55  ;;  %v1725_v5 = vsub.f32 %v3561_v57, %v1724_v25  ;;  %v1731_v55 = vsub.f32 %v3573_v27, %v1730_v2 }
 0x31d   : > { %1503 = vmatmul.f32.vlgmr.msra.gmra.mxu0 %v4128_v53  ;;  %1830 = vmatpush.msra.mxu1 %v3476_v26  ;;  %v1702_v14 = vand.u32 4294901760, %v1701_v40  ;;  %v3585_v53 = vsub.f32 %v1449_v58, %v3563_v24 }
 0x31e   : > { %1623 = vmatmul.f32.vlgmr.msrb.gmra.mxu1 %v4125_v15  ;;  %1771 = vmatpush.msra.mxu0 %v3484_v36  ;;  %v1726_v1 = vand.u32 4294901760, %v1725_v5  ;;  %v1732_v40 = vand.u32 4294901760, %v1731_v55  ;;  %v3664_v5 = vand.u32 4294901760, %v1476_v33  ;;  %v1475_v36 = vld [vmem:[#allocation7 + $0xf0] sm:$0xff] }
 0x31f   : > { %1636 = vmatpush.msrb.mxu2 %v3478_v63  ;;  %1832 = vmatpush.msra.mxu1 %v3478_v63  ;;  %v1736_v3 = vand.u32 4294901760, %v3585_v53 }
 0x320   : > { %1774 = vmatpush.msra.mxu0 %v3487_v29  ;;  %1679 = vmatpush.msrb.mxu3 %v1678_v23  ;;  %v1742_v23 = vand.u32 4294901760, %v3596_v11  ;;  %v1474_v29 = vld [vmem:[#allocation7 + $0xe8] sm:$0xff] }
 0x321   : > { %1638 = vmatpush.msrb.mxu2 %v3480_v13  ;;  %1834 = vmatpush.msra.mxu1 %v3480_v13  ;;  %v1737_v58 = vsub.f32 %v3585_v53, %v1736_v3 }
 0x322   : > { %1777 = vmatpush.msra.mxu0 %v3490_v21  ;;  %1685 = vmatpush.msrb.mxu3 %v1684_v20  ;;  %v1748_v20 = vand.u32 4294901760, %v3608_v43  ;;  %v1743_v41 = vsub.f32 %v3596_v11, %v1742_v23  ;;  %v3681_v21 = vand.u32 4294901760, %v1474_v29 }
 0x323   : > { %1640 = vmatpush.msrb.mxu2 %v3493_v37  ;;  %1836 = vmatpush.msra.mxu1 %v3493_v37  ;;  %v1738_v54 = vand.u32 4294901760, %v1737_v58 }
 0x324   : > { %1780 = vmatpush.msra.mxu0 %v3496_v62  ;;  %1691 = vmatpush.msrb.mxu3 %v1690_v46  ;;  %v1749_v45 = vsub.f32 %v3608_v43, %v1748_v20  ;;  %v1744_v10 = vand.u32 4294901760, %v1743_v41 }
 0x325   : > { %1601 = vmatmul.f32.vlgmr.msrb.gmra.mxu0 %v4125_v15  ;;  %v1446_v15 = vld [vmem:[#allocation7 + $0x8] sm:$0xff]  ;;  %1642 = vmatpush.msrb.mxu2 %v3504_v44 }
 0x326   : > { %1783 = vmatpush.msra.mxu0 %v3499_v60  ;;  %1838 = vmatpush.msra.mxu1 %v3504_v44  ;;  %v3598_v22 = vand.u32 4294901760, %v1446_v15 }
 0x327   : > { %1697 = vmatpush.msrb.mxu3 %v1696_v0  ;;  %1644 = vmatpush.msrb.mxu2 %v3544_v30  ;;  %v1760_v0 = vand.u32 4294901760, %v3630_v48 }
 0x328   : > { %1840 = vmatpush.msra.mxu1 %v3544_v30  ;;  %1786 = vmatpush.msra.mxu0 %v3502_v28  ;;  %v3620_v59 = vsub.f32 %v1446_v15, %v3598_v22  ;;  %v1471_v28 = vld [vmem:[#allocation7 + $0xd0] sm:$0xff] }
 0x329   : > { %1703 = vmatpush.msrb.mxu3 %v1702_v14  ;;  %1646 = vmatpush.msrb.mxu2 %v3546_v9  ;;  %v1750_v14 = vand.u32 4294901760, %v1749_v45 }
 0x32a   : > { %1842 = vmatpush.msra.mxu1 %v3546_v9  ;;  %1789 = vmatpush.msra.mxu0 %v3513_v49  ;;  %v1754_v46 = vand.u32 4294901760, %v3620_v59  ;;  %v1470_v49 = vld [vmem:[#allocation7 + $0xc8] sm:$0xff] }
 0x32b   : > { %1709 = vmatpush.msrb.mxu3 %v1708_v12  ;;  %1648 = vmatpush.msrb.mxu2 %v3554_v35  ;;  %v1761_v12 = vsub.f32 %v3630_v48, %v1760_v0 }
 0x32c   : > { %1844 = vmatpush.msra.mxu1 %v3554_v35  ;;  %1792 = vmatpush.msra.mxu0 %v3531_v32  ;;  %v1755_v15 = vsub.f32 %v3620_v59, %v1754_v46 }
 0x32d   : > { %1715 = vmatpush.msrb.mxu3 %v1714_v42  ;;  %1650 = vmatpush.msrb.mxu2 %v3563_v24  ;;  %v1762_v42 = vand.u32 4294901760, %v1761_v12 }
 0x32e   : > { %1846 = vmatpush.msra.mxu1 %v3563_v24  ;;  %1795 = vmatpush.msra.mxu0 %v3558_v52  ;;  %v1756_v38 = vand.u32 4294901760, %v1755_v15  ;;  %v1468_v52 = vld [vmem:[#allocation7 + $0xb8] sm:$0xff] }
 0x32f   : > { %1721 = vmatpush.msrb.mxu3 %v1720_v4  ;;  %1652 = vmatpush.msrb.mxu2 %v3575_v7  ;;  %v3672_v4 = vand.u32 4294901760, %v1475_v36 }
 0x330   : > { %1848 = vmatpush.msra.mxu1 %v3575_v7  ;;  %1798 = vmatpush.msra.mxu0 %v3561_v57 }
 0x331   : > { %1727 = vmatpush.msrb.mxu3 %v1726_v1  ;;  %1654 = vmatpush.msrb.mxu2 %v3587_v61  ;;  %v3679_v55 = vsub.f32 %v1475_v36, %v3672_v4  ;;  %v3692_v1 = vsub.f32 %v1474_v29, %v3681_v21 }
 0x332   : > { %1850 = vmatpush.msra.mxu1 %v3587_v61  ;;  %1801 = vmatpush.msra.mxu0 %v3573_v27  ;;  %v1466_v27 = vld [vmem:[#allocation7 + $0xa8] sm:$0xff] }
 0x333   : > { %1733 = vmatpush.msrb.mxu3 %v1732_v40  ;;  %1656 = vmatpush.msrb.mxu2 %v3598_v22  ;;  %v4072_v40 = vand.u32 4294901760, %v3692_v1 }
 0x334   : > { %1852 = vmatpush.msra.mxu1 %v3598_v22  ;;  %1804 = vmatpush.msra.mxu0 %v3585_v53 }
 0x335   : > { %1739 = vmatpush.msrb.mxu3 %v1738_v54  ;;  %1658 = vmatpush.msrb.mxu2 %v3610_v47  ;;  %v3708_v54 = vpop.f32.mrf.mxu0 }
 0x336   : > { %1854 = vmatpush.msra.mxu1 %v3610_v47  ;;  %1807 = vmatpush.msra.mxu0 %v3596_v11 }
 0x337   : > { %1865 = vmatpush.msra.mxu2 %v1670_v8  ;;  %1745 = vmatpush.msrb.mxu3 %v1744_v10  ;;  %v3670_v8 = vsub.f32 %v1476_v33, %v3664_v5  ;;  %v2024_v10 = vsub.f32 %v3692_v1, %v4072_v40  ;;  %v3736_v33 = vand.u32 4294901760, %v1470_v49 }
 0x338   : > { %1810 = vmatpush.msra.mxu0 %v3608_v43 }
 0x339   : > { %1869 = vmatpush.msra.mxu2 %v1676_v6  ;;  %1751 = vmatpush.msrb.mxu3 %v1750_v14  ;;  %v4074_v6 = vand.u32 4294901760, %v3670_v8  ;;  %v3721_v14 = vand.u32 4294901760, %v1471_v28  ;;  %v3747_v29 = vsub.f32 %v1470_v49, %v3736_v33 }
 0x33a   : > { %1813 = vmatpush.msra.mxu0 %v3620_v59 }
 0x33b   : > { %1873 = vmatpush.msra.mxu2 %v1682_v17  ;;  %1757 = vmatpush.msrb.mxu3 %v1756_v38  ;;  %v1473_v17 = vld [vmem:[#allocation7 + $0xe0] sm:$0xff]  ;;  %v2012_v62 = vsub.f32 %v3670_v8, %v4074_v6  ;;  %v3734_v38 = vsub.f32 %v1471_v28, %v3721_v14 }
 0x33c   : > { %1816 = vmatpush.msra.mxu0 %v3630_v48  ;;  %v3694_v58 = vand.u32 4294901760, %v1473_v17 }
 0x33d   : > { %1877 = vmatpush.msra.mxu2 %v1688_v34  ;;  %1763 = vmatpush.msrb.mxu3 %v1762_v42  ;;  %v4073_v34 = vand.u32 4294901760, %v3679_v55  ;;  %v2013_v60 = vand.u32 4294901760, %v2012_v62  ;;  %v4068_v36 = vand.u32 4294901760, %v3734_v38  ;;  %v3781_v49 = vpop.f32.mrf.mxu0 }
 0x33e   : > { %1969 = vmatpush.msrb.mxu0 %v3664_v5  ;;  %v3705_v41 = vsub.f32 %v1473_v17, %v3694_v58 }
 0x33f   : > { %1932 = vmatpush.msra.mxu3 %v3470_v18  ;;  %1881 = vmatpush.msra.mxu2 %v1694_v56  ;;  %v1472_v18 = vld [vmem:[#allocation7 + $0xd8] sm:$0xff]  ;;  %v2018_v56 = vsub.f32 %v3679_v55, %v4073_v34  ;;  %v2042_v62 = vsub.f32 %v3734_v38, %v4068_v36 }
 0x340   : > { %1971 = vmatpush.msrb.mxu0 %v3672_v4  ;;  %2014 = vmatpush.msrb.mxu1 %v2013_v60  ;;  %v4070_v15 = vand.u32 4294901760, %v3705_v41 }
 0x341   : > { %1934 = vmatpush.msra.mxu3 %v3472_v50  ;;  %1885 = vmatpush.msra.mxu2 %v1700_v16  ;;  %v3713_v50 = vand.u32 4294901760, %v1472_v18  ;;  %v3715_v16 = vpop.f32.mrf.mxu1  ;;  %v2019_v45 = vand.u32 4294901760, %v2018_v56  ;;  %v2043_v56 = vand.u32 4294901760, %v2042_v62 }
 0x342   : > { %1973 = vmatpush.msrb.mxu0 %v3681_v21  ;;  %v2030_v12 = vsub.f32 %v3705_v41, %v4070_v15 }
 0x343   : > { %1936 = vmatpush.msra.mxu3 %v3474_v19  ;;  %1889 = vmatpush.msra.mxu2 %v1706_v31  ;;  %v3726_v19 = vsub.f32 %v1472_v18, %v3713_v50  ;;  %v2025_v31 = vand.u32 4294901760, %v2024_v10  ;;  %v4066_v18 = vand.u32 4294901760, %v3747_v29 }
 0x344   : > { %2020 = vmatpush.msrb.mxu1 %v2019_v45  ;;  %1975 = vmatpush.msrb.mxu0 %v3694_v58  ;;  %v2031_v42 = vand.u32 4294901760, %v2030_v12 }
 0x345   : > { %1938 = vmatpush.msra.mxu3 %v3476_v26  ;;  %1893 = vmatpush.msra.mxu2 %v1712_v51  ;;  %v3739_v26 = vpop.f32.mrf.mxu2  ;;  %v4069_v32 = vand.u32 4294901760, %v3726_v19  ;;  %v1469_v51 = vld [vmem:[#allocation7 + $0xc0] sm:$0xff]  ;;  %v2048_v28 = vsub.f32 %v3747_v29, %v4066_v18 }
 0x346   : > { %2026 = vmatpush.msrb.mxu1 %v2025_v31  ;;  %v3749_v17 = vand.u32 4294901760, %v1469_v51  ;;  %1977 = vmatpush.msrb.mxu0 %v3713_v50 }
 0x347   : > { %1940 = vmatpush.msra.mxu3 %v3478_v63  ;;  %1897 = vmatpush.msra.mxu2 %v1718_v39  ;;  %v2036_v63 = vsub.f32 %v3726_v19, %v4069_v32  ;;  %v3758_v39 = vpop.f32.mrf.mxu3  ;;  %v2049_v31 = vand.u32 4294901760, %v2048_v28 }
 0x348   : > { %2032 = vmatpush.msrb.mxu1 %v2031_v42  ;;  %v3765_v60 = vsub.f32 %v1469_v51, %v3749_v17  ;;  %1979 = vmatpush.msrb.mxu0 %v3721_v14  ;;  %v3794_v42 = vand.u32 4294901760, %v1466_v27 }
 0x349   : > { %1942 = vmatpush.msra.mxu3 %v3480_v13  ;;  %1901 = vmatpush.msra.mxu2 %v1724_v25  ;;  %v3767_v13 = vand.u32 4294901760, %v1468_v52  ;;  %v2037_v57 = vand.u32 4294901760, %v2036_v63  ;;  %v1467_v25 = vld [vmem:[#allocation7 + $0xb0] sm:$0xff]  ;;  %v1465_v63 = vld [vmem:[#allocation7 + $0xa0] sm:$0xff] }
 0x34a   : > { %v4065_v45 = vand.u32 4294901760, %v3765_v60  ;;  %1981 = vmatpush.msrb.mxu0 %v3736_v33  ;;  %v3807_v53 = vsub.f32 %v1466_v27, %v3794_v42  ;;  %v1463_v27 = vld [vmem:[#allocation7 + $0x90] sm:$0xff] }
 0x34b   : > { %1944 = vmatpush.msra.mxu3 %v3493_v37  ;;  %1905 = vmatpush.msra.mxu2 %v1730_v2  ;;  %v3778_v10 = vsub.f32 %v1468_v52, %v3767_v13  ;;  %v3784_v37 = vand.u32 4294901760, %v1467_v25  ;;  %v3786_v2 = vpop.f32.mrf.mxu1 }
 0x34c   : > { %2038 = vmatpush.msrb.mxu1 %v2037_v57  ;;  %v2054_v12 = vsub.f32 %v3765_v60, %v4065_v45  ;;  %1983 = vmatpush.msrb.mxu0 %v3749_v17  ;;  %v4059_v28 = vand.u32 4294901760, %v3807_v53 }
 0x34d   : > { %1946 = vmatpush.msra.mxu3 %v3504_v44  ;;  %v4064_v51 = vand.u32 4294901760, %v3778_v10  ;;  %1909 = vmatpush.msra.mxu2 %v1736_v3  ;;  %v3799_v44 = vsub.f32 %v1467_v25, %v3784_v37  ;;  %v3809_v3 = vand.u32 4294901760, %v1465_v63  ;;  %v1464_v25 = vld [vmem:[#allocation7 + $0x98] sm:$0xff] }
 0x34e   : > { %2044 = vmatpush.msrb.mxu1 %v2043_v56  ;;  %v2055_v52 = vand.u32 4294901760, %v2054_v12  ;;  %1985 = vmatpush.msrb.mxu0 %v3767_v13  ;;  %v2072_v43 = vsub.f32 %v3807_v53, %v4059_v28 }
 0x34f   : > { %1948 = vmatpush.msra.mxu3 %v3544_v30  ;;  %v2060_v62 = vsub.f32 %v3778_v10, %v4064_v51  ;;  %1913 = vmatpush.msra.mxu2 %v1742_v23  ;;  %v3812_v30 = vpop.f32.mrf.mxu2  ;;  %v4062_v57 = vand.u32 4294901760, %v3799_v44  ;;  %v3820_v11 = vsub.f32 %v1465_v63, %v3809_v3  ;;  %v3822_v23 = vand.u32 4294901760, %v1464_v25 }
 0x350   : > { %2050 = vmatpush.msrb.mxu1 %v2049_v31  ;;  %1987 = vmatpush.msrb.mxu0 %v3784_v37  ;;  %v3829_v31 = vpop.f32.mrf.mxu3 }
 0x351   : > { %1950 = vmatpush.msra.mxu3 %v3546_v9  ;;  %v2061_v56 = vand.u32 4294901760, %v2060_v62  ;;  %1917 = vmatpush.msra.mxu2 %v1748_v20  ;;  %v2066_v9 = vsub.f32 %v3799_v44, %v4062_v57  ;;  %v4060_v20 = vand.u32 4294901760, %v3820_v11  ;;  %v3838_v12 = vsub.f32 %v1464_v25, %v3822_v23  ;;  %v3854_v25 = vpop.f32.mrf.mxu0 }
 0x352   : > { %2056 = vmatpush.msrb.mxu1 %v2055_v52  ;;  %1989 = vmatpush.msrb.mxu0 %v3794_v42  ;;  %v1462_v52 = vld [vmem:[#allocation7 + $0x88] sm:$0xff]  ;;  %v2073_v62 = vand.u32 4294901760, %v2072_v43 }
 0x353   : > { %1952 = vmatpush.msra.mxu3 %v3554_v35  ;;  %1921 = vmatpush.msra.mxu2 %v1754_v46  ;;  %v3840_v35 = vand.u32 4294901760, %v1463_v27  ;;  %v2067_v63 = vand.u32 4294901760, %v2066_v9  ;;  %v2078_v28 = vsub.f32 %v3820_v11, %v4060_v20  ;;  %v4061_v59 = vand.u32 4294901760, %v3838_v12  ;;  %v3859_v9 = vpop.f32.mrf.mxu1  ;;  %v3868_v20 = vld [vmem:[#allocation5] sm:$0x3] }
 0x354   : > { %2062 = vmatpush.msrb.mxu1 %v2061_v56  ;;  %1991 = vmatpush.msrb.mxu0 %v3809_v3  ;;  %v1461_v56 = vld [vmem:[#allocation7 + $0x80] sm:$0xff] }
 0x355   : > { %1954 = vmatpush.msra.mxu3 %v3563_v24  ;;  %1925 = vmatpush.msra.mxu2 %v1760_v0  ;;  %v3851_v46 = vsub.f32 %v1463_v27, %v3840_v35  ;;  %v3857_v24 = vand.u32 4294901760, %v1462_v52  ;;  %v2079_v43 = vand.u32 4294901760, %v2078_v28  ;;  %v2084_v48 = vsub.f32 %v3838_v12, %v4061_v59 }
 0x356   : > { %2068 = vmatpush.msrb.mxu1 %v2067_v63  ;;  %v3865_v27 = vand.u32 4294901760, %v1461_v56  ;;  %1993 = vmatpush.msrb.mxu0 %v3822_v23 }
 0x357   : > { %1956 = vmatpush.msra.mxu3 %v3575_v7  ;;  %v4063_v0 = vand.u32 4294901760, %v3851_v46  ;;  %v3872_v7 = vsub.f32 %v1462_v52, %v3857_v24  ;;  %v2085_v63 = vand.u32 4294901760, %v2084_v48  ;;  %v3881_v57 = vpop.f32.mrf.mxu2  ;;  %v755_v52 = vperm.slane %v3868_v20, 0 }
 0x358   : > { %2074 = vmatpush.msrb.mxu1 %v2073_v62  ;;  %v3878_v59 = vsub.f32 %v1461_v56, %v3865_v27  ;;  %1995 = vmatpush.msrb.mxu0 %v3840_v35 }
 0x359   : > { %1958 = vmatpush.msra.mxu3 %v3587_v61  ;;  %v2090_v28 = vsub.f32 %v3851_v46, %v4063_v0  ;;  %v4067_v61 = vand.u32 4294901760, %v3872_v7  ;;  %v3892_v0 = vpop.f32.mrf.mxu3 }
 0x35a   : > { %2080 = vmatpush.msrb.mxu1 %v2079_v43  ;;  %v4071_v48 = vand.u32 4294901760, %v3878_v59  ;;  %1997 = vmatpush.msrb.mxu0 %v3857_v24 }
 0x35b   : > { %1960 = vmatpush.msra.mxu3 %v3598_v22  ;;  %v2091_v62 = vand.u32 4294901760, %v2090_v28  ;;  %v2096_v56 = vsub.f32 %v3872_v7, %v4067_v61 }
 0x35c   : > { %2086 = vmatpush.msrb.mxu1 %v2085_v63  ;;  %v2102_v22 = vsub.f32 %v3878_v59, %v4071_v48  ;;  %1999 = vmatpush.msrb.mxu0 %v3865_v27  ;;  %v478_v63 = vadd.f32 %v3715_v16, %v3708_v54 }
 0x35d   : > { %1962 = vmatpush.msra.mxu3 %v3610_v47  ;;  %v2097_v28 = vand.u32 4294901760, %v2096_v56 }
 0x35e   : > { %2092 = vmatpush.msrb.mxu1 %v2091_v62  ;;  %v2103_v45 = vand.u32 4294901760, %v2102_v22  ;;  %v502_v36 = vadd.f32 %v3739_v26, %v478_v63 }
 0x360   : > { %2098 = vmatpush.msrb.mxu1 %v2097_v28  ;;  %v526_v40 = vadd.f32 %v3758_v39, %v502_v36 }
 0x362   : > { %2104 = vmatpush.msrb.mxu1 %v2103_v45  ;;  %v550_v62 = vadd.f32 %v3781_v49, %v526_v40  ;;  %v4130_v40 = vand.u32 4294901760, %v3679_v55  ;;  %v4138_v45 = vand.u32 4294901760, %v3799_v44 }
 0x364   : > { %v572_v16 = vadd.f32 %v3786_v2, %v550_v62 }
 0x367   : > { %v797_v43 = vpop.f32.mrf.mxu0 }
 0x368   : > { %v798_v51 = vadd.f32 %v797_v43, %v755_v52  ;;  %v898_v47 = vpop.f32.mrf.mxu1 }
 0x36a   : > { %v899_v18 = vadd.f32 %v898_v47, %v798_v51 }
 0x36b   : > { %v952_v61 = vpop.f32.mrf.mxu2 }
 0x36c   : > { %v953_v32 = vadd.f32 %v952_v61, %v899_v18 }
 0x36e   : > { %v991_v15 = vpop.f32.mrf.mxu3 }
 0x36f   : > { %v992_v48 = vadd.f32 %v991_v15, %v953_v32  ;;  %v4129_v15 = vand.u32 4294901760, %v3670_v8  ;;  %v4131_v32 = vand.u32 4294901760, %v3692_v1 }
 0x371   : > { %v1060_v34 = vpop.f32.mrf.mxu0 }
 0x372   : > { %v1061_v56 = vadd.f32 %v1060_v34, %v992_v48 }
 0x373   : > { %v1097_v6 = vpop.f32.mrf.mxu1 }
 0x374   : > { %v1098_v54 = vadd.f32 %v1097_v6, %v1061_v56 }
 0x376   : > { %v1441_v52 = vmax.f32 %v1098_v54, 0.0 }
 0x378   : > { %v1443_v22 = vmul.f32 %v1441_v52, %v572_v16 }
 0x37a   : > { %v1659_v51 = vand.u32 4294901760, %v1443_v22 }
 0x37c   : > { %v1660_v43 = vsub.f32 %v1443_v22, %v1659_v51  ;;  %1765 = vmatmul.f32.vlgmr.msrb.gmra.mxu3 %v1659_v51 }
 0x37d   : > { %2165 = vmatpush.msrb.mxu3 %v3664_v5 }
 0x37e   : > { %1819 = vmatmul.f32.vlgmr.msra.gmra.mxu0 %v1660_v43  ;;  %v1661_v26 = vand.u32 4294901760, %v1660_v43 }
 0x37f   : > { %2167 = vmatpush.msrb.mxu3 %v3672_v4  ;;  %2206 = vmatpush.msra.mxu0 %v4129_v15 }
 0x380   : > { %1858 = vmatmul.f32.vlgmr.msra.gmra.mxu1 %v1661_v26  ;;  %v1662_v34 = vsub.f32 %v1660_v43, %v1661_v26 }
 0x381   : > { %2169 = vmatpush.msrb.mxu3 %v3681_v21  ;;  %2273 = vmatpush.msra.mxu1 %v3664_v5  ;;  %v756_v5 = vperm.slane %v3868_v20, 1  ;;  %v4144_v20 = vand.u32 4294901760, %v3878_v59 }
 0x382   : > { %v1663_v6 = vand.u32 4294901760, %v1662_v34  ;;  %2210 = vmatpush.msra.mxu0 %v4130_v40 }
 0x383   : > { %2171 = vmatpush.msrb.mxu3 %v3694_v58  ;;  %2275 = vmatpush.msra.mxu1 %v3672_v4  ;;  %v4132_v4 = vand.u32 4294901760, %v3705_v41 }
 0x384   : > { %1664 = vmatmul.f32.vlgmr.msrb.gmra.mxu2 %v1663_v6  ;;  %1964 = vmatmul.f32.vlgmr.msra.gmra.mxu3 %v1659_v51 }
 0x385   : > { %2112 = vmatpush.msrb.mxu2 %v3670_v8  ;;  %2173 = vmatpush.msrb.mxu3 %v3713_v50 }
 0x386   : > { %2277 = vmatpush.msra.mxu1 %v3681_v21  ;;  %2214 = vmatpush.msra.mxu0 %v4131_v32  ;;  %v4133_v21 = vand.u32 4294901760, %v3726_v19 }
 0x387   : > { %2115 = vmatpush.msrb.mxu2 %v3679_v55  ;;  %2175 = vmatpush.msrb.mxu3 %v3721_v14 }
 0x388   : > { %2279 = vmatpush.msra.mxu1 %v3694_v58  ;;  %2218 = vmatpush.msra.mxu0 %v4132_v4  ;;  %v624_v58 = vadd.f32 %v3829_v31, %v3812_v30 }
 0x389   : > { %2118 = vmatpush.msrb.mxu2 %v3692_v1  ;;  %2177 = vmatpush.msrb.mxu3 %v3736_v33 }
 0x38a   : > { %v1138_v8 = vpop.f32.mrf.mxu2  ;;  %2281 = vmatpush.msra.mxu1 %v3713_v50  ;;  %2222 = vmatpush.msra.mxu0 %v4133_v21  ;;  %v4134_v50 = vand.u32 4294901760, %v3734_v38 }
 0x38b   : > { %v1139_v55 = vadd.f32 %v1138_v8, %v756_v5  ;;  %2121 = vmatpush.msrb.mxu2 %v3705_v41  ;;  %2179 = vmatpush.msrb.mxu3 %v3749_v17  ;;  %v648_v41 = vadd.f32 %v3854_v25, %v624_v58 }
 0x38c   : > { %1927 = vmatmul.f32.vlgmr.msra.gmra.mxu2 %v1659_v51  ;;  %2283 = vmatpush.msra.mxu1 %v3721_v14  ;;  %v4135_v14 = vand.u32 4294901760, %v3747_v29 }
 0x38d   : > { %2124 = vmatpush.msrb.mxu2 %v3726_v19  ;;  %2181 = vmatpush.msrb.mxu3 %v3767_v13  ;;  %v1239_v1 = vpop.f32.mrf.mxu3  ;;  %v672_v39 = vadd.f32 %v3859_v9, %v648_v41 }
 0x38e   : > { %2285 = vmatpush.msra.mxu1 %v3736_v33  ;;  %2226 = vmatpush.msra.mxu0 %v4134_v50  ;;  %v1240_v36 = vadd.f32 %v1239_v1, %v1139_v55  ;;  %v4136_v33 = vand.u32 4294901760, %v3765_v60 }
 0x38f   : > { %2127 = vmatpush.msrb.mxu2 %v3734_v38  ;;  %2183 = vmatpush.msrb.mxu3 %v3784_v37 }
 0x390   : > { %2287 = vmatpush.msra.mxu1 %v3749_v17  ;;  %2230 = vmatpush.msra.mxu0 %v4135_v14  ;;  %v1332_v17 = vpop.f32.mrf.mxu1 }
 0x391   : > { %2130 = vmatpush.msrb.mxu2 %v3747_v29  ;;  %2185 = vmatpush.msrb.mxu3 %v3794_v42  ;;  %v4137_v29 = vand.u32 4294901760, %v3778_v10 }
 0x392   : > { %v1293_v19 = vpop.f32.mrf.mxu0  ;;  %2289 = vmatpush.msra.mxu1 %v3767_v13  ;;  %2234 = vmatpush.msra.mxu0 %v4136_v33 }
 0x393   : > { %v1294_v38 = vadd.f32 %v1293_v19, %v1240_v36  ;;  %2133 = vmatpush.msrb.mxu2 %v3765_v60  ;;  %2187 = vmatpush.msrb.mxu3 %v3809_v3  ;;  %v1401_v13 = vpop.f32.mrf.mxu2  ;;  %v696_v60 = vadd.f32 %v3881_v57, %v672_v39  ;;  %v4142_v57 = vand.u32 4294901760, %v3851_v46 }
 0x394   : > { %2291 = vmatpush.msra.mxu1 %v3784_v37  ;;  %2238 = vmatpush.msra.mxu0 %v4137_v29 }
 0x395   : > { %v1333_v18 = vadd.f32 %v1332_v17, %v1294_v38  ;;  %2136 = vmatpush.msrb.mxu2 %v3778_v10  ;;  %2189 = vmatpush.msrb.mxu3 %v3822_v23  ;;  %v1438_v37 = vpop.f32.mrf.mxu3  ;;  %v4139_v10 = vand.u32 4294901760, %v3807_v53 }
 0x396   : > { %2293 = vmatpush.msra.mxu1 %v3794_v42  ;;  %2242 = vmatpush.msra.mxu0 %v4138_v45  ;;  %v4140_v42 = vand.u32 4294901760, %v3820_v11 }
 0x397   : > { %v1402_v49 = vadd.f32 %v1401_v13, %v1333_v18  ;;  %2139 = vmatpush.msrb.mxu2 %v3799_v44  ;;  %2191 = vmatpush.msrb.mxu3 %v3840_v35  ;;  %v718_v44 = vadd.f32 %v3892_v0, %v696_v60 }
 0x398   : > { %2295 = vmatpush.msra.mxu1 %v3809_v3  ;;  %2246 = vmatpush.msra.mxu0 %v4139_v10  ;;  %v4141_v3 = vand.u32 4294901760, %v3838_v12 }
 0x399   : > { %v1439_v2 = vadd.f32 %v1438_v37, %v1402_v49  ;;  %2142 = vmatpush.msrb.mxu2 %v3807_v53  ;;  %2193 = vmatpush.msrb.mxu3 %v3857_v24 }
 0x39a   : > { %2297 = vmatpush.msra.mxu1 %v3822_v23  ;;  %2250 = vmatpush.msra.mxu0 %v4140_v42 }
 0x39b   : > { %v1442_v30 = vmax.f32 %v1439_v2, 0.0  ;;  %2145 = vmatpush.msrb.mxu2 %v3820_v11  ;;  %2195 = vmatpush.msrb.mxu3 %v3865_v27  ;;  %v4143_v11 = vand.u32 4294901760, %v3872_v7  ;;  %v1554_v0 = vpop.f32.mrf.mxu2 }
 0x39c   : > { %2299 = vmatpush.msra.mxu1 %v3840_v35  ;;  %2254 = vmatpush.msra.mxu0 %v4141_v3 }
 0x39d   : > { %v1444_v53 = vmul.f32 %v1442_v30, %v718_v44  ;;  %2148 = vmatpush.msrb.mxu2 %v3838_v12  ;;  %v1578_v61 = vpop.f32.mrf.mxu3 }
 0x39e   : > { %2301 = vmatpush.msra.mxu1 %v3857_v24  ;;  %2258 = vmatpush.msra.mxu0 %v4142_v57  ;;  %v1530_v24 = vpop.f32.mrf.mxu1 }
 0x39f   : > { %v2000_v23 = vand.u32 4294901760, %v1444_v53  ;;  %2151 = vmatpush.msrb.mxu2 %v3851_v46  ;;  %v1504_v46 = vpop.f32.mrf.mxu0 }
 0x3a0   : > { %2303 = vmatpush.msra.mxu1 %v3865_v27  ;;  %2262 = vmatpush.msra.mxu0 %v4143_v11  ;;  %v1531_v9 = vadd.f32 %v1530_v24, %v1504_v46 }
 0x3a1   : > { %v2001_v31 = vsub.f32 %v1444_v53, %v2000_v23  ;;  %2106 = vmatmul.f32.vlgmr.msrb.gmra.mxu1 %v2000_v23  ;;  %2154 = vmatpush.msrb.mxu2 %v3872_v7 }
 0x3a2   : > { %2266 = vmatpush.msra.mxu0 %v4144_v20  ;;  %v1555_v27 = vadd.f32 %v1554_v0, %v1531_v9 }
 0x3a3   : > { %2157 = vmatpush.msrb.mxu2 %v3878_v59  ;;  %v2002_v12 = vand.u32 4294901760, %v2001_v31 }
 0x3a4   : > { %2160 = vmatmul.f32.vlgmr.msrb.gmra.mxu2 %v2001_v31  ;;  %v1579_v48 = vadd.f32 %v1578_v61, %v1555_v27 }
 0x3a5   : > { %2199 = vmatmul.f32.vlgmr.msrb.gmra.mxu3 %v2002_v12  ;;  %v2003_v35 = vsub.f32 %v2001_v31, %v2002_v12 }
 0x3a6   : > { %v1624_v63 = vpop.f32.mrf.mxu1 }
 0x3a7   : > { %v2004_v25 = vand.u32 4294901760, %v2003_v35  ;;  %v1602_v7 = vpop.f32.mrf.mxu0 }
 0x3a8   : > { %v1603_v28 = vadd.f32 %v1602_v7, %v1579_v48 }
 0x3a9   : > { %2005 = vmatmul.f32.vlgmr.msrb.gmra.mxu0 %v2004_v25  ;;  %2305 = vmatmul.f32.vlgmr.msra.gmra.mxu1 %v2000_v23 }
 0x3aa   : > { %v1625_v47 = vadd.f32 %v1624_v63, %v1603_v28 }
 0x3b1   : > { %2268 = vmatmul.f32.vlgmr.msra.gmra.mxu0 %v2000_v23 }
 0x3fb   : > { %v1820_v16 = vpop.f32.mrf.mxu0 }
 0x3fd   : > { %v1859_v22 = vpop.f32.mrf.mxu1 }
 0x3ff   : > { %v1766_v56 = vpop.f32.mrf.mxu3 }
 0x407   : > { %v1665_v59 = vpop.f32.mrf.mxu2  ;;  %v1965_v15 = vpop.f32.mrf.mxu3 }
 0x408   : > { %v1666_v62 = vadd.f32 %v1665_v59, %v1625_v47 }
 0x40a   : > { %v1767_v54 = vadd.f32 %v1766_v56, %v1666_v62 }
 0x40c   : > { %v1821_v52 = vadd.f32 %v1820_v16, %v1767_v54 }
 0x40e   : > { %v1860_v51 = vadd.f32 %v1859_v22, %v1821_v52 }
 0x40f   : > { %v1928_v43 = vpop.f32.mrf.mxu2 }
 0x410   : > { %v1929_v26 = vadd.f32 %v1928_v43, %v1860_v51 }
 0x412   : > { %v1966_v34 = vadd.f32 %v1965_v15, %v1929_v26 }
 0x41e   : > { %v2107_v6 = vpop.f32.mrf.mxu1 }
 0x426   : > { %v2006_v40 = vpop.f32.mrf.mxu0  ;;  %v2306_v50 = vpop.f32.mrf.mxu1 }
 0x427   : > { %v2007_v32 = vadd.f32 %v2006_v40, %v1966_v34  ;;  %v2161_v4 = vpop.f32.mrf.mxu2 }
 0x428   : > { %v2200_v21 = vpop.f32.mrf.mxu3 }
 0x429   : > { %v2108_v5 = vadd.f32 %v2107_v6, %v2007_v32 }
 0x42b   : > { %v2162_v8 = vadd.f32 %v2161_v4, %v2108_v5 }
 0x42d   : > { %v2201_v55 = vadd.f32 %v2200_v21, %v2162_v8 }
 0x42e   : > { %v2269_v58 = vpop.f32.mrf.mxu0 }
 0x42f   : > { %v2270_v1 = vadd.f32 %v2269_v58, %v2201_v55 }
 0x431   : > { %v2307_v41 = vadd.f32 %v2306_v50, %v2270_v1 }
 0x433   : > { %2309 = vst [vmem:[%s345_s16] sm:$0xff] %v2307_v41 }
 0x434   : > { %2700 = shalt.err (!%p2697_p8)
}
 0x435   : > { %2475 = dma.vmem_to_hbm [thread:$0]  (%p2838_p5), %s2324_s18, 128, %s2326_s2, %s2311_s28  }
 0x436 PF: > { %p2502_p9 = scmp.ge.s32.totalorder %s2747_s27, 2  ;;  %s2337_s8 = sand.u32 1, %s2735_s24  }
 0x437   : > { %s2338_s9 = scalar_lea.sflag [#allocation4], %s2337_s8 }
 0x438   : > { %p2491_p10 = pnand %p2502_p9, %p2842_p6 }
 0x43a   : > { %p2492_p11 = pneg %p2491_p10 }
 0x43c   : > { %2730 = dma.done.wait (%p2492_p11), %s2338_s9, 128  }
 0x43d   : > { %2732 = vsyncadd (%p2492_p11), %s2338_s9, 4294967168  ;;  %s4145_s14 = sld [smem:[#allocation15_spill]]  ;;  %p20_p12 = scmp.ge.s32.totalorder %s2825_s30, 4  }
 0x43e   : > { %s4146_s26 = sld [smem:[#allocation16_spill]]  ;;  %s4147_s24 = smov %s2739_s25 }
 0x43f   : > { %s4149_s27 = smov %s2825_s30  ;;  %22 = sbr.rel (!%p20_p12) target bundleno = 9 (0x9), region = 103 }
 0x443   : > { %s4148_s25 = smov %s4145_s14 }
 0x444   :  { %2344 = vsyncpa [#allocation3], 1 }
 0x445   :  { %2346 = vsyncpa [#allocation3 + $0x1], 1 }
 0x446   :  { %2347 = vsyncpa [#allocation6], 1 }
 0x447   :  { %2348 = vsyncpa [#allocation9], 1 }
 0x448   :  { %2349 = vsyncpa [#allocation4], 1 }
 0x449   :  { %2351 = vsyncpa [#allocation4 + $0x1], 1 }

// kernel: tpu_custom_call.1
= control target key start
LH: loop header
LB: loop body
LE: loop exit
PB: predicated region body
PF: predicated region fallthrough
CT: control target
= control target key end

     0   :  { %s4023_s0 = inlined_call_operand.vmem [shape: f32[16,4], index: 0, kind: input, shape index: {}]   ;;  %s4024_s1 = inlined_call_operand.vmem [shape: f32[16,128], index: 1, kind: input, shape index: {}]   ;;  %s4025_s2 = inlined_call_operand.hbm [shape: f32[128,256], index: 2, kind: input, shape index: {}]   ;;  %s4026_s3 = inlined_call_operand.hbm [shape: f32[1,256], index: 3, kind: input, shape index: {}]   ;;  %s4027_s4 = inlined_call_operand.hbm [shape: f32[256,128], index: 4, kind: input, shape index: {}]   ;;  %s4028_s5 = inlined_call_operand.hbm [shape: f32[4,128], index: 5, kind: input, shape index: {}]   ;;  %s4029_s6 = inlined_call_operand.vmem [shape: f32[4,256], index: 6, kind: input, shape index: {}]   ;;  %s4030_s7 = inlined_call_operand.hbm [shape: f32[16,128], index: 7, kind: output, shape index: {}]  }
   0x1   :  { %4075 = sst [smem:[#allocation22_spill]] %s4025_s2 }
   0x2   :  { %4076 = sst [smem:[#allocation23_spill]] %s4026_s3 }
   0x3   :  { %12 = vsyncpa [#allocation3], 0 }
   0x4   :  { %13 = vsyncpa [#allocation6], 0 }
   0x5   :  { %14 = vsyncpa [#allocation9], 0 }
   0x6   :  { %15 = vsyncpa [#allocation4], 0 }
   0x7   :  { %17 = vsyncpa [#allocation4 + $0x1], 0  ;;  %s2800_s24 = smov 0   ;;  %s2802_s25 = smov 0  }
   0x8   :  { %s2804_s26 = smov 0   ;;  %s2806_s27 = smov 0  }
   0x9 LB: > { %4077 = sst [smem:[#allocation15_spill]] %s2743_s26  ;;  %s2821_s28 = sadd.s32 4294967295, %s2747_s27   ;;  %s2747_s27 = sphi %s2806_s27, %s4149_s27   ;;  %s2743_s26 = sphi %s2804_s26, %s4146_s26   ;;  %s2739_s25 = sphi %s2802_s25, %s4148_s25   ;;  %s2735_s24 = sphi %s2800_s24, %s4147_s24  }
   0xa   : > { %s2438_s29 = sadd.s32 4294967294, %s2747_s27   ;;  %s2825_s30 = sadd.s32 1, %s2747_s27  }
   0xb   : > { %s187_s8 = sadd.s32 1, %s2743_s26  ;;  %s184_s9 = ssub.s32 %s2747_s27, %s2825_s30 }
   0xc   : > { %p197_p0 = scmp.ne.s32.totalorder %s2743_s26, %s2739_s25  ;;  %p185_p1 = scmp.eq.s32.totalorder %s184_s9, 0 }
   0xd   : > { %p198_p2 = scmp.eq.s32.totalorder %s2821_s28, 1  ;;  %p203_p3 = scmp.ne.s32.totalorder %s2739_s25, %s2735_s24 }
   0xe   : > { %p204_p4 = scmp.eq.s32.totalorder %s2438_s29, 1  ;;  %p2439_p7 = scmp.ge.s32.totalorder %s2747_s27, 1 }
   0xf   : > { %s2836_s10 = scalar_select %p185_p1, %s2743_s26, %s187_s8  }
  0x10   : > { %p2838_p5 = por %p198_p2, %p197_p0  ;;  %p2842_p6 = por %p204_p4, %p203_p3 }
  0x11   : > { %4078 = sst [smem:[#allocation16_spill]] %s2836_s10  ;;  %p211_p8 = scmp.lt.s32.totalorder %s2747_s27, 3 }
  0x12   : > { %p2494_p9 = scmp.eq.s32.totalorder %s2821_s28, 0  ;;  %s4082_s3 = sld [smem:[#allocation23_spill]] }
  0x13   : > { %p2849_p10 = pnand %p2439_p7, %p211_p8  ;;  %s2749_s17 = smov [#allocation5]  }
  0x14   : > { %s239_s18 = sshll.u32 %s2749_s17, 4  ;;  %s4083_s2 = sld [smem:[#allocation22_spill]]  ;;  %s240_s18 = int_to_ptr.vmem [resolvable:$true] %s239_s18 }
  0x15   : > { %p2477_p11 = pneg %p2849_p10  ;;  %s2750_s23 = smov [#allocation2]  }
  0x16   : > { %s224_s29 = sshll.u32 %s2750_s23, 4  ;;  %s2751_s8 = smov 256   ;;  %s225_s29 = int_to_ptr.vmem [resolvable:$true] %s224_s29 }
  0x17   : > { %p2863_p12 = pnand %p2494_p9, %p2477_p11  ;;  %s2752_s9 = smov 16  }
  0x18   : > { %s237_s16 = sshll.u32 %s4082_s3, 4  ;;  %s248_s17 = sshll.u32 %s4027_s4, 4  ;;  %s238_s16 = int_to_ptr.hbm [resolvable:$true] %s237_s16  ;;  %s249_s17 = int_to_ptr.hbm [resolvable:$true] %s248_s17 }
  0x19   : > { %2483 = dma.hbm_to_vmem [thread:$0]  (!%p2863_p12), %s238_s16, 32, %s240_s18, [#allocation6]  }
  0x1a   : > { %s222_s21 = sshll.u32 %s4083_s2, 4  ;;  %s2753_s19 = smov [#allocation7]   ;;  %s223_s21 = int_to_ptr.hbm [resolvable:$true] %s222_s21 }
  0x1b   : > { %2480 = dma.hbm_to_vmem [thread:$0]  (!%p2863_p12), %s223_s21, 4096, %s225_s29, [#allocation3], %s2751_s8, %s2751_s8, %s2752_s9  }
  0x1c   : > { %s250_s20 = sshll.u32 %s2753_s19, 4  ;;  %s263_s23 = sshll.u32 %s4028_s5, 4  ;;  %s251_s20 = int_to_ptr.vmem [resolvable:$true] %s250_s20  ;;  %s264_s23 = int_to_ptr.hbm [resolvable:$true] %s263_s23 }
  0x1d   : > { %s2754_s10 = smov 128   ;;  %s2755_s16 = smov 8  }
  0x1e   : > { %2486 = dma.hbm_to_vmem [thread:$0]  (!%p2863_p12), %s249_s17, 4096, %s251_s20, [#allocation6], %s2754_s10, %s2754_s10, %s2755_s16  }
  0x1f   : > { %s2756_s18 = smov [#allocation8]   ;;  %295 = sbr.rel (%p2849_p10) target bundleno = 1078 (0x436), region = 48 }
  0x20   : > { %s265_s26 = sshll.u32 %s2756_s18, 4  ;;  %s266_s26 = int_to_ptr.vmem [resolvable:$true] %s265_s26 }
  0x21   : > { %2489 = dma.hbm_to_vmem [thread:$0]  (!%p2863_p12), %s264_s23, 64, %s266_s26, [#allocation9]  }
  0x24   : > { %2718 = dma.done.wait (%p2494_p9), [#allocation3], 4096  }
  0x25   : > { %2720 = vsyncadd (%p2494_p9), [#allocation3], 4294963200 }
  0x26   : > { %2722 = dma.done.wait (%p2494_p9), [#allocation6], 4128  }
  0x27   : > { %2724 = vsyncadd (%p2494_p9), [#allocation6], 4294963168 }
  0x28   : > { %2726 = dma.done.wait (%p2494_p9), [#allocation9], 64  }
  0x29   : > { %2728 = vsyncadd (%p2494_p9), [#allocation9], 4294967232  ;;  %p346_p13 = scmp.lt.s32.totalorder %s2821_s28, 1  ;;  %vm357_vm0 = vcmask 31744   ;;  %v355_v2 = vlaneseq  ;;  %vm371_vm2 = vcmask 7168   ;;  %vm373_vm3 = vcmask 15360  }
  0x2a   : > { %v2757_v16 = vmov 1   ;;  %v2758_v17 = vmov 0   ;;  %v415_v30 = vld [vmem:[%s4029_s6] sm:$0xff]  ;;  %vm423_vm8 = vcmask 1043456   ;;  %v749_v47 = vld [vmem:[#allocation2 + $0xe0] sm:$0xff]  ;;  %v2759_v52 = vmov 0.0  }
  0x2b   : > { %s2897_s2 = scalar_select %p346_p13, %s2821_s28, 1  ;;  %v2906_v3 = vand.u32 127, %v355_v2  ;;  %2547 = vset.pattern.permute.xlu1 %v2757_v16  ;;  %2546 = vset.pattern.permute.xlu0 %v2758_v17  ;;  %417 = vst [vmem:[#allocation1] ss:$2 sm:$0xff] %v415_v30  ;;  %v751_v46 = vld [vmem:[#allocation2 + $0xf0] sm:$0xff]  ;;  %v2928_v50 = vand.u32 4294901760, %v749_v47 }
  0x2c   : > { %v2926_v48 = vand.u32 4294901760, %v751_v46  ;;  %v747_v49 = vld [vmem:[#allocation2 + $0xd0] sm:$0xff]  ;;  %v745_v56 = vld [vmem:[#allocation2 + $0xc0] sm:$0xff]  ;;  %s343_s14 = sand.u32 1, %s2739_s25   ;;  %s2456_s17 = sshll.u32 %s2821_s28, 3 }
  0x2d   : > { %s2451_s3 = sshll.u32 %s2897_s2, 3  ;;  %v2936_v60 = vand.u32 4294901760, %v747_v49  ;;  %v2939_v62 = vsub.f32 %v749_v47, %v2928_v50  ;;  %v2941_v63 = vand.u32 4294901760, %v745_v56  ;;  %s2450_s15 = sshll.u32 %s343_s14, 3 }
  0x2e   : > { %s349_s13 = scalar_lea.vmem %s4023_s0, %s2451_s3  ;;  %v2934_v59 = vsub.f32 %v751_v46, %v2926_v48  ;;  %v727_v46 = vld [vmem:[#allocation2 + $0x30] sm:$0xff]  ;;  %s353_s9 = scalar_lea.vmem %s4024_s1, %s2451_s3 }
  0x2f   : > { %v354_v0 = vld [vmem:[%s349_s13] sm:$0xff]  ;;  %s2321_s23 = scalar_lea.hbm %s4030_s7, %s2456_s17  ;;  %s345_s16 = scalar_lea.vmem [#allocation10], %s2450_s15 }
  0x30   : > { %v358_v1 = vsel %vm357_vm0, %v354_v0, -inf  ;;  %v4049_v2 = vand.u32 4294901760, %v2934_v59  ;;  %s2323_s18 = sshll.u32 %s345_s16, 4  ;;  %s2325_s2 = sshll.u32 %s2321_s23, 4  ;;  %s2324_s18 = int_to_ptr.vmem [resolvable:$true] %s2323_s18  ;;  %s2326_s2 = int_to_ptr.hbm [resolvable:$true] %s2325_s2 }
  0x31   : > { %361 = vmax.index.xlane.f32.xlu0 %v358_v1  ;;  %s2311_s28 = scalar_lea.sflag [#allocation4], %s343_s14  ;;  %s2687_s3 = sshra.s32 %s2326_s2, 4  ;;  %s2688_s3 = int_to_ptr.hbm [resolvable:$true] %s2687_s3 }
  0x32   : > { %v418_v31 = vld.sshfl [vmem:[#allocation1] sm:$0xff pattern:$0x75316420]  ;;  %v419_v38 = vld.sshfl [vmem:[#allocation1 + $0x8] sm:$0xff pattern:$0x75316420]  ;;  %p2694_p3 = scmp.lt.s32.totalorder %s2688_s3, %s4030_s7 }
  0x33   : > { %v424_v32 = vsel %vm423_vm8, %v418_v31, 0  ;;  %v426_v39 = vsel %vm423_vm8, %v419_v38, 0  ;;  %s2689_s26 = scalar_lea.hbm %s2688_s3, 8  ;;  %s2693_s21 = scalar_lea.hbm %s4030_s7, 16 }
  0x34   : > { %v443_v33 = vand.u32 4294901760, %v424_v32  ;;  %v589_v40 = vand.u32 4294901760, %v426_v39  ;;  %p2690_p0 = scmp.ne.s32.totalorder %s2688_s3, %s2689_s26  ;;  %p2695_p4 = scmp.lt.s32.totalorder %s2693_s21, %s2689_s26 }
  0x36   : > { %v470_v34 = vsub.f32 %v424_v32, %v443_v33  ;;  %520 = vmatpush.msra.mxu3 %v443_v33  ;;  %444 = vmatpush.msra.mxu0 %v443_v33  ;;  %v2921_v41 = vsub.f32 %v426_v39, %v589_v40  ;;  %p2691_p1 = pnand %p2690_p0, %p2838_p5  ;;  %p2696_p7 = por %p2695_p4, %p2694_p3 }
  0x38   : > { %v471_v35 = vand.u32 4294901760, %v470_v34  ;;  %497 = vmatpush.msra.mxu2 %v470_v34  ;;  %v617_v42 = vand.u32 4294901760, %v2921_v41  ;;  %p2692_p2 = pneg %p2691_p1 }
  0x39   : > { %359 = vmax.xlane.f32.xlu0 %v358_v1 }
  0x3a   : > { %v472_v36 = vsub.f32 %v470_v34, %v471_v35  ;;  %546 = vmatpush.msrb.mxu0 %v471_v35  ;;  %590 = vmatpush.msrb.mxu2 %v589_v40  ;;  %v618_v43 = vsub.f32 %v2921_v41, %v617_v42  ;;  %v731_v35 = vld [vmem:[#allocation2 + $0x50] sm:$0xff]  ;;  %p2697_p8 = pnand %p2696_p7, %p2692_p2 }
  0x3c   : > { %v473_v37 = vand.u32 4294901760, %v472_v36  ;;  %v619_v44 = vand.u32 4294901760, %v618_v43 }
  0x3e   : > { %474 = vmatpush.msra.mxu1 %v473_v37  ;;  %620 = vmatpush.msrb.mxu3 %v619_v44  ;;  %v3019_v44 = vand.u32 4294901760, %v731_v35 }
  0x40   : > { %568 = vmatpush.msrb.mxu1 %v443_v33 }
  0xa4   : > { %v2908_v4 = vpop.xlane.xlu0 %361 }
  0xa5   : > { %vm363_vm1 = vcmp.eq.s32.totalorder %v2906_v3, %v2908_v4  ;;  %v741_v4 = vld [vmem:[#allocation2 + $0xa0] sm:$0xff] }
  0xa6   : > { %v364_v5 = vsel %vm363_vm1, -inf, %v354_v0  ;;  %v2453_v54 = vsel %vm363_vm1, 1.0, %v2759_v52  ;;  %v743_v0 = vld [vmem:[#allocation2 + $0xb0] sm:$0xff] }
  0xa7   : > { %v365_v6 = vsel %vm357_vm0, %v364_v5, -inf }
  0xa8   : > { %366 = vmax.xlane.f32.xlu1 %v365_v6 }
  0xac   : > { %v360_v7 = vpop.xlane.xlu0 %359 }
 0x11b   : > { %v367_v8 = vpop.xlane.xlu1 %366 }
 0x11c   : > { %v372_v9 = vsel %vm371_vm2, %v360_v7, %v367_v8  ;;  %v4048_v7 = vand.u32 4294901760, %v2939_v62  ;;  %v2954_v8 = vsub.f32 %v745_v56, %v2941_v63  ;;  %v3041_v56 = vand.u32 4294901760, %v727_v46 }
 0x11d   : > { %v374_v10 = vsel %vm373_vm3, %v372_v9, -inf }
 0x11e   : > { %375 = vmax.xlane.f32.xlu1 %v374_v10 }
 0x191   : > { %v376_v11 = vpop.xlane.xlu1 %375 }
 0x192   : > { %v377_v12 = vsub.f32 %v372_v9, %v376_v11  ;;  %v739_v9 = vld [vmem:[#allocation2 + $0x90] sm:$0xff]  ;;  %v2960_v11 = vand.u32 4294901760, %v741_v4 }
 0x193   : > { %v2973_v17 = vand.u32 4294901760, %v739_v9 }
 0x194   : > { %v378_v13 = vmul.f32 1.442695, %v377_v12  ;;  %v803_v12 = vsub.f32 %v2934_v59, %v4049_v2  ;;  %v732_v2 = vld [vmem:[#allocation2 + $0x58] sm:$0xff] }
 0x196   : > { %2549 = vpow2.f32 %v378_v13 }
 0x19c   : > { %v2550_v14 = vpop.eup %2549 }
 0x19d   : > { %v380_v15 = vsel %vm373_vm3, %v2550_v14, 0.0 }
 0x19e   : > { %381 = vadd.xlane.f32.xlu2 %v380_v15 }
 0x1a6   : > { %368 = vmax.index.xlane.f32.xlu2 %v365_v6  ;;  %v2950_v6 = vand.u32 4294901760, %v743_v0 }
 0x211   : > { %v382_v18 = vpop.xlane.xlu2 %381 }
 0x212   : > { %2551 = vrcp.f32 %v382_v18  ;;  %v394_v22 = vand.u32 2147483648, %v382_v18  ;;  %v392_v24 = vand.u32 2147483647, %v382_v18  ;;  %vm388_vm5 = vweird.f32 %v382_v18 }
 0x214   : > { %v395_v26 = vor.u32 1.1754944e-38, %v394_v22  ;;  %vm393_vm7 = vcmp.eq.f32.partialorder %v392_v24, 8.507059e+37  ;;  %v804_v24 = vand.u32 4294901760, %v803_v12  ;;  %v721_v12 = vld [vmem:[#allocation2] sm:$0xff] }
 0x218   : > { %v2552_v19 = vpop.eup %2551 }
 0x219   : > { %v384_v20 = vmul.f32 %v2552_v19, %v382_v18  ;;  %vm389_vm4 = vweird.f32 %v2552_v19  ;;  %v369_v45 = vpop.xlane.xlu2 %368  ;;  %v809_v18 = vsub.f32 %v2939_v62, %v4048_v7 }
 0x21a   : > { %vm390_vm6 = vmor %vm388_vm5, %vm389_vm4  ;;  %vm370_vm9 = vcmp.eq.s32.totalorder %v2906_v3, %v369_v45  ;;  %v2946_v3 = vsub.f32 %v747_v49, %v2936_v60 }
 0x21b   : > { %v385_v21 = vsub.f32 1.0, %v384_v20  ;;  %v2454_v53 = vsel %vm370_vm9, 1.0, %v2759_v52  ;;  %v810_v30 = vand.u32 4294901760, %v809_v18 }
 0x21c   : > { %v4046_v13 = vand.u32 4294901760, %v2946_v3 }
 0x21d   : > { %v386_v23 = vmul.f32 %v2552_v19, %v385_v21  ;;  %v2983_v21 = vsub.f32 %v741_v4, %v2960_v11 }
 0x21f   : > { %v387_v25 = vadd.f32 %v2552_v19, %v386_v23  ;;  %v735_v23 = vld [vmem:[#allocation2 + $0x70] sm:$0xff]  ;;  %v4042_v33 = vand.u32 4294901760, %v2983_v21 }
 0x220   : > { %v2999_v32 = vand.u32 4294901760, %v735_v23 }
 0x221   : > { %v391_v27 = vsel %vm390_vm6, %v2552_v19, %v387_v25  ;;  %v4045_v19 = vand.u32 4294901760, %v2954_v8  ;;  %v815_v25 = vsub.f32 %v2946_v3, %v4046_v13 }
 0x222   : > { %v396_v28 = vsel %vm393_vm7, %v395_v26, %v391_v27  ;;  %v3017_v43 = vsub.f32 %v735_v23, %v2999_v32 }
 0x223   : > { %v397_v29 = vmul.f32 %v2550_v14, %v396_v28  ;;  %v737_v14 = vld [vmem:[#allocation2 + $0x80] sm:$0xff]  ;;  %v2994_v28 = vsub.f32 %v739_v9, %v2973_v17  ;;  %v821_v31 = vsub.f32 %v2954_v8, %v4045_v19  ;;  %v816_v36 = vand.u32 4294901760, %v815_v25  ;;  %v734_v19 = vld [vmem:[#allocation2 + $0x68] sm:$0xff] }
 0x224   : > { %v2985_v22 = vand.u32 4294901760, %v737_v14 }
 0x225   : > { %410 = vperm.xlu1 %2547, %v397_v29   ;;  %402 = vperm.xlu0 %2546, %v397_v29   ;;  %v733_v29 = vld [vmem:[#allocation2 + $0x60] sm:$0xff]  ;;  %v4041_v39 = vand.u32 4294901760, %v2994_v28 }
 0x226   : > { %v3005_v34 = vsub.f32 %v737_v14, %v2985_v22  ;;  %v3008_v37 = vand.u32 4294901760, %v733_v29 }
 0x227   : > { %v839_v52 = vsub.f32 %v2994_v28, %v4041_v39 }
 0x228   : > { %v4040_v45 = vand.u32 4294901760, %v3005_v34  ;;  %v3028_v47 = vsub.f32 %v733_v29, %v3008_v37 }
 0x229   : > { %v840_v9 = vand.u32 4294901760, %v839_v52  ;;  %v752_v52 = vld [vmem:[#allocation2 + $0xf8] sm:$0xff] }
 0x22d   : > { %2548 = vset.pattern.permute.xlu0 %v2757_v16  ;;  %v2971_v16 = vsub.f32 %v743_v0, %v2950_v6  ;;  %v4037_v0 = vand.u32 4294901760, %v3028_v47 }
 0x22f   : > { %v4044_v27 = vand.u32 4294901760, %v2971_v16  ;;  %v857_v25 = vsub.f32 %v3028_v47, %v4037_v0 }
 0x231   : > { %v827_v38 = vsub.f32 %v2971_v16, %v4044_v27 }
 0x297   : > { %v411_v51 = vpop.permute.xlu1 %410  ;;  %v403_v55 = vpop.permute.xlu0 %402 }
 0x298   : > { %v413_v57 = vmul.f32 %v2454_v53, %v411_v51  ;;  %v405_v58 = vmul.f32 %v2453_v54, %v403_v55  ;;  %v828_v51 = vand.u32 4294901760, %v827_v38  ;;  %v725_v53 = vld [vmem:[#allocation2 + $0x20] sm:$0xff]  ;;  %v4039_v54 = vand.u32 4294901760, %v3017_v43 }
 0x299   : > { %v3039_v55 = vsub.f32 %v731_v35, %v3019_v44  ;;  %v3054_v4 = vand.u32 4294901760, %v725_v53 }
 0x29a   : > { %v414_v61 = vadd.f32 %v413_v57, %v405_v58  ;;  %v845_v58 = vsub.f32 %v3005_v34, %v4040_v45  ;;  %v851_v14 = vsub.f32 %v3017_v43, %v4039_v54 }
 0x29b   : > { %v4035_v18 = vand.u32 4294901760, %v3039_v55 }
 0x29c   : > { %v421_v1 = vsel %vm357_vm0, %v414_v61, 0  ;;  %v723_v61 = vld [vmem:[#allocation2 + $0x10] sm:$0xff]  ;;  %v852_v35 = vand.u32 4294901760, %v851_v14 }
 0x29d   : > { %v2948_v5 = vand.u32 4294901760, %v421_v1  ;;  %v3066_v23 = vand.u32 4294901760, %v723_v61 }
 0x29f   : > { %4085 = vst [vmem:[#allocation17_spill] sm:$0xff] %v2948_v5  ;;  %v2957_v10 = vsub.f32 %v421_v1, %v2948_v5  ;;  %476 = vmatmul.f32.vlgmr.msra.gmra.mxu1 %v2948_v5 }
 0x2a0   : > { %666 = vmatpush.msra.mxu1 %v589_v40 }
 0x2a1   : > { %4086 = vst [vmem:[#allocation18_spill] sm:$0xff] %v2957_v10  ;;  %500 = vmatmul.f32.vlgmr.msra.gmra.mxu2 %v2957_v10  ;;  %v2968_v15 = vand.u32 4294901760, %v2957_v10 }
 0x2a2   : > { %692 = vmatpush.msra.mxu2 %v617_v42  ;;  %v822_v42 = vand.u32 4294901760, %v821_v31  ;;  %v3078_v31 = vand.u32 4294901760, %v721_v12 }
 0x2a3   : > { %4087 = vst [vmem:[#allocation19_spill] sm:$0xff] %v2968_v15  ;;  %524 = vmatmul.f32.vlgmr.msra.gmra.mxu3 %v2968_v15  ;;  %v448_v20 = vsub.f32 %v2957_v10, %v2968_v15 }
 0x2a4   : > { %714 = vmatpush.msra.mxu3 %v589_v40  ;;  %v729_v40 = vld [vmem:[#allocation2 + $0x40] sm:$0xff] }
 0x2a5   : > { %v2990_v26 = vand.u32 4294901760, %v448_v20  ;;  %v3030_v49 = vand.u32 4294901760, %v729_v40  ;;  %v3064_v20 = vsub.f32 %v727_v46, %v3041_v56 }
 0x2a7   : > { %4088 = vst [vmem:[#allocation20_spill] sm:$0xff] %v2990_v26  ;;  %450 = vmatmul.f32.vlgmr.msra.gmra.mxu0 %v2990_v26  ;;  %570 = vmatmul.f32.vlgmr.msrb.gmra.mxu1 %v2948_v5  ;;  %v3052_v1 = vsub.f32 %v729_v40, %v3030_v49  ;;  %v4032_v38 = vand.u32 4294901760, %v3064_v20  ;;  %v3088_v40 = vsub.f32 %v723_v61, %v3066_v23  ;;  %v750_v61 = vld [vmem:[#allocation2 + $0xe8] sm:$0xff] }
 0x2a8   : > { %805 = vmatpush.msrb.mxu1 %v804_v24  ;;  %643 = vmatpush.msra.mxu0 %v2921_v41  ;;  %v833_v41 = vsub.f32 %v2983_v21, %v4042_v33  ;;  %v846_v24 = vand.u32 4294901760, %v845_v58 }
 0x2a9   : > { %596 = vmatmul.f32.vlgmr.msrb.gmra.mxu2 %v2990_v26  ;;  %v4034_v29 = vand.u32 4294901760, %v3052_v1  ;;  %v4036_v58 = vand.u32 4294901760, %v3088_v40  ;;  %v730_v26 = vld [vmem:[#allocation2 + $0x48] sm:$0xff] }
 0x2aa   : > { %811 = vmatpush.msrb.mxu1 %v810_v30  ;;  %903 = vmatpush.msrb.mxu2 %v2934_v59  ;;  %v834_v57 = vand.u32 4294901760, %v833_v41  ;;  %v3076_v30 = vsub.f32 %v725_v53, %v3054_v4 }
 0x2ab   : > { %622 = vmatmul.f32.vlgmr.msrb.gmra.mxu3 %v2948_v5  ;;  %v869_v41 = vsub.f32 %v3052_v1, %v4034_v29  ;;  %v744_v29 = vld [vmem:[#allocation2 + $0xb8] sm:$0xff] }
 0x2ac   : > { %817 = vmatpush.msrb.mxu1 %v816_v36  ;;  %906 = vmatpush.msrb.mxu2 %v2939_v62  ;;  %v863_v36 = vsub.f32 %v3039_v55, %v4035_v18  ;;  %v4033_v46 = vand.u32 4294901760, %v3076_v30  ;;  %v3143_v0 = vand.u32 4294901760, %v744_v29 }
 0x2ad   : > { %956 = vmatpush.msrb.mxu3 %v2926_v48 }
 0x2ae   : > { %823 = vmatpush.msrb.mxu1 %v822_v42  ;;  %909 = vmatpush.msrb.mxu2 %v2946_v3  ;;  %v858_v42 = vand.u32 4294901760, %v857_v25  ;;  %v864_v53 = vand.u32 4294901760, %v863_v36  ;;  %v881_v14 = vsub.f32 %v3076_v30, %v4033_v46  ;;  %v748_v25 = vld [vmem:[#allocation2 + $0xd8] sm:$0xff]  ;;  %v746_v36 = vld [vmem:[#allocation2 + $0xc8] sm:$0xff] }
 0x2af   : > { %958 = vmatpush.msrb.mxu3 %v2928_v50  ;;  %548 = vmatmul.f32.vlgmr.msrb.gmra.mxu0 %v2948_v5  ;;  %v3129_v46 = vand.u32 4294901760, %v748_v25 }
 0x2b0   : > { %670 = vmatmul.f32.vlgmr.msra.gmra.mxu1 %v2968_v15  ;;  %760 = vmatpush.msrb.mxu0 %v2926_v48  ;;  %v882_v18 = vand.u32 4294901760, %v881_v14  ;;  %v3220_v15 = vand.u32 4294901760, %v732_v2 }
 0x2b1   : > { %829 = vmatpush.msrb.mxu1 %v828_v51  ;;  %912 = vmatpush.msrb.mxu2 %v2954_v8  ;;  %v3098_v51 = vsub.f32 %v721_v12, %v3078_v31  ;;  %v870_v12 = vand.u32 4294901760, %v869_v41 }
 0x2b2   : > { %960 = vmatpush.msrb.mxu3 %v2936_v60  ;;  %694 = vmatmul.f32.vlgmr.msra.gmra.mxu2 %v2948_v5 }
 0x2b3   : > { %762 = vmatpush.msrb.mxu0 %v2928_v50  ;;  %835 = vmatpush.msrb.mxu1 %v834_v57  ;;  %v875_v57 = vsub.f32 %v3064_v20, %v4032_v38 }
 0x2b4   : > { %915 = vmatpush.msrb.mxu2 %v2971_v16  ;;  %962 = vmatpush.msrb.mxu3 %v2941_v63 }
 0x2b5   : > { %716 = vmatmul.f32.vlgmr.msra.gmra.mxu3 %v2948_v5  ;;  %764 = vmatpush.msrb.mxu0 %v2936_v60  ;;  %v876_v38 = vand.u32 4294901760, %v875_v57  ;;  %v3135_v57 = vand.u32 4294901760, %v746_v36 }
 0x2b6   : > { %841 = vmatpush.msrb.mxu1 %v840_v9  ;;  %918 = vmatpush.msrb.mxu2 %v2983_v21  ;;  %v3109_v9 = vand.u32 4294901760, %v752_v52 }
 0x2b7   : > { %964 = vmatpush.msrb.mxu3 %v2950_v6  ;;  %766 = vmatpush.msrb.mxu0 %v2941_v63  ;;  %v3153_v54 = vsub.f32 %v746_v36, %v3135_v57 }
 0x2b8   : > { %847 = vmatpush.msrb.mxu1 %v846_v24  ;;  %921 = vmatpush.msrb.mxu2 %v2994_v28  ;;  %v4038_v24 = vand.u32 4294901760, %v3098_v51  ;;  %v3127_v41 = vsub.f32 %v752_v52, %v3109_v9 }
 0x2b9   : > { %966 = vmatpush.msrb.mxu3 %v2960_v11  ;;  %646 = vmatmul.f32.vlgmr.msra.gmra.mxu0 %v2957_v10  ;;  %v3237_v10 = vand.u32 4294901760, %v730_v26 }
 0x2ba   : > { %768 = vmatpush.msrb.mxu0 %v2950_v6  ;;  %853 = vmatpush.msrb.mxu1 %v852_v35  ;;  %v3118_v35 = vand.u32 4294901760, %v750_v61  ;;  %v4043_v14 = vand.u32 4294901760, %v3127_v41 }
 0x2bb   : > { %924 = vmatpush.msrb.mxu2 %v3005_v34  ;;  %968 = vmatpush.msrb.mxu3 %v2973_v17 }
 0x2bc   : > { %770 = vmatpush.msrb.mxu0 %v2960_v11  ;;  %859 = vmatpush.msrb.mxu1 %v858_v42  ;;  %v887_v42 = vsub.f32 %v3088_v40, %v4036_v58  ;;  %v3140_v52 = vsub.f32 %v750_v61, %v3118_v35  ;;  %v1144_v36 = vsub.f32 %v3127_v41, %v4043_v14 }
 0x2bd   : > { %927 = vmatpush.msrb.mxu2 %v3017_v43  ;;  %970 = vmatpush.msrb.mxu3 %v2985_v22 }
 0x2be   : > { %772 = vmatpush.msrb.mxu0 %v2973_v17  ;;  %865 = vmatpush.msrb.mxu1 %v864_v53  ;;  %v893_v53 = vsub.f32 %v3098_v51, %v4038_v24  ;;  %v888_v58 = vand.u32 4294901760, %v887_v42  ;;  %v3149_v24 = vsub.f32 %v748_v25, %v3129_v46  ;;  %v4047_v42 = vand.u32 4294901760, %v3140_v52 }
 0x2bf   : > { %930 = vmatpush.msrb.mxu2 %v3028_v47  ;;  %972 = vmatpush.msrb.mxu3 %v2999_v32  ;;  %v3162_v25 = vsub.f32 %v744_v29, %v3143_v0  ;;  %v736_v29 = vld [vmem:[#allocation2 + $0x78] sm:$0xff]  ;;  %v1145_v13 = vand.u32 4294901760, %v1144_v36 }
 0x2c0   : > { %774 = vmatpush.msrb.mxu0 %v2985_v22  ;;  %871 = vmatpush.msrb.mxu1 %v870_v12  ;;  %v742_v12 = vld [vmem:[#allocation2 + $0xa8] sm:$0xff]  ;;  %v894_v61 = vand.u32 4294901760, %v893_v53  ;;  %v4050_v53 = vand.u32 4294901760, %v3149_v24  ;;  %v1150_v33 = vsub.f32 %v3140_v52, %v4047_v42  ;;  %v3195_v7 = vand.u32 4294901760, %v736_v29 }
 0x2c1   : > { %933 = vmatpush.msrb.mxu2 %v3039_v55  ;;  %974 = vmatpush.msrb.mxu3 %v3008_v37  ;;  %v3158_v45 = vand.u32 4294901760, %v742_v12 }
 0x2c2   : > { %776 = vmatpush.msrb.mxu0 %v2999_v32  ;;  %877 = vmatpush.msrb.mxu1 %v876_v38  ;;  %v740_v38 = vld [vmem:[#allocation2 + $0x98] sm:$0xff]  ;;  %v1156_v42 = vsub.f32 %v3149_v24, %v4050_v53  ;;  %v1151_v36 = vand.u32 4294901760, %v1150_v33 }
 0x2c3   : > { %936 = vmatpush.msrb.mxu2 %v3052_v1  ;;  %976 = vmatpush.msrb.mxu3 %v3019_v44  ;;  %v3170_v39 = vand.u32 4294901760, %v740_v38  ;;  %v3180_v14 = vsub.f32 %v742_v12, %v3158_v45 }
 0x2c4   : > { %778 = vmatpush.msrb.mxu0 %v3008_v37  ;;  %883 = vmatpush.msrb.mxu1 %v882_v18  ;;  %v738_v18 = vld [vmem:[#allocation2 + $0x88] sm:$0xff]  ;;  %v1157_v33 = vand.u32 4294901760, %v1156_v42 }
 0x2c5   : > { %939 = vmatpush.msrb.mxu2 %v3064_v20  ;;  %978 = vmatpush.msrb.mxu3 %v3030_v49  ;;  %4089 = vst [vmem:[#allocation21_spill] sm:$0xff] %v3180_v14  ;;  %v3182_v27 = vand.u32 4294901760, %v738_v18  ;;  %v3193_v12 = vsub.f32 %v740_v38, %v3170_v39  ;;  %v4091_v42 = vand.u32 4294901760, %v3180_v14 }
 0x2c6   : > { %780 = vmatpush.msrb.mxu0 %v3019_v44  ;;  %889 = vmatpush.msrb.mxu1 %v888_v58  ;;  %v4051_v58 = vand.u32 4294901760, %v3153_v54 }
 0x2c7   : > { %942 = vmatpush.msrb.mxu2 %v3076_v30  ;;  %980 = vmatpush.msrb.mxu3 %v3041_v56  ;;  %v3206_v53 = vsub.f32 %v738_v18, %v3182_v27  ;;  %v3218_v18 = vsub.f32 %v736_v29, %v3195_v7  ;;  %v1174_v29 = vsub.f32 %v3180_v14, %v4091_v42  ;;  %v4093_v5 = vand.u32 4294901760, %v3193_v12 }
 0x2c8   : > { %782 = vmatpush.msrb.mxu0 %v3030_v49  ;;  %895 = vmatpush.msrb.mxu1 %v894_v61  ;;  %v3208_v61 = vand.u32 4294901760, %v734_v19 }
 0x2c9   : > { %945 = vmatpush.msrb.mxu2 %v3088_v40  ;;  %982 = vmatpush.msrb.mxu3 %v3054_v4  ;;  %v1180_v42 = vsub.f32 %v3193_v12, %v4093_v5 }
 0x2ca   : > { %1064 = vmatpush.msra.mxu1 %v2926_v48  ;;  %784 = vmatpush.msrb.mxu0 %v3041_v56  ;;  %v1162_v48 = vsub.f32 %v3153_v54, %v4051_v58  ;;  %v3235_v38 = vsub.f32 %v734_v19, %v3208_v61  ;;  %v3248_v19 = vsub.f32 %v732_v2, %v3220_v15 }
 0x2cb   : > { %948 = vmatpush.msrb.mxu2 %v3098_v51  ;;  %984 = vmatpush.msrb.mxu3 %v3066_v23  ;;  %v3261_v2 = vsub.f32 %v730_v26, %v3237_v10 }
 0x2cc   : > { %1066 = vmatpush.msra.mxu1 %v2928_v50  ;;  %786 = vmatpush.msrb.mxu0 %v3054_v4  ;;  %v4090_v50 = vand.u32 4294901760, %v3162_v25 }
 0x2cd   : > { %1101 = vmatpush.msra.mxu2 %v3109_v9  ;;  %986 = vmatpush.msrb.mxu3 %v3078_v31 }
 0x2ce   : > { %1068 = vmatpush.msra.mxu1 %v2936_v60  ;;  %v1168_v58 = vsub.f32 %v3162_v25, %v4090_v50  ;;  %788 = vmatpush.msrb.mxu0 %v3066_v23  ;;  %v1163_v60 = vand.u32 4294901760, %v1162_v48 }
 0x2cf   : > { %1103 = vmatpush.msra.mxu2 %v3118_v35  ;;  %1146 = vmatpush.msra.mxu3 %v1145_v13  ;;  %v728_v13 = vld [vmem:[#allocation2 + $0x38] sm:$0xff] }
 0x2d0   : > { %1070 = vmatpush.msra.mxu1 %v2941_v63  ;;  %790 = vmatpush.msrb.mxu0 %v3078_v31  ;;  %v4092_v63 = vand.u32 4294901760, %v2934_v59  ;;  %v1169_v48 = vand.u32 4294901760, %v1168_v58  ;;  %v3250_v14 = vand.u32 4294901760, %v728_v13  ;;  %v726_v59 = vld [vmem:[#allocation2 + $0x28] sm:$0xff]  ;;  %v4095_v58 = vand.u32 4294901760, %v3206_v53 }
 0x2d1   : > { %1105 = vmatpush.msra.mxu2 %v3129_v46  ;;  %1152 = vmatpush.msra.mxu3 %v1151_v36  ;;  %v720_v36 = vld [vmem:[%s353_s9] sm:$0xff] }
 0x2d2   : > { %997 = vmatpush.msra.mxu0 %v4092_v63  ;;  %1072 = vmatpush.msra.mxu1 %v2950_v6  ;;  %v4094_v63 = vand.u32 4294901760, %v2939_v62  ;;  %v1175_v6 = vand.u32 4294901760, %v1174_v29  ;;  %v1186_v5 = vsub.f32 %v3206_v53, %v4095_v58  ;;  %v3263_v50 = vand.u32 4294901760, %v720_v36 }
 0x2d3   : > { %1107 = vmatpush.msra.mxu2 %v3135_v57  ;;  %1158 = vmatpush.msra.mxu3 %v1157_v33  ;;  %v4096_v62 = vand.u32 4294901760, %v2946_v3  ;;  %v1181_v29 = vand.u32 4294901760, %v1180_v42  ;;  %v3276_v33 = vsub.f32 %v728_v13, %v3250_v14  ;;  %v4098_v3 = vand.u32 4294901760, %v2954_v8 }
 0x2d4   : > { %1001 = vmatpush.msra.mxu0 %v4094_v63  ;;  %1074 = vmatpush.msra.mxu1 %v2960_v11  ;;  %v3268_v11 = vand.u32 4294901760, %v726_v59  ;;  %v4097_v63 = vand.u32 4294901760, %v3218_v18  ;;  %v4099_v42 = vand.u32 4294901760, %v3235_v38  ;;  %v3289_v13 = vsub.f32 %v720_v36, %v3263_v50 }
 0x2d5   : > { %1109 = vmatpush.msra.mxu2 %v3143_v0  ;;  %1164 = vmatpush.msra.mxu3 %v1163_v60  ;;  %v724_v60 = vld [vmem:[#allocation2 + $0x18] sm:$0xff]  ;;  %v4100_v8 = vand.u32 4294901760, %v2971_v16  ;;  %v4102_v16 = vand.u32 4294901760, %v2983_v21 }
 0x2d6   : > { %1005 = vmatpush.msra.mxu0 %v4096_v62  ;;  %1076 = vmatpush.msra.mxu1 %v2973_v17  ;;  %v1192_v58 = vsub.f32 %v3218_v18, %v4097_v63  ;;  %v722_v17 = vld [vmem:[#allocation2 + $0x8] sm:$0xff]  ;;  %v1198_v62 = vsub.f32 %v3235_v38, %v4099_v42  ;;  %v1209_v63 = vand.u32 4294901760, %v3261_v2  ;;  %v3286_v26 = vand.u32 4294901760, %v724_v60 }
 0x2d7   : > { %1111 = vmatpush.msra.mxu2 %v3158_v45  ;;  %1170 = vmatpush.msra.mxu3 %v1169_v48  ;;  %v1187_v48 = vand.u32 4294901760, %v1186_v5  ;;  %v4101_v5 = vand.u32 4294901760, %v3248_v19  ;;  %v1215_v42 = vand.u32 4294901760, %v3276_v33  ;;  %v3302_v36 = vand.u32 4294901760, %v722_v17 }
 0x2d8   : > { %1009 = vmatpush.msra.mxu0 %v4098_v3  ;;  %1078 = vmatpush.msra.mxu1 %v2985_v22  ;;  %v3295_v22 = vsub.f32 %v726_v59, %v3268_v11  ;;  %v1210_v59 = vsub.f32 %v3261_v2, %v1209_v63 }
 0x2d9   : > { %1113 = vmatpush.msra.mxu2 %v3170_v39  ;;  %1176 = vmatpush.msra.mxu3 %v1175_v6  ;;  %v1193_v6 = vand.u32 4294901760, %v1192_v58  ;;  %v1204_v3 = vsub.f32 %v3248_v19, %v4101_v5  ;;  %v4103_v58 = vand.u32 4294901760, %v2994_v28  ;;  %v4104_v28 = vand.u32 4294901760, %v3005_v34 }
 0x2da   : > { %1013 = vmatpush.msra.mxu0 %v4100_v8  ;;  %1080 = vmatpush.msra.mxu1 %v2999_v32  ;;  %v1199_v32 = vand.u32 4294901760, %v1198_v62  ;;  %v1221_v21 = vand.u32 4294901760, %v3295_v22  ;;  %v1216_v62 = vsub.f32 %v3276_v33, %v1215_v42 }
 0x2db   : > { %1115 = vmatpush.msra.mxu2 %v3182_v27  ;;  %1182 = vmatpush.msra.mxu3 %v1181_v29  ;;  %v3312_v29 = vsub.f32 %v724_v60, %v3286_v26  ;;  %v3326_v60 = vsub.f32 %v722_v17, %v3302_v36 }
 0x2dc   : > { %1017 = vmatpush.msra.mxu0 %v4102_v16  ;;  %1082 = vmatpush.msra.mxu1 %v3008_v37  ;;  %v3319_v37 = vand.u32 4294901760, %v3289_v13  ;;  %v1222_v17 = vsub.f32 %v3295_v22, %v1221_v21 }
 0x2dd   : > { %1117 = vmatpush.msra.mxu2 %v3195_v7  ;;  %1188 = vmatpush.msra.mxu3 %v1187_v48  ;;  %v1205_v48 = vand.u32 4294901760, %v1204_v3  ;;  %v1227_v8 = vand.u32 4294901760, %v3312_v29  ;;  %v1233_v5 = vand.u32 4294901760, %v3326_v60  ;;  %v4106_v3 = vand.u32 4294901760, %v3028_v47 }
 0x2de   : > { %1021 = vmatpush.msra.mxu0 %v4103_v58  ;;  %1084 = vmatpush.msra.mxu1 %v3019_v44  ;;  %v1211_v44 = vand.u32 4294901760, %v1210_v59  ;;  %v794_v34 = vsub.f32 %v3289_v13, %v3319_v37  ;;  %v1223_v16 = vand.u32 4294901760, %v1222_v17  ;;  %v4109_v59 = vand.u32 4294901760, %v3064_v20 }
 0x2df   : > { %1119 = vmatpush.msra.mxu2 %v3208_v61  ;;  %1194 = vmatpush.msra.mxu3 %v1193_v6  ;;  %v4105_v6 = vand.u32 4294901760, %v3017_v43  ;;  %v1228_v43 = vsub.f32 %v3312_v29, %v1227_v8  ;;  %v1234_v47 = vsub.f32 %v3326_v60, %v1233_v5  ;;  %v4112_v58 = vand.u32 4294901760, %v3140_v52 }
 0x2e0   : > { %1025 = vmatpush.msra.mxu0 %v4104_v28  ;;  %1086 = vmatpush.msra.mxu1 %v3030_v49  ;;  %v1217_v49 = vand.u32 4294901760, %v1216_v62  ;;  %v4113_v20 = vand.u32 4294901760, %v3088_v40  ;;  %v1477_v40 = vld [vmem:[#allocation8] sm:$0xf] }
 0x2e1   : > { %1121 = vmatpush.msra.mxu2 %v3220_v15  ;;  %1200 = vmatpush.msra.mxu3 %v1199_v32  ;;  %v3353_v32 = vand.u32 4294901760, %v794_v34 }
 0x2e2   : > { %1029 = vmatpush.msra.mxu0 %v4105_v6  ;;  %1088 = vmatpush.msra.mxu1 %v3041_v56  ;;  %v4107_v56 = vand.u32 4294901760, %v3039_v55  ;;  %v1229_v55 = vand.u32 4294901760, %v1228_v43 }
 0x2e3   : > { %1123 = vmatpush.msra.mxu2 %v3237_v10  ;;  %1206 = vmatpush.msra.mxu3 %v1205_v48  ;;  %v4114_v48 = vand.u32 4294901760, %v3149_v24 }
 0x2e4   : > { %1033 = vmatpush.msra.mxu0 %v4106_v3  ;;  %1090 = vmatpush.msra.mxu1 %v3054_v4  ;;  %v4108_v4 = vand.u32 4294901760, %v3052_v1  ;;  %v4110_v1 = vand.u32 4294901760, %v3127_v41 }
 0x2e5   : > { %1125 = vmatpush.msra.mxu2 %v3250_v14  ;;  %1212 = vmatpush.msra.mxu3 %v1211_v44 }
 0x2e6   : > { %1037 = vmatpush.msra.mxu0 %v4107_v56  ;;  %1092 = vmatpush.msra.mxu1 %v3066_v23  ;;  %v1235_v23 = vand.u32 4294901760, %v1234_v47  ;;  %v1452_v47 = vld [vmem:[#allocation7 + $0x38] sm:$0xff] }
 0x2e7   : > { %1127 = vmatpush.msra.mxu2 %v3268_v11  ;;  %1218 = vmatpush.msra.mxu3 %v1217_v49 }
 0x2e8   : > { %951 = vmatmul.f32.vlgmr.msrb.gmra.mxu2 %v3289_v13  ;;  %1041 = vmatpush.msra.mxu0 %v4108_v4  ;;  %v1451_v4 = vld [vmem:[#allocation7 + $0x30] sm:$0xff] }
 0x2e9   : > { %1094 = vmatpush.msra.mxu1 %v3078_v31  ;;  %1129 = vmatpush.msra.mxu2 %v3286_v26  ;;  %v4111_v31 = vand.u32 4294901760, %v3076_v30  ;;  %v4115_v30 = vand.u32 4294901760, %v3098_v51  ;;  %v4117_v51 = vand.u32 4294901760, %v3162_v25 }
 0x2ea   : > { %1224 = vmatpush.msra.mxu3 %v1223_v16  ;;  %796 = vmatmul.f32.vlgmr.msrb.gmra.mxu0 %v3353_v32 }
 0x2eb   : > { %897 = vmatmul.f32.vlgmr.msrb.gmra.mxu1 %v3263_v50  ;;  %990 = vmatmul.f32.vlgmr.msrb.gmra.mxu3 %v3319_v37 }
 0x2ec   : > { %1297 = vmatpush.msrb.mxu1 %v3109_v9  ;;  %1045 = vmatpush.msra.mxu0 %v4109_v59 }
 0x2ed   : > { %1131 = vmatpush.msra.mxu2 %v3302_v36  ;;  %1230 = vmatpush.msra.mxu3 %v1229_v55 }
 0x2ee   : > { %1299 = vmatpush.msrb.mxu1 %v3118_v35  ;;  %1049 = vmatpush.msra.mxu0 %v4111_v31 }
 0x2ef   : > { %1338 = vmatpush.msrb.mxu2 %v4110_v1  ;;  %1236 = vmatpush.msra.mxu3 %v1235_v23  ;;  %v1450_v1 = vld [vmem:[#allocation7 + $0x28] sm:$0xff] }
 0x2f0   : > { %1301 = vmatpush.msrb.mxu1 %v3129_v46  ;;  %1053 = vmatpush.msra.mxu0 %v4113_v20 }
 0x2f1   : > { %1342 = vmatpush.msrb.mxu2 %v4112_v58  ;;  %1405 = vmatpush.msrb.mxu3 %v3109_v9  ;;  %v4116_v9 = vand.u32 4294901760, %v3153_v54  ;;  %v1449_v58 = vld [vmem:[#allocation7 + $0x20] sm:$0xff] }
 0x2f2   : > { %1303 = vmatpush.msrb.mxu1 %v3135_v57  ;;  %1057 = vmatpush.msra.mxu0 %v4115_v30  ;;  %v3544_v30 = vand.u32 4294901760, %v1452_v47 }
 0x2f3   : > { %1346 = vmatpush.msrb.mxu2 %v4114_v48  ;;  %1407 = vmatpush.msrb.mxu3 %v3118_v35  ;;  %v1479_v35 = vsel %vm423_vm8, %v1477_v40, 0 }
 0x2f4   : > { %1059 = vmatmul.f32.vlgmr.msra.gmra.mxu0 %v3263_v50  ;;  %1305 = vmatpush.msrb.mxu1 %v3143_v0 }
 0x2f5   : > { %1244 = vmatpush.msrb.mxu0 %v3127_v41  ;;  %1350 = vmatpush.msrb.mxu2 %v4116_v9  ;;  %v4118_v41 = vld [vmem:[#allocation21_spill] sm:$0xff]  ;;  %v3546_v9 = vand.u32 4294901760, %v1451_v4 }
 0x2f6   : > { %1409 = vmatpush.msrb.mxu3 %v3129_v46  ;;  %1096 = vmatmul.f32.vlgmr.msra.gmra.mxu1 %v3263_v50  ;;  %v4119_v46 = vand.u32 4294901760, %v4118_v41 }
 0x2f7   : > { %1247 = vmatpush.msrb.mxu0 %v3140_v52  ;;  %1307 = vmatpush.msrb.mxu1 %v3158_v45  ;;  %v4120_v52 = vand.u32 4294901760, %v3193_v12 }
 0x2f8   : > { %1354 = vmatpush.msrb.mxu2 %v4117_v51  ;;  %1411 = vmatpush.msrb.mxu3 %v3135_v57  ;;  %v1496_v57 = vand.u32 4294901760, %v1479_v35 }
 0x2f9   : > { %1250 = vmatpush.msrb.mxu0 %v3149_v24  ;;  %1309 = vmatpush.msrb.mxu1 %v3170_v39  ;;  %v4121_v24 = vand.u32 4294901760, %v3206_v53 }
 0x2fa   : > { %1358 = vmatpush.msrb.mxu2 %v4119_v46  ;;  %1413 = vmatpush.msrb.mxu3 %v3143_v0  ;;  %v4123_v0 = vand.u32 4294901760, %v3235_v38 }
 0x2fb   : > { %1253 = vmatpush.msrb.mxu0 %v3153_v54  ;;  %1311 = vmatpush.msrb.mxu1 %v3182_v27  ;;  %v4122_v54 = vand.u32 4294901760, %v3218_v18 }
 0x2fc   : > { %1362 = vmatpush.msrb.mxu2 %v4120_v52  ;;  %1415 = vmatpush.msrb.mxu3 %v3158_v45  ;;  %v1523_v45 = vsub.f32 %v1479_v35, %v1496_v57  ;;  %v3554_v35 = vand.u32 4294901760, %v1450_v1  ;;  %v3558_v52 = vsub.f32 %v1452_v47, %v3544_v30 }
 0x2fd   : > { %1256 = vmatpush.msrb.mxu0 %v3162_v25  ;;  %1313 = vmatpush.msrb.mxu1 %v3195_v7  ;;  %v4127_v25 = vld [vmem:[#allocation19_spill] sm:$0xff] }
 0x2fe   : > { %1366 = vmatpush.msrb.mxu2 %v4121_v24  ;;  %1417 = vmatpush.msrb.mxu3 %v3170_v39  ;;  %v4124_v39 = vand.u32 4294901760, %v3248_v19  ;;  %v3563_v24 = vand.u32 4294901760, %v1449_v58 }
 0x2ff   : > { %1259 = vmatpush.msrb.mxu0 %v4118_v41  ;;  %1315 = vmatpush.msrb.mxu1 %v3208_v61  ;;  %v1448_v41 = vld [vmem:[#allocation7 + $0x18] sm:$0xff] }
 0x300   : > { %1370 = vmatpush.msrb.mxu2 %v4122_v54  ;;  %1419 = vmatpush.msrb.mxu3 %v3182_v27  ;;  %v1524_v27 = vand.u32 4294901760, %v1523_v45 }
 0x301   : > { %1262 = vmatpush.msrb.mxu0 %v3193_v12  ;;  %1317 = vmatpush.msrb.mxu1 %v3220_v15  ;;  %v1459_v12 = vld [vmem:[#allocation7 + $0x70] sm:$0xff] }
 0x302   : > { %1374 = vmatpush.msrb.mxu2 %v4123_v0  ;;  %1421 = vmatpush.msrb.mxu3 %v3195_v7  ;;  %v1525_v7 = vsub.f32 %v1523_v45, %v1524_v27 }
 0x303   : > { %1265 = vmatpush.msrb.mxu0 %v3206_v53  ;;  %1319 = vmatpush.msrb.mxu1 %v3237_v10  ;;  %v4128_v53 = vld [vmem:[#allocation20_spill] sm:$0xff] }
 0x304   : > { %1378 = vmatpush.msrb.mxu2 %v4124_v39  ;;  %1423 = vmatpush.msrb.mxu3 %v3208_v61  ;;  %v1460_v61 = vld [vmem:[#allocation7 + $0x78] sm:$0xff]  ;;  %v1718_v39 = vand.u32 4294901760, %v3558_v52 }
 0x305   : > { %1268 = vmatpush.msrb.mxu0 %v3218_v18  ;;  %1321 = vmatpush.msrb.mxu1 %v3250_v14  ;;  %v3470_v18 = vand.u32 4294901760, %v1460_v61 }
 0x306   : > { %1382 = vmatpush.msrb.mxu2 %v1209_v63  ;;  %1425 = vmatpush.msrb.mxu3 %v3220_v15  ;;  %v4125_v15 = vld [vmem:[#allocation17_spill] sm:$0xff] }
 0x307   : > { %1137 = vmatmul.f32.vlgmr.msra.gmra.mxu2 %v3353_v32  ;;  %1271 = vmatpush.msrb.mxu0 %v3235_v38  ;;  %v1458_v38 = vld [vmem:[#allocation7 + $0x68] sm:$0xff] }
 0x308   : > { %1323 = vmatpush.msrb.mxu1 %v3268_v11  ;;  %1386 = vmatpush.msrb.mxu2 %v1215_v42  ;;  %v1453_v42 = vld [vmem:[#allocation7 + $0x40] sm:$0xff] }
 0x309   : > { %1427 = vmatpush.msrb.mxu3 %v3237_v10  ;;  %1274 = vmatpush.msrb.mxu0 %v3248_v19  ;;  %v1526_v10 = vand.u32 4294901760, %v1525_v7  ;;  %v3474_v19 = vand.u32 4294901760, %v1458_v38  ;;  %v3504_v44 = vand.u32 4294901760, %v1453_v42  ;;  %v3575_v7 = vand.u32 4294901760, %v1448_v41 }
 0x30a   : > { %1238 = vmatmul.f32.vlgmr.msra.gmra.mxu3 %v3263_v50  ;;  %1325 = vmatpush.msrb.mxu1 %v3286_v26 }
 0x30b   : > { %1390 = vmatpush.msrb.mxu2 %v1221_v21  ;;  %1429 = vmatpush.msrb.mxu3 %v3250_v14  ;;  %v4126_v14 = vld [vmem:[#allocation18_spill] sm:$0xff]  ;;  %v3490_v21 = vsub.f32 %v1458_v38, %v3474_v19  ;;  %v3531_v32 = vsub.f32 %v1453_v42, %v3504_v44 }
 0x30c   : > { %1277 = vmatpush.msrb.mxu0 %v3261_v2  ;;  %1327 = vmatpush.msrb.mxu1 %v3302_v36  ;;  %v1456_v2 = vld [vmem:[#allocation7 + $0x58] sm:$0xff]  ;;  %v1445_v38 = vld [vmem:[#allocation7] sm:$0xff] }
 0x30d   : > { %1394 = vmatpush.msrb.mxu2 %v1227_v8  ;;  %1431 = vmatpush.msrb.mxu3 %v3268_v11  ;;  %v1455_v11 = vld [vmem:[#allocation7 + $0x50] sm:$0xff]  ;;  %v3478_v63 = vand.u32 4294901760, %v1456_v2  ;;  %v1682_v17 = vand.u32 4294901760, %v3490_v21  ;;  %v1712_v51 = vand.u32 4294901760, %v3531_v32  ;;  %v3610_v47 = vand.u32 4294901760, %v1445_v38 }
 0x30e   : > { %1331 = vmatmul.f32.vlgmr.msrb.gmra.mxu1 %v3319_v37  ;;  %1280 = vmatpush.msrb.mxu0 %v3276_v33  ;;  %v1457_v33 = vld [vmem:[#allocation7 + $0x60] sm:$0xff] }
 0x30f   : > { %1398 = vmatpush.msrb.mxu2 %v1233_v5  ;;  %1433 = vmatpush.msrb.mxu3 %v3286_v26  ;;  %v3476_v26 = vand.u32 4294901760, %v1457_v33  ;;  %v1683_v43 = vsub.f32 %v3490_v21, %v1682_v17 }
 0x310   : > { %1400 = vmatmul.f32.vlgmr.msrb.gmra.mxu2 %v3263_v50  ;;  %1283 = vmatpush.msrb.mxu0 %v3295_v22  ;;  %v1454_v22 = vld [vmem:[#allocation7 + $0x48] sm:$0xff] }
 0x311   : > { %1435 = vmatpush.msrb.mxu3 %v3302_v36  ;;  %1527 = vmatpush.msra.mxu1 %v1526_v10  ;;  %v3484_v36 = vsub.f32 %v1460_v61, %v3470_v18  ;;  %v3493_v37 = vand.u32 4294901760, %v1454_v22  ;;  %v3496_v62 = vsub.f32 %v1457_v33, %v3476_v26  ;;  %v1684_v20 = vand.u32 4294901760, %v1683_v43 }
 0x312   : > { %1437 = vmatmul.f32.vlgmr.msrb.gmra.mxu3 %v3263_v50  ;;  %1286 = vmatpush.msrb.mxu0 %v3312_v29  ;;  %v3472_v50 = vand.u32 4294901760, %v1459_v12  ;;  %v1713_v10 = vsub.f32 %v3531_v32, %v1712_v51  ;;  %v1719_v33 = vsub.f32 %v3558_v52, %v1718_v39 }
 0x313   : > { %1550 = vmatpush.msra.mxu2 %v1523_v45  ;;  %1573 = vmatpush.msra.mxu3 %v1496_v57  ;;  %v1670_v8 = vand.u32 4294901760, %v3484_v36  ;;  %v1688_v34 = vand.u32 4294901760, %v3496_v62  ;;  %v3513_v49 = vsub.f32 %v1454_v22, %v3493_v37  ;;  %v1447_v45 = vld [vmem:[#allocation7 + $0x10] sm:$0xff] }
 0x314   : > { %1289 = vmatpush.msrb.mxu0 %v3326_v60  ;;  %1621 = vmatpush.msrb.mxu1 %v1496_v57  ;;  %v3487_v29 = vsub.f32 %v1459_v12, %v3472_v50  ;;  %v3499_v60 = vsub.f32 %v1456_v2, %v3478_v63  ;;  %v3587_v61 = vand.u32 4294901760, %v1447_v45  ;;  %v1714_v42 = vand.u32 4294901760, %v1713_v10 }
 0x315   : > { %1292 = vmatmul.f32.vlgmr.msrb.gmra.mxu0 %v3289_v13  ;;  %v3480_v13 = vand.u32 4294901760, %v1455_v11  ;;  %1628 = vmatpush.msrb.mxu2 %v3470_v18  ;;  %v1671_v5 = vsub.f32 %v3484_v36, %v1670_v8  ;;  %v1689_v59 = vsub.f32 %v3496_v62, %v1688_v34  ;;  %v1706_v31 = vand.u32 4294901760, %v3513_v49 }
 0x316   : > { %1529 = vmatmul.f32.vlgmr.msra.gmra.mxu1 %v4125_v15  ;;  %1497 = vmatpush.msra.mxu0 %v1496_v57  ;;  %v1676_v6 = vand.u32 4294901760, %v3487_v29  ;;  %v1694_v56 = vand.u32 4294901760, %v3499_v60  ;;  %v3561_v57 = vsub.f32 %v1451_v4, %v3546_v9  ;;  %v3608_v43 = vsub.f32 %v1447_v45, %v3587_v61 }
 0x317   : > { %1824 = vmatpush.msra.mxu1 %v3470_v18  ;;  %v3502_v28 = vsub.f32 %v1455_v11, %v3480_v13  ;;  %1630 = vmatpush.msrb.mxu2 %v3472_v50  ;;  %v1672_v55 = vand.u32 4294901760, %v1671_v5  ;;  %v1690_v46 = vand.u32 4294901760, %v1689_v59  ;;  %v1707_v54 = vsub.f32 %v3513_v49, %v1706_v31 }
 0x318   : > { %1599 = vmatpush.msrb.mxu0 %v1524_v27  ;;  %1553 = vmatmul.f32.vlgmr.msra.gmra.mxu2 %v4126_v14  ;;  %v1677_v3 = vsub.f32 %v3487_v29, %v1676_v6  ;;  %v1695_v48 = vsub.f32 %v3499_v60, %v1694_v56  ;;  %v3573_v27 = vsub.f32 %v1450_v1, %v3554_v35  ;;  %v1720_v4 = vand.u32 4294901760, %v1719_v33  ;;  %v1476_v33 = vld [vmem:[#allocation7 + $0xf8] sm:$0xff] }
 0x319   : > { %1826 = vmatpush.msra.mxu1 %v3472_v50  ;;  %1632 = vmatpush.msrb.mxu2 %v3474_v19  ;;  %v1700_v16 = vand.u32 4294901760, %v3502_v28  ;;  %v1708_v12 = vand.u32 4294901760, %v1707_v54  ;;  %v3596_v11 = vsub.f32 %v1448_v41, %v3575_v7 }
 0x31a   : > { %1577 = vmatmul.f32.vlgmr.msra.gmra.mxu3 %v4127_v25  ;;  %v1678_v23 = vand.u32 4294901760, %v1677_v3  ;;  %v1696_v0 = vand.u32 4294901760, %v1695_v48  ;;  %v1724_v25 = vand.u32 4294901760, %v3561_v57  ;;  %v1730_v2 = vand.u32 4294901760, %v3573_v27 }
 0x31b   : > { %1828 = vmatpush.msra.mxu1 %v3474_v19  ;;  %1634 = vmatpush.msrb.mxu2 %v3476_v26  ;;  %v1701_v40 = vsub.f32 %v3502_v28, %v1700_v16  ;;  %v3630_v48 = vsub.f32 %v1445_v38, %v3610_v47 }
 0x31c   : > { %1673 = vmatpush.msrb.mxu3 %v1672_v55  ;;  %v1725_v5 = vsub.f32 %v3561_v57, %v1724_v25  ;;  %v1731_v55 = vsub.f32 %v3573_v27, %v1730_v2 }
 0x31d   : > { %1503 = vmatmul.f32.vlgmr.msra.gmra.mxu0 %v4128_v53  ;;  %1830 = vmatpush.msra.mxu1 %v3476_v26  ;;  %v1702_v14 = vand.u32 4294901760, %v1701_v40  ;;  %v3585_v53 = vsub.f32 %v1449_v58, %v3563_v24 }
 0x31e   : > { %1623 = vmatmul.f32.vlgmr.msrb.gmra.mxu1 %v4125_v15  ;;  %1771 = vmatpush.msra.mxu0 %v3484_v36  ;;  %v1726_v1 = vand.u32 4294901760, %v1725_v5  ;;  %v1732_v40 = vand.u32 4294901760, %v1731_v55  ;;  %v3664_v5 = vand.u32 4294901760, %v1476_v33  ;;  %v1475_v36 = vld [vmem:[#allocation7 + $0xf0] sm:$0xff] }
 0x31f   : > { %1636 = vmatpush.msrb.mxu2 %v3478_v63  ;;  %1832 = vmatpush.msra.mxu1 %v3478_v63  ;;  %v1736_v3 = vand.u32 4294901760, %v3585_v53 }
 0x320   : > { %1774 = vmatpush.msra.mxu0 %v3487_v29  ;;  %1679 = vmatpush.msrb.mxu3 %v1678_v23  ;;  %v1742_v23 = vand.u32 4294901760, %v3596_v11  ;;  %v1474_v29 = vld [vmem:[#allocation7 + $0xe8] sm:$0xff] }
 0x321   : > { %1638 = vmatpush.msrb.mxu2 %v3480_v13  ;;  %1834 = vmatpush.msra.mxu1 %v3480_v13  ;;  %v1737_v58 = vsub.f32 %v3585_v53, %v1736_v3 }
 0x322   : > { %1777 = vmatpush.msra.mxu0 %v3490_v21  ;;  %1685 = vmatpush.msrb.mxu3 %v1684_v20  ;;  %v1748_v20 = vand.u32 4294901760, %v3608_v43  ;;  %v1743_v41 = vsub.f32 %v3596_v11, %v1742_v23  ;;  %v3681_v21 = vand.u32 4294901760, %v1474_v29 }
 0x323   : > { %1640 = vmatpush.msrb.mxu2 %v3493_v37  ;;  %1836 = vmatpush.msra.mxu1 %v3493_v37  ;;  %v1738_v54 = vand.u32 4294901760, %v1737_v58 }
 0x324   : > { %1780 = vmatpush.msra.mxu0 %v3496_v62  ;;  %1691 = vmatpush.msrb.mxu3 %v1690_v46  ;;  %v1749_v45 = vsub.f32 %v3608_v43, %v1748_v20  ;;  %v1744_v10 = vand.u32 4294901760, %v1743_v41 }
 0x325   : > { %1601 = vmatmul.f32.vlgmr.msrb.gmra.mxu0 %v4125_v15  ;;  %v1446_v15 = vld [vmem:[#allocation7 + $0x8] sm:$0xff]  ;;  %1642 = vmatpush.msrb.mxu2 %v3504_v44 }
 0x326   : > { %1783 = vmatpush.msra.mxu0 %v3499_v60  ;;  %1838 = vmatpush.msra.mxu1 %v3504_v44  ;;  %v3598_v22 = vand.u32 4294901760, %v1446_v15 }
 0x327   : > { %1697 = vmatpush.msrb.mxu3 %v1696_v0  ;;  %1644 = vmatpush.msrb.mxu2 %v3544_v30  ;;  %v1760_v0 = vand.u32 4294901760, %v3630_v48 }
 0x328   : > { %1840 = vmatpush.msra.mxu1 %v3544_v30  ;;  %1786 = vmatpush.msra.mxu0 %v3502_v28  ;;  %v3620_v59 = vsub.f32 %v1446_v15, %v3598_v22  ;;  %v1471_v28 = vld [vmem:[#allocation7 + $0xd0] sm:$0xff] }
 0x329   : > { %1703 = vmatpush.msrb.mxu3 %v1702_v14  ;;  %1646 = vmatpush.msrb.mxu2 %v3546_v9  ;;  %v1750_v14 = vand.u32 4294901760, %v1749_v45 }
 0x32a   : > { %1842 = vmatpush.msra.mxu1 %v3546_v9  ;;  %1789 = vmatpush.msra.mxu0 %v3513_v49  ;;  %v1754_v46 = vand.u32 4294901760, %v3620_v59  ;;  %v1470_v49 = vld [vmem:[#allocation7 + $0xc8] sm:$0xff] }
 0x32b   : > { %1709 = vmatpush.msrb.mxu3 %v1708_v12  ;;  %1648 = vmatpush.msrb.mxu2 %v3554_v35  ;;  %v1761_v12 = vsub.f32 %v3630_v48, %v1760_v0 }
 0x32c   : > { %1844 = vmatpush.msra.mxu1 %v3554_v35  ;;  %1792 = vmatpush.msra.mxu0 %v3531_v32  ;;  %v1755_v15 = vsub.f32 %v3620_v59, %v1754_v46 }
 0x32d   : > { %1715 = vmatpush.msrb.mxu3 %v1714_v42  ;;  %1650 = vmatpush.msrb.mxu2 %v3563_v24  ;;  %v1762_v42 = vand.u32 4294901760, %v1761_v12 }
 0x32e   : > { %1846 = vmatpush.msra.mxu1 %v3563_v24  ;;  %1795 = vmatpush.msra.mxu0 %v3558_v52  ;;  %v1756_v38 = vand.u32 4294901760, %v1755_v15  ;;  %v1468_v52 = vld [vmem:[#allocation7 + $0xb8] sm:$0xff] }
 0x32f   : > { %1721 = vmatpush.msrb.mxu3 %v1720_v4  ;;  %1652 = vmatpush.msrb.mxu2 %v3575_v7  ;;  %v3672_v4 = vand.u32 4294901760, %v1475_v36 }
 0x330   : > { %1848 = vmatpush.msra.mxu1 %v3575_v7  ;;  %1798 = vmatpush.msra.mxu0 %v3561_v57 }
 0x331   : > { %1727 = vmatpush.msrb.mxu3 %v1726_v1  ;;  %1654 = vmatpush.msrb.mxu2 %v3587_v61  ;;  %v3679_v55 = vsub.f32 %v1475_v36, %v3672_v4  ;;  %v3692_v1 = vsub.f32 %v1474_v29, %v3681_v21 }
 0x332   : > { %1850 = vmatpush.msra.mxu1 %v3587_v61  ;;  %1801 = vmatpush.msra.mxu0 %v3573_v27  ;;  %v1466_v27 = vld [vmem:[#allocation7 + $0xa8] sm:$0xff] }
 0x333   : > { %1733 = vmatpush.msrb.mxu3 %v1732_v40  ;;  %1656 = vmatpush.msrb.mxu2 %v3598_v22  ;;  %v4072_v40 = vand.u32 4294901760, %v3692_v1 }
 0x334   : > { %1852 = vmatpush.msra.mxu1 %v3598_v22  ;;  %1804 = vmatpush.msra.mxu0 %v3585_v53 }
 0x335   : > { %1739 = vmatpush.msrb.mxu3 %v1738_v54  ;;  %1658 = vmatpush.msrb.mxu2 %v3610_v47  ;;  %v3708_v54 = vpop.f32.mrf.mxu0 }
 0x336   : > { %1854 = vmatpush.msra.mxu1 %v3610_v47  ;;  %1807 = vmatpush.msra.mxu0 %v3596_v11 }
 0x337   : > { %1865 = vmatpush.msra.mxu2 %v1670_v8  ;;  %1745 = vmatpush.msrb.mxu3 %v1744_v10  ;;  %v3670_v8 = vsub.f32 %v1476_v33, %v3664_v5  ;;  %v2024_v10 = vsub.f32 %v3692_v1, %v4072_v40  ;;  %v3736_v33 = vand.u32 4294901760, %v1470_v49 }
 0x338   : > { %1810 = vmatpush.msra.mxu0 %v3608_v43 }
 0x339   : > { %1869 = vmatpush.msra.mxu2 %v1676_v6  ;;  %1751 = vmatpush.msrb.mxu3 %v1750_v14  ;;  %v4074_v6 = vand.u32 4294901760, %v3670_v8  ;;  %v3721_v14 = vand.u32 4294901760, %v1471_v28  ;;  %v3747_v29 = vsub.f32 %v1470_v49, %v3736_v33 }
 0x33a   : > { %1813 = vmatpush.msra.mxu0 %v3620_v59 }
 0x33b   : > { %1873 = vmatpush.msra.mxu2 %v1682_v17  ;;  %1757 = vmatpush.msrb.mxu3 %v1756_v38  ;;  %v1473_v17 = vld [vmem:[#allocation7 + $0xe0] sm:$0xff]  ;;  %v2012_v62 = vsub.f32 %v3670_v8, %v4074_v6  ;;  %v3734_v38 = vsub.f32 %v1471_v28, %v3721_v14 }
 0x33c   : > { %1816 = vmatpush.msra.mxu0 %v3630_v48  ;;  %v3694_v58 = vand.u32 4294901760, %v1473_v17 }
 0x33d   : > { %1877 = vmatpush.msra.mxu2 %v1688_v34  ;;  %1763 = vmatpush.msrb.mxu3 %v1762_v42  ;;  %v4073_v34 = vand.u32 4294901760, %v3679_v55  ;;  %v2013_v60 = vand.u32 4294901760, %v2012_v62  ;;  %v4068_v36 = vand.u32 4294901760, %v3734_v38  ;;  %v3781_v49 = vpop.f32.mrf.mxu0 }
 0x33e   : > { %1969 = vmatpush.msrb.mxu0 %v3664_v5  ;;  %v3705_v41 = vsub.f32 %v1473_v17, %v3694_v58 }
 0x33f   : > { %1932 = vmatpush.msra.mxu3 %v3470_v18  ;;  %1881 = vmatpush.msra.mxu2 %v1694_v56  ;;  %v1472_v18 = vld [vmem:[#allocation7 + $0xd8] sm:$0xff]  ;;  %v2018_v56 = vsub.f32 %v3679_v55, %v4073_v34  ;;  %v2042_v62 = vsub.f32 %v3734_v38, %v4068_v36 }
 0x340   : > { %1971 = vmatpush.msrb.mxu0 %v3672_v4  ;;  %2014 = vmatpush.msrb.mxu1 %v2013_v60  ;;  %v4070_v15 = vand.u32 4294901760, %v3705_v41 }
 0x341   : > { %1934 = vmatpush.msra.mxu3 %v3472_v50  ;;  %1885 = vmatpush.msra.mxu2 %v1700_v16  ;;  %v3713_v50 = vand.u32 4294901760, %v1472_v18  ;;  %v3715_v16 = vpop.f32.mrf.mxu1  ;;  %v2019_v45 = vand.u32 4294901760, %v2018_v56  ;;  %v2043_v56 = vand.u32 4294901760, %v2042_v62 }
 0x342   : > { %1973 = vmatpush.msrb.mxu0 %v3681_v21  ;;  %v2030_v12 = vsub.f32 %v3705_v41, %v4070_v15 }
 0x343   : > { %1936 = vmatpush.msra.mxu3 %v3474_v19  ;;  %1889 = vmatpush.msra.mxu2 %v1706_v31  ;;  %v3726_v19 = vsub.f32 %v1472_v18, %v3713_v50  ;;  %v2025_v31 = vand.u32 4294901760, %v2024_v10  ;;  %v4066_v18 = vand.u32 4294901760, %v3747_v29 }
 0x344   : > { %2020 = vmatpush.msrb.mxu1 %v2019_v45  ;;  %1975 = vmatpush.msrb.mxu0 %v3694_v58  ;;  %v2031_v42 = vand.u32 4294901760, %v2030_v12 }
 0x345   : > { %1938 = vmatpush.msra.mxu3 %v3476_v26  ;;  %1893 = vmatpush.msra.mxu2 %v1712_v51  ;;  %v3739_v26 = vpop.f32.mrf.mxu2  ;;  %v4069_v32 = vand.u32 4294901760, %v3726_v19  ;;  %v1469_v51 = vld [vmem:[#allocation7 + $0xc0] sm:$0xff]  ;;  %v2048_v28 = vsub.f32 %v3747_v29, %v4066_v18 }
 0x346   : > { %2026 = vmatpush.msrb.mxu1 %v2025_v31  ;;  %v3749_v17 = vand.u32 4294901760, %v1469_v51  ;;  %1977 = vmatpush.msrb.mxu0 %v3713_v50 }
 0x347   : > { %1940 = vmatpush.msra.mxu3 %v3478_v63  ;;  %1897 = vmatpush.msra.mxu2 %v1718_v39  ;;  %v2036_v63 = vsub.f32 %v3726_v19, %v4069_v32  ;;  %v3758_v39 = vpop.f32.mrf.mxu3  ;;  %v2049_v31 = vand.u32 4294901760, %v2048_v28 }
 0x348   : > { %2032 = vmatpush.msrb.mxu1 %v2031_v42  ;;  %v3765_v60 = vsub.f32 %v1469_v51, %v3749_v17  ;;  %1979 = vmatpush.msrb.mxu0 %v3721_v14  ;;  %v3794_v42 = vand.u32 4294901760, %v1466_v27 }
 0x349   : > { %1942 = vmatpush.msra.mxu3 %v3480_v13  ;;  %1901 = vmatpush.msra.mxu2 %v1724_v25  ;;  %v3767_v13 = vand.u32 4294901760, %v1468_v52  ;;  %v2037_v57 = vand.u32 4294901760, %v2036_v63  ;;  %v1467_v25 = vld [vmem:[#allocation7 + $0xb0] sm:$0xff]  ;;  %v1465_v63 = vld [vmem:[#allocation7 + $0xa0] sm:$0xff] }
 0x34a   : > { %v4065_v45 = vand.u32 4294901760, %v3765_v60  ;;  %1981 = vmatpush.msrb.mxu0 %v3736_v33  ;;  %v3807_v53 = vsub.f32 %v1466_v27, %v3794_v42  ;;  %v1463_v27 = vld [vmem:[#allocation7 + $0x90] sm:$0xff] }
 0x34b   : > { %1944 = vmatpush.msra.mxu3 %v3493_v37  ;;  %1905 = vmatpush.msra.mxu2 %v1730_v2  ;;  %v3778_v10 = vsub.f32 %v1468_v52, %v3767_v13  ;;  %v3784_v37 = vand.u32 4294901760, %v1467_v25  ;;  %v3786_v2 = vpop.f32.mrf.mxu1 }
 0x34c   : > { %2038 = vmatpush.msrb.mxu1 %v2037_v57  ;;  %v2054_v12 = vsub.f32 %v3765_v60, %v4065_v45  ;;  %1983 = vmatpush.msrb.mxu0 %v3749_v17  ;;  %v4059_v28 = vand.u32 4294901760, %v3807_v53 }
 0x34d   : > { %1946 = vmatpush.msra.mxu3 %v3504_v44  ;;  %v4064_v51 = vand.u32 4294901760, %v3778_v10  ;;  %1909 = vmatpush.msra.mxu2 %v1736_v3  ;;  %v3799_v44 = vsub.f32 %v1467_v25, %v3784_v37  ;;  %v3809_v3 = vand.u32 4294901760, %v1465_v63  ;;  %v1464_v25 = vld [vmem:[#allocation7 + $0x98] sm:$0xff] }
 0x34e   : > { %2044 = vmatpush.msrb.mxu1 %v2043_v56  ;;  %v2055_v52 = vand.u32 4294901760, %v2054_v12  ;;  %1985 = vmatpush.msrb.mxu0 %v3767_v13  ;;  %v2072_v43 = vsub.f32 %v3807_v53, %v4059_v28 }
 0x34f   : > { %1948 = vmatpush.msra.mxu3 %v3544_v30  ;;  %v2060_v62 = vsub.f32 %v3778_v10, %v4064_v51  ;;  %1913 = vmatpush.msra.mxu2 %v1742_v23  ;;  %v3812_v30 = vpop.f32.mrf.mxu2  ;;  %v4062_v57 = vand.u32 4294901760, %v3799_v44  ;;  %v3820_v11 = vsub.f32 %v1465_v63, %v3809_v3  ;;  %v3822_v23 = vand.u32 4294901760, %v1464_v25 }
 0x350   : > { %2050 = vmatpush.msrb.mxu1 %v2049_v31  ;;  %1987 = vmatpush.msrb.mxu0 %v3784_v37  ;;  %v3829_v31 = vpop.f32.mrf.mxu3 }
 0x351   : > { %1950 = vmatpush.msra.mxu3 %v3546_v9  ;;  %v2061_v56 = vand.u32 4294901760, %v2060_v62  ;;  %1917 = vmatpush.msra.mxu2 %v1748_v20  ;;  %v2066_v9 = vsub.f32 %v3799_v44, %v4062_v57  ;;  %v4060_v20 = vand.u32 4294901760, %v3820_v11  ;;  %v3838_v12 = vsub.f32 %v1464_v25, %v3822_v23  ;;  %v3854_v25 = vpop.f32.mrf.mxu0 }
 0x352   : > { %2056 = vmatpush.msrb.mxu1 %v2055_v52  ;;  %1989 = vmatpush.msrb.mxu0 %v3794_v42  ;;  %v1462_v52 = vld [vmem:[#allocation7 + $0x88] sm:$0xff]  ;;  %v2073_v62 = vand.u32 4294901760, %v2072_v43 }
 0x353   : > { %1952 = vmatpush.msra.mxu3 %v3554_v35  ;;  %1921 = vmatpush.msra.mxu2 %v1754_v46  ;;  %v3840_v35 = vand.u32 4294901760, %v1463_v27  ;;  %v2067_v63 = vand.u32 4294901760, %v2066_v9  ;;  %v2078_v28 = vsub.f32 %v3820_v11, %v4060_v20  ;;  %v4061_v59 = vand.u32 4294901760, %v3838_v12  ;;  %v3859_v9 = vpop.f32.mrf.mxu1  ;;  %v3868_v20 = vld [vmem:[#allocation5] sm:$0x3] }
 0x354   : > { %2062 = vmatpush.msrb.mxu1 %v2061_v56  ;;  %1991 = vmatpush.msrb.mxu0 %v3809_v3  ;;  %v1461_v56 = vld [vmem:[#allocation7 + $0x80] sm:$0xff] }
 0x355   : > { %1954 = vmatpush.msra.mxu3 %v3563_v24  ;;  %1925 = vmatpush.msra.mxu2 %v1760_v0  ;;  %v3851_v46 = vsub.f32 %v1463_v27, %v3840_v35  ;;  %v3857_v24 = vand.u32 4294901760, %v1462_v52  ;;  %v2079_v43 = vand.u32 4294901760, %v2078_v28  ;;  %v2084_v48 = vsub.f32 %v3838_v12, %v4061_v59 }
 0x356   : > { %2068 = vmatpush.msrb.mxu1 %v2067_v63  ;;  %v3865_v27 = vand.u32 4294901760, %v1461_v56  ;;  %1993 = vmatpush.msrb.mxu0 %v3822_v23 }
 0x357   : > { %1956 = vmatpush.msra.mxu3 %v3575_v7  ;;  %v4063_v0 = vand.u32 4294901760, %v3851_v46  ;;  %v3872_v7 = vsub.f32 %v1462_v52, %v3857_v24  ;;  %v2085_v63 = vand.u32 4294901760, %v2084_v48  ;;  %v3881_v57 = vpop.f32.mrf.mxu2  ;;  %v755_v52 = vperm.slane %v3868_v20, 0 }
 0x358   : > { %2074 = vmatpush.msrb.mxu1 %v2073_v62  ;;  %v3878_v59 = vsub.f32 %v1461_v56, %v3865_v27  ;;  %1995 = vmatpush.msrb.mxu0 %v3840_v35 }
 0x359   : > { %1958 = vmatpush.msra.mxu3 %v3587_v61  ;;  %v2090_v28 = vsub.f32 %v3851_v46, %v4063_v0  ;;  %v4067_v61 = vand.u32 4294901760, %v3872_v7  ;;  %v3892_v0 = vpop.f32.mrf.mxu3 }
 0x35a   : > { %2080 = vmatpush.msrb.mxu1 %v2079_v43  ;;  %v4071_v48 = vand.u32 4294901760, %v3878_v59  ;;  %1997 = vmatpush.msrb.mxu0 %v3857_v24 }
 0x35b   : > { %1960 = vmatpush.msra.mxu3 %v3598_v22  ;;  %v2091_v62 = vand.u32 4294901760, %v2090_v28  ;;  %v2096_v56 = vsub.f32 %v3872_v7, %v4067_v61 }
 0x35c   : > { %2086 = vmatpush.msrb.mxu1 %v2085_v63  ;;  %v2102_v22 = vsub.f32 %v3878_v59, %v4071_v48  ;;  %1999 = vmatpush.msrb.mxu0 %v3865_v27  ;;  %v478_v63 = vadd.f32 %v3715_v16, %v3708_v54 }
 0x35d   : > { %1962 = vmatpush.msra.mxu3 %v3610_v47  ;;  %v2097_v28 = vand.u32 4294901760, %v2096_v56 }
 0x35e   : > { %2092 = vmatpush.msrb.mxu1 %v2091_v62  ;;  %v2103_v45 = vand.u32 4294901760, %v2102_v22  ;;  %v502_v36 = vadd.f32 %v3739_v26, %v478_v63 }
 0x360   : > { %2098 = vmatpush.msrb.mxu1 %v2097_v28  ;;  %v526_v40 = vadd.f32 %v3758_v39, %v502_v36 }
 0x362   : > { %2104 = vmatpush.msrb.mxu1 %v2103_v45  ;;  %v550_v62 = vadd.f32 %v3781_v49, %v526_v40  ;;  %v4130_v40 = vand.u32 4294901760, %v3679_v55  ;;  %v4138_v45 = vand.u32 4294901760, %v3799_v44 }
 0x364   : > { %v572_v16 = vadd.f32 %v3786_v2, %v550_v62 }
 0x367   : > { %v797_v43 = vpop.f32.mrf.mxu0 }
 0x368   : > { %v798_v51 = vadd.f32 %v797_v43, %v755_v52  ;;  %v898_v47 = vpop.f32.mrf.mxu1 }
 0x36a   : > { %v899_v18 = vadd.f32 %v898_v47, %v798_v51 }
 0x36b   : > { %v952_v61 = vpop.f32.mrf.mxu2 }
 0x36c   : > { %v953_v32 = vadd.f32 %v952_v61, %v899_v18 }
 0x36e   : > { %v991_v15 = vpop.f32.mrf.mxu3 }
 0x36f   : > { %v992_v48 = vadd.f32 %v991_v15, %v953_v32  ;;  %v4129_v15 = vand.u32 4294901760, %v3670_v8  ;;  %v4131_v32 = vand.u32 4294901760, %v3692_v1 }
 0x371   : > { %v1060_v34 = vpop.f32.mrf.mxu0 }
 0x372   : > { %v1061_v56 = vadd.f32 %v1060_v34, %v992_v48 }
 0x373   : > { %v1097_v6 = vpop.f32.mrf.mxu1 }
 0x374   : > { %v1098_v54 = vadd.f32 %v1097_v6, %v1061_v56 }
 0x376   : > { %v1441_v52 = vmax.f32 %v1098_v54, 0.0 }
 0x378   : > { %v1443_v22 = vmul.f32 %v1441_v52, %v572_v16 }
 0x37a   : > { %v1659_v51 = vand.u32 4294901760, %v1443_v22 }
 0x37c   : > { %v1660_v43 = vsub.f32 %v1443_v22, %v1659_v51  ;;  %1765 = vmatmul.f32.vlgmr.msrb.gmra.mxu3 %v1659_v51 }
 0x37d   : > { %2165 = vmatpush.msrb.mxu3 %v3664_v5 }
 0x37e   : > { %1819 = vmatmul.f32.vlgmr.msra.gmra.mxu0 %v1660_v43  ;;  %v1661_v26 = vand.u32 4294901760, %v1660_v43 }
 0x37f   : > { %2167 = vmatpush.msrb.mxu3 %v3672_v4  ;;  %2206 = vmatpush.msra.mxu0 %v4129_v15 }
 0x380   : > { %1858 = vmatmul.f32.vlgmr.msra.gmra.mxu1 %v1661_v26  ;;  %v1662_v34 = vsub.f32 %v1660_v43, %v1661_v26 }
 0x381   : > { %2169 = vmatpush.msrb.mxu3 %v3681_v21  ;;  %2273 = vmatpush.msra.mxu1 %v3664_v5  ;;  %v756_v5 = vperm.slane %v3868_v20, 1  ;;  %v4144_v20 = vand.u32 4294901760, %v3878_v59 }
 0x382   : > { %v1663_v6 = vand.u32 4294901760, %v1662_v34  ;;  %2210 = vmatpush.msra.mxu0 %v4130_v40 }
 0x383   : > { %2171 = vmatpush.msrb.mxu3 %v3694_v58  ;;  %2275 = vmatpush.msra.mxu1 %v3672_v4  ;;  %v4132_v4 = vand.u32 4294901760, %v3705_v41 }
 0x384   : > { %1664 = vmatmul.f32.vlgmr.msrb.gmra.mxu2 %v1663_v6  ;;  %1964 = vmatmul.f32.vlgmr.msra.gmra.mxu3 %v1659_v51 }
 0x385   : > { %2112 = vmatpush.msrb.mxu2 %v3670_v8  ;;  %2173 = vmatpush.msrb.mxu3 %v3713_v50 }
 0x386   : > { %2277 = vmatpush.msra.mxu1 %v3681_v21  ;;  %2214 = vmatpush.msra.mxu0 %v4131_v32  ;;  %v4133_v21 = vand.u32 4294901760, %v3726_v19 }
 0x387   : > { %2115 = vmatpush.msrb.mxu2 %v3679_v55  ;;  %2175 = vmatpush.msrb.mxu3 %v3721_v14 }
 0x388   : > { %2279 = vmatpush.msra.mxu1 %v3694_v58  ;;  %2218 = vmatpush.msra.mxu0 %v4132_v4  ;;  %v624_v58 = vadd.f32 %v3829_v31, %v3812_v30 }
 0x389   : > { %2118 = vmatpush.msrb.mxu2 %v3692_v1  ;;  %2177 = vmatpush.msrb.mxu3 %v3736_v33 }
 0x38a   : > { %v1138_v8 = vpop.f32.mrf.mxu2  ;;  %2281 = vmatpush.msra.mxu1 %v3713_v50  ;;  %2222 = vmatpush.msra.mxu0 %v4133_v21  ;;  %v4134_v50 = vand.u32 4294901760, %v3734_v38 }
 0x38b   : > { %v1139_v55 = vadd.f32 %v1138_v8, %v756_v5  ;;  %2121 = vmatpush.msrb.mxu2 %v3705_v41  ;;  %2179 = vmatpush.msrb.mxu3 %v3749_v17  ;;  %v648_v41 = vadd.f32 %v3854_v25, %v624_v58 }
 0x38c   : > { %1927 = vmatmul.f32.vlgmr.msra.gmra.mxu2 %v1659_v51  ;;  %2283 = vmatpush.msra.mxu1 %v3721_v14  ;;  %v4135_v14 = vand.u32 4294901760, %v3747_v29 }
 0x38d   : > { %2124 = vmatpush.msrb.mxu2 %v3726_v19  ;;  %2181 = vmatpush.msrb.mxu3 %v3767_v13  ;;  %v1239_v1 = vpop.f32.mrf.mxu3  ;;  %v672_v39 = vadd.f32 %v3859_v9, %v648_v41 }
 0x38e   : > { %2285 = vmatpush.msra.mxu1 %v3736_v33  ;;  %2226 = vmatpush.msra.mxu0 %v4134_v50  ;;  %v1240_v36 = vadd.f32 %v1239_v1, %v1139_v55  ;;  %v4136_v33 = vand.u32 4294901760, %v3765_v60 }
 0x38f   : > { %2127 = vmatpush.msrb.mxu2 %v3734_v38  ;;  %2183 = vmatpush.msrb.mxu3 %v3784_v37 }
 0x390   : > { %2287 = vmatpush.msra.mxu1 %v3749_v17  ;;  %2230 = vmatpush.msra.mxu0 %v4135_v14  ;;  %v1332_v17 = vpop.f32.mrf.mxu1 }
 0x391   : > { %2130 = vmatpush.msrb.mxu2 %v3747_v29  ;;  %2185 = vmatpush.msrb.mxu3 %v3794_v42  ;;  %v4137_v29 = vand.u32 4294901760, %v3778_v10 }
 0x392   : > { %v1293_v19 = vpop.f32.mrf.mxu0  ;;  %2289 = vmatpush.msra.mxu1 %v3767_v13  ;;  %2234 = vmatpush.msra.mxu0 %v4136_v33 }
 0x393   : > { %v1294_v38 = vadd.f32 %v1293_v19, %v1240_v36  ;;  %2133 = vmatpush.msrb.mxu2 %v3765_v60  ;;  %2187 = vmatpush.msrb.mxu3 %v3809_v3  ;;  %v1401_v13 = vpop.f32.mrf.mxu2  ;;  %v696_v60 = vadd.f32 %v3881_v57, %v672_v39  ;;  %v4142_v57 = vand.u32 4294901760, %v3851_v46 }
 0x394   : > { %2291 = vmatpush.msra.mxu1 %v3784_v37  ;;  %2238 = vmatpush.msra.mxu0 %v4137_v29 }
 0x395   : > { %v1333_v18 = vadd.f32 %v1332_v17, %v1294_v38  ;;  %2136 = vmatpush.msrb.mxu2 %v3778_v10  ;;  %2189 = vmatpush.msrb.mxu3 %v3822_v23  ;;  %v1438_v37 = vpop.f32.mrf.mxu3  ;;  %v4139_v10 = vand.u32 4294901760, %v3807_v53 }
 0x396   : > { %2293 = vmatpush.msra.mxu1 %v3794_v42  ;;  %2242 = vmatpush.msra.mxu0 %v4138_v45  ;;  %v4140_v42 = vand.u32 4294901760, %v3820_v11 }
 0x397   : > { %v1402_v49 = vadd.f32 %v1401_v13, %v1333_v18  ;;  %2139 = vmatpush.msrb.mxu2 %v3799_v44  ;;  %2191 = vmatpush.msrb.mxu3 %v3840_v35  ;;  %v718_v44 = vadd.f32 %v3892_v0, %v696_v60 }
 0x398   : > { %2295 = vmatpush.msra.mxu1 %v3809_v3  ;;  %2246 = vmatpush.msra.mxu0 %v4139_v10  ;;  %v4141_v3 = vand.u32 4294901760, %v3838_v12 }
 0x399   : > { %v1439_v2 = vadd.f32 %v1438_v37, %v1402_v49  ;;  %2142 = vmatpush.msrb.mxu2 %v3807_v53  ;;  %2193 = vmatpush.msrb.mxu3 %v3857_v24 }
 0x39a   : > { %2297 = vmatpush.msra.mxu1 %v3822_v23  ;;  %2250 = vmatpush.msra.mxu0 %v4140_v42 }
 0x39b   : > { %v1442_v30 = vmax.f32 %v1439_v2, 0.0  ;;  %2145 = vmatpush.msrb.mxu2 %v3820_v11  ;;  %2195 = vmatpush.msrb.mxu3 %v3865_v27  ;;  %v4143_v11 = vand.u32 4294901760, %v3872_v7  ;;  %v1554_v0 = vpop.f32.mrf.mxu2 }
 0x39c   : > { %2299 = vmatpush.msra.mxu1 %v3840_v35  ;;  %2254 = vmatpush.msra.mxu0 %v4141_v3 }
 0x39d   : > { %v1444_v53 = vmul.f32 %v1442_v30, %v718_v44  ;;  %2148 = vmatpush.msrb.mxu2 %v3838_v12  ;;  %v1578_v61 = vpop.f32.mrf.mxu3 }
 0x39e   : > { %2301 = vmatpush.msra.mxu1 %v3857_v24  ;;  %2258 = vmatpush.msra.mxu0 %v4142_v57  ;;  %v1530_v24 = vpop.f32.mrf.mxu1 }
 0x39f   : > { %v2000_v23 = vand.u32 4294901760, %v1444_v53  ;;  %2151 = vmatpush.msrb.mxu2 %v3851_v46  ;;  %v1504_v46 = vpop.f32.mrf.mxu0 }
 0x3a0   : > { %2303 = vmatpush.msra.mxu1 %v3865_v27  ;;  %2262 = vmatpush.msra.mxu0 %v4143_v11  ;;  %v1531_v9 = vadd.f32 %v1530_v24, %v1504_v46 }
 0x3a1   : > { %v2001_v31 = vsub.f32 %v1444_v53, %v2000_v23  ;;  %2106 = vmatmul.f32.vlgmr.msrb.gmra.mxu1 %v2000_v23  ;;  %2154 = vmatpush.msrb.mxu2 %v3872_v7 }
 0x3a2   : > { %2266 = vmatpush.msra.mxu0 %v4144_v20  ;;  %v1555_v27 = vadd.f32 %v1554_v0, %v1531_v9 }
 0x3a3   : > { %2157 = vmatpush.msrb.mxu2 %v3878_v59  ;;  %v2002_v12 = vand.u32 4294901760, %v2001_v31 }
 0x3a4   : > { %2160 = vmatmul.f32.vlgmr.msrb.gmra.mxu2 %v2001_v31  ;;  %v1579_v48 = vadd.f32 %v1578_v61, %v1555_v27 }
 0x3a5   : > { %2199 = vmatmul.f32.vlgmr.msrb.gmra.mxu3 %v2002_v12  ;;  %v2003_v35 = vsub.f32 %v2001_v31, %v2002_v12 }
 0x3a6   : > { %v1624_v63 = vpop.f32.mrf.mxu1 }
 0x3a7   : > { %v2004_v25 = vand.u32 4294901760, %v2003_v35  ;;  %v1602_v7 = vpop.f32.mrf.mxu0 }
 0x3a8   : > { %v1603_v28 = vadd.f32 %v1602_v7, %v1579_v48 }
 0x3a9   : > { %2005 = vmatmul.f32.vlgmr.msrb.gmra.mxu0 %v2004_v25  ;;  %2305 = vmatmul.f32.vlgmr.msra.gmra.mxu1 %v2000_v23 }
 0x3aa   : > { %v1625_v47 = vadd.f32 %v1624_v63, %v1603_v28 }
 0x3b1   : > { %2268 = vmatmul.f32.vlgmr.msra.gmra.mxu0 %v2000_v23 }
 0x3fb   : > { %v1820_v16 = vpop.f32.mrf.mxu0 }
 0x3fd   : > { %v1859_v22 = vpop.f32.mrf.mxu1 }
 0x3ff   : > { %v1766_v56 = vpop.f32.mrf.mxu3 }
 0x407   : > { %v1665_v59 = vpop.f32.mrf.mxu2  ;;  %v1965_v15 = vpop.f32.mrf.mxu3 }
 0x408   : > { %v1666_v62 = vadd.f32 %v1665_v59, %v1625_v47 }
 0x40a   : > { %v1767_v54 = vadd.f32 %v1766_v56, %v1666_v62 }
 0x40c   : > { %v1821_v52 = vadd.f32 %v1820_v16, %v1767_v54 }
 0x40e   : > { %v1860_v51 = vadd.f32 %v1859_v22, %v1821_v52 }
 0x40f   : > { %v1928_v43 = vpop.f32.mrf.mxu2 }
 0x410   : > { %v1929_v26 = vadd.f32 %v1928_v43, %v1860_v51 }
 0x412   : > { %v1966_v34 = vadd.f32 %v1965_v15, %v1929_v26 }
 0x41e   : > { %v2107_v6 = vpop.f32.mrf.mxu1 }
 0x426   : > { %v2006_v40 = vpop.f32.mrf.mxu0  ;;  %v2306_v50 = vpop.f32.mrf.mxu1 }
 0x427   : > { %v2007_v32 = vadd.f32 %v2006_v40, %v1966_v34  ;;  %v2161_v4 = vpop.f32.mrf.mxu2 }
 0x428   : > { %v2200_v21 = vpop.f32.mrf.mxu3 }
 0x429   : > { %v2108_v5 = vadd.f32 %v2107_v6, %v2007_v32 }
 0x42b   : > { %v2162_v8 = vadd.f32 %v2161_v4, %v2108_v5 }
 0x42d   : > { %v2201_v55 = vadd.f32 %v2200_v21, %v2162_v8 }
 0x42e   : > { %v2269_v58 = vpop.f32.mrf.mxu0 }
 0x42f   : > { %v2270_v1 = vadd.f32 %v2269_v58, %v2201_v55 }
 0x431   : > { %v2307_v41 = vadd.f32 %v2306_v50, %v2270_v1 }
 0x433   : > { %2309 = vst [vmem:[%s345_s16] sm:$0xff] %v2307_v41 }
 0x434   : > { %2700 = shalt.err (!%p2697_p8)
}
 0x435   : > { %2475 = dma.vmem_to_hbm [thread:$0]  (%p2838_p5), %s2324_s18, 128, %s2326_s2, %s2311_s28  }
 0x436 PF: > { %p2502_p9 = scmp.ge.s32.totalorder %s2747_s27, 2  ;;  %s2337_s8 = sand.u32 1, %s2735_s24  }
 0x437   : > { %s2338_s9 = scalar_lea.sflag [#allocation4], %s2337_s8 }
 0x438   : > { %p2491_p10 = pnand %p2502_p9, %p2842_p6 }
 0x43a   : > { %p2492_p11 = pneg %p2491_p10 }
 0x43c   : > { %2730 = dma.done.wait (%p2492_p11), %s2338_s9, 128  }
 0x43d   : > { %2732 = vsyncadd (%p2492_p11), %s2338_s9, 4294967168  ;;  %s4145_s14 = sld [smem:[#allocation15_spill]]  ;;  %p20_p12 = scmp.ge.s32.totalorder %s2825_s30, 4  }
 0x43e   : > { %s4146_s26 = sld [smem:[#allocation16_spill]]  ;;  %s4147_s24 = smov %s2739_s25 }
 0x43f   : > { %s4149_s27 = smov %s2825_s30  ;;  %22 = sbr.rel (!%p20_p12) target bundleno = 9 (0x9), region = 103 }
 0x443   : > { %s4148_s25 = smov %s4145_s14 }
 0x444   :  { %2344 = vsyncpa [#allocation3], 1 }
 0x445   :  { %2346 = vsyncpa [#allocation3 + $0x1], 1 }
 0x446   :  { %2347 = vsyncpa [#allocation6], 1 }
 0x447   :  { %2348 = vsyncpa [#allocation9], 1 }
 0x448   :  { %2349 = vsyncpa [#allocation4], 1 }
 0x449   :  { %2351 = vsyncpa [#allocation4 + $0x1], 1 }

</bundles_post_ra>
